<compile_context>
chip_gen: v6e
topology: v6e:2x2x1
jax: 0.10.0
libtpu: 0.0.40
codegen_flags: <defaults>
</compile_context>

<pallas_src>
import jax
import jax.numpy as jnp
from jax.experimental import pallas as pl
from jax.experimental.pallas import tpu as pltpu

_LN_EPS = 1e-5
_BN_EPS = 1e-5
_INV_SQRT2 = 0.7071067811865476


def _gelu_exact(x):
    # TODO(synk): lax.erf has no guaranteed Mosaic lowering; exact GELU is computed with the
    # Abramowitz&Stegun 7.1.26 erf approximation (|err| <= 1.5e-7).  The reciprocal runs on
    # the EUP (approx mode), exp also on the EUP; only the polynomial stays on the VPU.
    z = x * _INV_SQRT2
    s = jnp.where(z >= 0.0, 1.0, -1.0)
    az = jnp.abs(z)
    t = pl.reciprocal(1.0 + 0.3275911 * az, approx=True)
    poly = ((((1.061405429 * t - 1.453152027) * t + 1.421413741) * t
             - 0.284496736) * t + 0.254829592) * t
    erf = s * (1.0 - poly * jnp.exp(-az * az))
    return 0.5 * x * (1.0 + erf)


# --------------------------- fused Pallas kernel -----------------------------

def _make_kernel(*, N, V, T, C, dils, LPAD):
    rows = N * V * T

    def kernel(x_ref, pos_ref, vidx_ref, tidx_ref, lng_ref, lnb_ref,
               w1_ref, g1_ref, b1_ref,
               w2_ref, g2_ref, b2_ref,
               w3_ref, g3_ref, b3_ref,
               we1_ref, ge_ref, be_ref,
               we2_ref, be2_ref,
               o_ref, pad_ref):
        v_idx = vidx_ref[...]            # (1, rows) int32, v index of each row
        t_idx = tidx_ref[...]            # (1, rows) int32, t index of each row

        # Zero the shared padded scratch ONCE; only the halo must stay zero, the lane-aligned
        # center [LPAD : LPAD+rows] is rewritten by every conv layer.
        pad_ref[...] = jnp.zeros_like(pad_ref)

        # ---- encoder tail: pos-embed add + LayerNorm over channels (sublane reduction) ----
        h = x_ref[...] + pos_ref[...]                      # (D, rows) f32
        mu = jnp.mean(h, axis=0, keepdims=True)
        hc = h - mu
        var = jnp.mean(hc * hc, axis=0, keepdims=True)
        h = hc * jax.lax.rsqrt(var + _LN_EPS) * lng_ref[...] + lnb_ref[...]

        def bn_gelu(y, g_ref, b_ref):
            # BatchNorm2d forward (training-mode batch stats over all N*V*T rows, biased
            # variance) in channel-major layout: stats are lane reductions (XLU slot).
            m = jnp.mean(y, axis=1, keepdims=True)
            yc = y - m
            s2 = jnp.mean(yc * yc, axis=1, keepdims=True)
            return _gelu_exact(yc * jax.lax.rsqrt(s2 + _BN_EPS) * g_ref[...] + b_ref[...])

        def causal_conv(act, w_ref, dil):
            # CausalConv2d(kernel=(3,3), dilation=dil, padding=(dil, 2*dil)) then
            # x[..., :-2*dil]: output(v,t) reads input(v+(i-1)*dil, t+(j-2)*dil), zero outside
            # the valid (V, T) grid.  9 per-tap matmuls accumulated into one f32 accumulator;
            # tap slabs are lane-offset slices of the shared padded scratch, border-masked.
            cin = act.shape[0]
            pad_ref[0:cin, LPAD:LPAD + rows] = act         # lane-aligned center store
            acc = jnp.zeros((C, rows), jnp.float32)
            for i in range(3):
                dv = (i - 1) * dil
                if dv != 0 and V <= dil:
                    continue                               # tap lies entirely in V padding
                for j in range(3):
                    dt = (j - 2) * dil
                    if dt != 0 and T <= -dt:
                        continue                           # tap lies entirely in causal T pad
                    s = dv * T + dt
                    slab = pad_ref[0:cin, LPAD + s:LPAD + s + rows]
                    cond = None
                    if dv < 0:
                        cond = v_idx >= -dv
                    elif dv > 0:
                        cond = v_idx < (V - dv)
                    if dt < 0:
                        c_t = t_idx >= -dt
                        cond = c_t if cond is None else jnp.logical_and(cond, c_t)
                    if cond is not None:
                        slab = jnp.where(cond, slab, 0.0)
                    acc = acc + jnp.dot(w_ref[i * 3 + j], slab.astype(jnp.bfloat16),
                                        preferred_element_type=jnp.float32)
            return acc

        y = bn_gelu(causal_conv(h, w1_ref, dils[0]), g1_ref, b1_ref)
        y = bn_gelu(causal_conv(y, w2_ref, dils[1]), g2_ref, b2_ref)
        y = bn_gelu(causal_conv(y, w3_ref, dils[2]), g3_ref, b3_ref)

        # end_conv_1 (1x1, no bias) + BatchNorm + GELU, bf16 MXU matmul, (C, rows) output.
        y = jnp.dot(we1_ref[...], y.astype(jnp.bfloat16), preferred_element_type=jnp.float32)
        y = bn_gelu(y, ge_ref, be_ref)

        # end_conv_2 (1x1 + bias), f32 projection; single lane-dense (Dp, rows) store.
        o_ref[...] = (jnp.dot(we2_ref[...], y, preferred_element_type=jnp.float32)
                      + be2_ref[...])

    return kernel


def _full_spec(shape):
    nd = len(shape)
    return pl.BlockSpec(shape, lambda i, _nd=nd: (0,) * _nd)


# ------------------------------ forward wrapper -------------------------------

def graph_encoder_causal_pred_forward(params, x, attn_bias=None):
    """x: (N, T, V, D) node/time features; attn_bias: (N, heads, V+1, V+1)."""
    # TODO(synk): GraphormerGraphEncoder (self.blocks / compute_mods) source not provided; the
    # transformer stack is treated as identity, so attn_bias and the graph-token concat+strip
    # (which cancels under identity blocks) do not affect the output and are not computed.
    del attn_bias
    N, T, V, D = x.shape
    assert T == 12, "module hardcodes 12 in the final view (requires n_hist == 12)"

    C = params["dilated"][0]["w"].shape[0]            # end_channel
    Dp = params["end_conv_2_w"].shape[0]              # pred_node_dim
    rows = N * V * T
    dils = (2, 4, 8)

    dmax = max(dils)
    LPAD = ((dmax * T + 2 * dmax + 127) // 128) * 128  # lane-aligned center start
    RPAD = dmax * T
    WIDTH = LPAD + rows + RPAD
    Cmax = max(D, C)

    # Channel-major inputs: channels on sublanes, rows = (n, v, t) flattened on lanes.
    x_cm = jnp.transpose(x, (3, 0, 2, 1)).reshape(D, rows).astype(jnp.float32)
    # pos[v, t] = pos_embed_space[v] + pos_embed_time[t]; pos_embed_cls only touches the
    # stripped graph-token row.  Tiled over N (constant, trace-time layout plumbing only).
    pos_cm = jnp.transpose(
        params["pos_embed_space"][0][:, None, :] + params["pos_embed_time"][0][None, :, :],
        (2, 0, 1)).reshape(D, V * T)
    pos_cm = jnp.tile(pos_cm, (1, N)).astype(jnp.float32)

    # Per-row (v, t) indices for the conv border masks (avoids int div/mod inside the kernel).
    r = jnp.arange(rows, dtype=jnp.int32)
    t_idx = (r % T).reshape(1, rows)
    v_idx = ((r // T) % V).reshape(1, rows)

    def col(p):
        return p.reshape(-1, 1).astype(jnp.float32)

    def conv_taps(w_oihw):
        # (Cout, Cin, 3, 3) -> (9, Cout, Cin), tap index k = i*3 + j; bf16 for the MXU.
        co, ci = w_oihw.shape[0], w_oihw.shape[1]
        return jnp.transpose(w_oihw, (2, 3, 0, 1)).reshape(9, co, ci).astype(jnp.bfloat16)

    inputs = [
        x_cm, pos_cm, v_idx, t_idx,
        col(params["norm_gamma"]), col(params["norm_beta"]),
        conv_taps(params["dilated"][0]["w"]),
        col(params["dilated"][0]["bn_gamma"]), col(params["dilated"][0]["bn_beta"]),
        conv_taps(params["dilated"][1]["w"]),
        col(params["dilated"][1]["bn_gamma"]), col(params["dilated"][1]["bn_beta"]),
        conv_taps(params["dilated"][2]["w"]),
        col(params["dilated"][2]["bn_gamma"]), col(params["dilated"][2]["bn_beta"]),
        params["end_conv_1_w"][:, :, 0, 0].astype(jnp.bfloat16),       # (Cout, Cin)
        col(params["end_bn_gamma"]), col(params["end_bn_beta"]),
        params["end_conv_2_w"][:, :, 0, 0].astype(jnp.float32),        # (Dp, C)
        params["end_conv_2_b"].reshape(Dp, 1).astype(jnp.float32),     # (Dp, 1)
    ]

    kernel = _make_kernel(N=N, V=V, T=T, C=C, dils=dils, LPAD=LPAD)

    out_cm = pl.pallas_call(
        kernel,
        out_shape=jax.ShapeDtypeStruct((Dp, rows), jnp.float32),
        grid_spec=pltpu.PrefetchScalarGridSpec(
            num_scalar_prefetch=0,
            grid=(1,),
            in_specs=[_full_spec(a.shape) for a in inputs],
            out_specs=_full_spec((Dp, rows)),
            # ONE shared padded scratch reused by all three conv layers (halos stay zero).
            scratch_shapes=[pltpu.VMEM((Cmax, WIDTH), jnp.float32)]),
        compiler_params=pltpu.CompilerParams(dimension_semantics=("arbitrary",)),
    )(*inputs)

    # (Dp, N*V*T) -> (N, T, V, Dp) -> (N, 12*V, Dp): layout plumbing only.
    return out_cm.reshape(Dp, N, V, T).transpose(1, 3, 2, 0).reshape(N, T * V, Dp)


# ------------------------------- params / reference --------------------------

def init_params(key, *, D, V, T, end_channel, num_heads, pred_node_dim):
    ks = jax.random.split(key, 12)
    p = {}
    # Graph-token / attention-bias parameters exist in the module but only feed the (identity)
    # transformer blocks; kept for interface parity.
    p["graph_token_embed"] = 0.02 * jax.random.normal(ks[0], (1, 1, 1, D), jnp.float32)
    p["graph_token_virtual_distance"] = 0.02 * jax.random.normal(ks[1], (1, num_heads), jnp.float32)
    p["pos_embed_time"] = 0.02 * jax.random.normal(ks[2], (1, T, D), jnp.float32)
    p["pos_embed_space"] = 0.02 * jax.random.normal(ks[3], (1, V, D), jnp.float32)
    p["pos_embed_cls"] = 0.02 * jax.random.normal(ks[4], (1, 1, D), jnp.float32)
    p["norm_gamma"] = jnp.ones((D,), jnp.float32)
    p["norm_beta"] = jnp.zeros((D,), jnp.float32)
    p["dilated"] = []
    for i in range(3):
        cin = D if i == 0 else end_channel
        std = (2.0 / (9 * (cin + end_channel))) ** 0.5        # xavier-scale gaussian
        p["dilated"].append({
            "w": std * jax.random.normal(ks[5 + i], (end_channel, cin, 3, 3), jnp.float32),
            "bn_gamma": jnp.ones((end_channel,), jnp.float32),
            "bn_beta": jnp.zeros((end_channel,), jnp.float32),
        })
    std1 = (2.0 / (2 * end_channel)) ** 0.5
    p["end_conv_1_w"] = std1 * jax.random.normal(ks[8], (end_channel, end_channel, 1, 1), jnp.float32)
    p["end_bn_gamma"] = jnp.ones((end_channel,), jnp.float32)
    p["end_bn_beta"] = jnp.zeros((end_channel,), jnp.float32)
    std2 = (2.0 / (end_channel + pred_node_dim)) ** 0.5
    p["end_conv_2_w"] = std2 * jax.random.normal(ks[9], (pred_node_dim, end_channel, 1, 1), jnp.float32)
    p["end_conv_2_b"] = jnp.zeros((pred_node_dim,), jnp.float32)
    return p


def reference_forward(params, x):
    """Pure-JAX (XLA) reference mirroring the PyTorch forward (identity transformer blocks)."""
    N, T, V, D = x.shape
    hi = jax.lax.Precision.HIGHEST
    lat = (x
           + params["pos_embed_space"][0][None, None, :, :]
           + params["pos_embed_time"][0][None, :, None, :])
    mu = jnp.mean(lat, axis=-1, keepdims=True)
    var = jnp.mean((lat - mu) ** 2, axis=-1, keepdims=True)
    lat = (lat - mu) * jax.lax.rsqrt(var + _LN_EPS) * params["norm_gamma"] + params["norm_beta"]
    h = jnp.transpose(lat, (0, 3, 2, 1))                     # NCHW: (N, D, V, T)

    def bn(y, g, b):
        m = jnp.mean(y, axis=(0, 2, 3), keepdims=True)
        s2 = jnp.mean((y - m) ** 2, axis=(0, 2, 3), keepdims=True)
        return ((y - m) * jax.lax.rsqrt(s2 + _BN_EPS) * g[None, :, None, None]
                + b[None, :, None, None])

    for i, layer in enumerate(params["dilated"]):
        d = 2 ** (i + 1)
        y = jax.lax.conv_general_dilated(
            h, layer["w"], window_strides=(1, 1),
            padding=((d, d), (2 * d, 2 * d)), rhs_dilation=(d, d),
            dimension_numbers=("NCHW", "OIHW", "NCHW"), precision=hi)[:, :, :, :T]
        h = jax.nn.gelu(bn(y, layer["bn_gamma"], layer["bn_beta"]), approximate=False)

    y = jnp.einsum("nchw,oc->nohw", h, params["end_conv_1_w"][:, :, 0, 0], precision=hi)
    h = jax.nn.gelu(bn(y, params["end_bn_gamma"], params["end_bn_beta"]), approximate=False)
    y = (jnp.einsum("nchw,oc->nohw", h, params["end_conv_2_w"][:, :, 0, 0], precision=hi)
         + params["end_conv_2_b"][None, :, None, None])
    y = jnp.transpose(y, (0, 3, 2, 1))                       # (N, T, V, Dp)
    return y.reshape(N, 12 * V, -1)


# ------------------------------------- main -----------------------------------

if __name__ == "__main__":
    # Small shapes consistent with the module: T=n_hist=12 (required by the hardcoded final
    # view), V nodes, D encoder_embed_dim, end_channel, heads, pred_node_dim.
    N, T, V, D = 2, 12, 8, 32
    end_channel, num_heads, pred_node_dim = 16, 4, 1

    key = jax.random.PRNGKey(0)
    kx, kb, kp = jax.random.split(key, 3)
    params = init_params(kp, D=D, V=V, T=T, end_channel=end_channel,
                         num_heads=num_heads, pred_node_dim=pred_node_dim)

    # TODO(synk): blocks.compute_mods (graph/degree/spatial feature embedding) is unavailable;
    # x and attn_bias are taken as direct inputs.
    x = jax.random.normal(kx, (N, T, V, D), jnp.float32)
    attn_bias = jax.random.normal(kb, (N, num_heads, V + 1, V + 1), jnp.float32)

    pred = jax.jit(graph_encoder_causal_pred_forward)(params, x, attn_bias)
    pred = jax.block_until_ready(pred)
    assert pred.shape == (N, 12 * V, pred_node_dim) and pred.dtype == jnp.float32

    # Tolerance-asserted reference check (bf16 MXU matmuls in the kernel vs f32 XLA reference).
    ref = reference_forward(params, x)
    err = float(jnp.max(jnp.abs(pred - ref)))
    assert err < 0.1, f"kernel/reference mismatch: max abs err {err}"

    print("KERNEL_OK")
</pallas_src>

<mosaic_0001>
module attributes {stable_mosaic.version = 11 : i64} {
  func.func @kernel(%arg0: i32, %arg1: memref<32x192xf32, #tpu.memory_space<vmem>>, %arg2: memref<32x192xf32, #tpu.memory_space<vmem>>, %arg3: memref<1x192xi32, #tpu.memory_space<vmem>>, %arg4: memref<1x192xi32, #tpu.memory_space<vmem>>, %arg5: memref<32x1xf32, #tpu.memory_space<vmem>>, %arg6: memref<32x1xf32, #tpu.memory_space<vmem>>, %arg7: memref<9x16x32xbf16, #tpu.memory_space<vmem>>, %arg8: memref<16x1xf32, #tpu.memory_space<vmem>>, %arg9: memref<16x1xf32, #tpu.memory_space<vmem>>, %arg10: memref<9x16x16xbf16, #tpu.memory_space<vmem>>, %arg11: memref<16x1xf32, #tpu.memory_space<vmem>>, %arg12: memref<16x1xf32, #tpu.memory_space<vmem>>, %arg13: memref<9x16x16xbf16, #tpu.memory_space<vmem>>, %arg14: memref<16x1xf32, #tpu.memory_space<vmem>>, %arg15: memref<16x1xf32, #tpu.memory_space<vmem>>, %arg16: memref<16x16xbf16, #tpu.memory_space<vmem>>, %arg17: memref<16x1xf32, #tpu.memory_space<vmem>>, %arg18: memref<16x1xf32, #tpu.memory_space<vmem>>, %arg19: memref<1x16xf32, #tpu.memory_space<vmem>>, %arg20: memref<1x1xf32, #tpu.memory_space<vmem>>, %arg21: memref<1x192xf32, #tpu.memory_space<vmem>>, %arg22: memref<32x416xf32, #tpu.memory_space<vmem>>) attributes {dimension_semantics = [#tpu.dimension_semantics<arbitrary>], iteration_bounds = array<i64: 1>, scalar_prefetch = 0 : i64, scratch_operands = 1 : i64, tpu.core_type = #tpu.core_type<tc>, window_params = [{pipeline_mode = #tpu.pipeline_mode<synchronous>, transform_indices = @transform_0, window_bounds = array<i64: 32, 192>}, {pipeline_mode = #tpu.pipeline_mode<synchronous>, transform_indices = @transform_1, window_bounds = array<i64: 32, 192>}, {pipeline_mode = #tpu.pipeline_mode<synchronous>, transform_indices = @transform_2, window_bounds = array<i64: 1, 192>}, {pipeline_mode = #tpu.pipeline_mode<synchronous>, transform_indices = @transform_3, window_bounds = array<i64: 1, 192>}, {pipeline_mode = #tpu.pipeline_mode<synchronous>, transform_indices = @transform_4, window_bounds = array<i64: 32, 1>}, {pipeline_mode = #tpu.pipeline_mode<synchronous>, transform_indices = @transform_5, window_bounds = array<i64: 32, 1>}, {pipeline_mode = #tpu.pipeline_mode<synchronous>, transform_indices = @transform_6, window_bounds = array<i64: 9, 16, 32>}, {pipeline_mode = #tpu.pipeline_mode<synchronous>, transform_indices = @transform_7, window_bounds = array<i64: 16, 1>}, {pipeline_mode = #tpu.pipeline_mode<synchronous>, transform_indices = @transform_8, window_bounds = array<i64: 16, 1>}, {pipeline_mode = #tpu.pipeline_mode<synchronous>, transform_indices = @transform_9, window_bounds = array<i64: 9, 16, 16>}, {pipeline_mode = #tpu.pipeline_mode<synchronous>, transform_indices = @transform_10, window_bounds = array<i64: 16, 1>}, {pipeline_mode = #tpu.pipeline_mode<synchronous>, transform_indices = @transform_11, window_bounds = array<i64: 16, 1>}, {pipeline_mode = #tpu.pipeline_mode<synchronous>, transform_indices = @transform_12, window_bounds = array<i64: 9, 16, 16>}, {pipeline_mode = #tpu.pipeline_mode<synchronous>, transform_indices = @transform_13, window_bounds = array<i64: 16, 1>}, {pipeline_mode = #tpu.pipeline_mode<synchronous>, transform_indices = @transform_14, window_bounds = array<i64: 16, 1>}, {pipeline_mode = #tpu.pipeline_mode<synchronous>, transform_indices = @transform_15, window_bounds = array<i64: 16, 16>}, {pipeline_mode = #tpu.pipeline_mode<synchronous>, transform_indices = @transform_16, window_bounds = array<i64: 16, 1>}, {pipeline_mode = #tpu.pipeline_mode<synchronous>, transform_indices = @transform_17, window_bounds = array<i64: 16, 1>}, {pipeline_mode = #tpu.pipeline_mode<synchronous>, transform_indices = @transform_18, window_bounds = array<i64: 1, 16>}, {pipeline_mode = #tpu.pipeline_mode<synchronous>, transform_indices = @transform_19, window_bounds = array<i64: 1, 1>}, {pipeline_mode = #tpu.pipeline_mode<synchronous>, transform_indices = @transform_20, window_bounds = array<i64: 1, 192>}]} {
    %c0 = arith.constant 0 : index
    %c0_0 = arith.constant 0 : index
    %0 = vector.load %arg3[%c0, %c0_0] : memref<1x192xi32, #tpu.memory_space<vmem>>, vector<1x192xi32>
    %c0_1 = arith.constant 0 : index
    %c0_2 = arith.constant 0 : index
    %1 = vector.load %arg4[%c0_1, %c0_2] : memref<1x192xi32, #tpu.memory_space<vmem>>, vector<1x192xi32>
    %cst = arith.constant 0.000000e+00 : f32
    %2 = vector.broadcast %cst : f32 to vector<32x416xf32>
    %c0_3 = arith.constant 0 : index
    %c0_4 = arith.constant 0 : index
    %3 = vector.load %arg22[%c0_3, %c0_4] : memref<32x416xf32, #tpu.memory_space<vmem>>, vector<32x416xf32>
    tpu.vector_store %arg22[%c0_3, %c0_4], %2 {strides = array<i32>} : memref<32x416xf32, #tpu.memory_space<vmem>>, vector<32x416xf32>,
    %c0_5 = arith.constant 0 : index
    %c0_6 = arith.constant 0 : index
    %4 = vector.load %arg1[%c0_5, %c0_6] : memref<32x192xf32, #tpu.memory_space<vmem>>, vector<32x192xf32>
    %c0_7 = arith.constant 0 : index
    %c0_8 = arith.constant 0 : index
    %5 = vector.load %arg2[%c0_7, %c0_8] : memref<32x192xf32, #tpu.memory_space<vmem>>, vector<32x192xf32>
    %6 = arith.addf %4, %5 : vector<32x192xf32>
    %cst_9 = arith.constant dense<0.000000e+00> : vector<192xf32>
    %7 = vector.multi_reduction <add>, %6, %cst_9 [0] : vector<32x192xf32> to vector<192xf32>
    %8 = vector.shape_cast %7 : vector<192xf32> to vector<1x192xf32>
    %cst_10 = arith.constant 3.200000e+01 : f32
    %9 = vector.broadcast %cst_10 : f32 to vector<1x192xf32>
    %10 = arith.divf %8, %9 : vector<1x192xf32>
    %11 = vector.broadcast %10 : vector<1x192xf32> to vector<32x192xf32>
    %12 = arith.subf %6, %11 : vector<32x192xf32>
    %13 = arith.mulf %12, %12 : vector<32x192xf32>
    %cst_11 = arith.constant dense<0.000000e+00> : vector<192xf32>
    %14 = vector.multi_reduction <add>, %13, %cst_11 [0] : vector<32x192xf32> to vector<192xf32>
    %15 = vector.shape_cast %14 : vector<192xf32> to vector<1x192xf32>
    %cst_12 = arith.constant 3.200000e+01 : f32
    %16 = vector.broadcast %cst_12 : f32 to vector<1x192xf32>
    %17 = arith.divf %15, %16 : vector<1x192xf32>
    %cst_13 = arith.constant 9.99999974E-6 : f32
    %18 = vector.broadcast %cst_13 : f32 to vector<1x192xf32>
    %19 = arith.addf %17, %18 : vector<1x192xf32>
    %20 = math.rsqrt %19 : vector<1x192xf32>
    %21 = vector.broadcast %20 : vector<1x192xf32> to vector<32x192xf32>
    %22 = arith.mulf %12, %21 : vector<32x192xf32>
    %c0_14 = arith.constant 0 : index
    %c0_15 = arith.constant 0 : index
    %23 = vector.load %arg5[%c0_14, %c0_15] : memref<32x1xf32, #tpu.memory_space<vmem>>, vector<32x1xf32>
    %24 = vector.broadcast %23 : vector<32x1xf32> to vector<32x192xf32>
    %25 = arith.mulf %22, %24 : vector<32x192xf32>
    %c0_16 = arith.constant 0 : index
    %c0_17 = arith.constant 0 : index
    %26 = vector.load %arg6[%c0_16, %c0_17] : memref<32x1xf32, #tpu.memory_space<vmem>>, vector<32x1xf32>
    %27 = vector.broadcast %26 : vector<32x1xf32> to vector<32x192xf32>
    %28 = arith.addf %25, %27 : vector<32x192xf32>
    %c0_18 = arith.constant 0 : index
    %c128 = arith.constant 128 : index
    %29 = vector.load %arg22[%c0_18, %c128] : memref<32x416xf32, #tpu.memory_space<vmem>>, vector<32x192xf32>
    tpu.vector_store %arg22[%c0_18, %c128], %28 {strides = array<i32>} : memref<32x416xf32, #tpu.memory_space<vmem>>, vector<32x192xf32>,
    %cst_19 = arith.constant 0.000000e+00 : f32
    %30 = vector.broadcast %cst_19 : f32 to vector<16x192xf32>
    %c0_20 = arith.constant 0 : index
    %c100 = arith.constant 100 : index
    %31 = vector.load %arg22[%c0_20, %c100] : memref<32x416xf32, #tpu.memory_space<vmem>>, vector<32x192xf32>
    %c2_i32 = arith.constant 2 : i32
    %32 = vector.broadcast %c2_i32 : i32 to vector<1x192xi32>
    %33 = arith.cmpi sge, %0, %32 : vector<1x192xi32>
    %c4_i32 = arith.constant 4 : i32
    %34 = vector.broadcast %c4_i32 : i32 to vector<1x192xi32>
    %35 = arith.cmpi sge, %1, %34 : vector<1x192xi32>
    %36 = arith.andi %33, %35 : vector<1x192xi1>
    %cst_21 = arith.constant 0.000000e+00 : f32
    %37 = vector.shape_cast %36 : vector<1x192xi1> to vector<1x192xi1>
    %38 = vector.broadcast %37 : vector<1x192xi1> to vector<32x192xi1>
    %39 = vector.broadcast %cst_21 : f32 to vector<32x192xf32>
    %40 = arith.select %38, %31, %39 : vector<32x192xi1>, vector<32x192xf32>
    %c0_22 = arith.constant 0 : index
    %c0_23 = arith.constant 0 : index
    %c0_24 = arith.constant 0 : index
    %41 = vector.load %arg7[%c0_22, %c0_23, %c0_24] : memref<9x16x32xbf16, #tpu.memory_space<vmem>>, vector<1x16x32xbf16>
    %42 = vector.shape_cast %41 : vector<1x16x32xbf16> to vector<16x32xbf16>
    %43 = arith.truncf %40 : vector<32x192xf32> to vector<32x192xbf16>
    %cst_25 = arith.constant dense<0.000000e+00> : vector<16x192xf32>
    %44 = tpu.matmul %42, %43, %cst_25 {dimension_numbers = #tpu.dot_dimension_numbers<[1], [0], [0], [1], [0, 0, 1, 1], [], []>} : vector<16x32xbf16>, vector<32x192xbf16>, vector<16x192xf32> -> vector<16x192xf32>
    %45 = arith.addf %30, %44 : vector<16x192xf32>
    %c0_26 = arith.constant 0 : index
    %c102 = arith.constant 102 : index
    %46 = vector.load %arg22[%c0_26, %c102] : memref<32x416xf32, #tpu.memory_space<vmem>>, vector<32x192xf32>
    %c2_i32_27 = arith.constant 2 : i32
    %47 = vector.broadcast %c2_i32_27 : i32 to vector<1x192xi32>
    %48 = arith.cmpi sge, %0, %47 : vector<1x192xi32>
    %c2_i32_28 = arith.constant 2 : i32
    %49 = vector.broadcast %c2_i32_28 : i32 to vector<1x192xi32>
    %50 = arith.cmpi sge, %1, %49 : vector<1x192xi32>
    %51 = arith.andi %48, %50 : vector<1x192xi1>
    %cst_29 = arith.constant 0.000000e+00 : f32
    %52 = vector.shape_cast %51 : vector<1x192xi1> to vector<1x192xi1>
    %53 = vector.broadcast %52 : vector<1x192xi1> to vector<32x192xi1>
    %54 = vector.broadcast %cst_29 : f32 to vector<32x192xf32>
    %55 = arith.select %53, %46, %54 : vector<32x192xi1>, vector<32x192xf32>
    %c1 = arith.constant 1 : index
    %c0_30 = arith.constant 0 : index
    %c0_31 = arith.constant 0 : index
    %56 = vector.load %arg7[%c1, %c0_30, %c0_31] : memref<9x16x32xbf16, #tpu.memory_space<vmem>>, vector<1x16x32xbf16>
    %57 = vector.shape_cast %56 : vector<1x16x32xbf16> to vector<16x32xbf16>
    %58 = arith.truncf %55 : vector<32x192xf32> to vector<32x192xbf16>
    %cst_32 = arith.constant dense<0.000000e+00> : vector<16x192xf32>
    %59 = tpu.matmul %57, %58, %cst_32 {dimension_numbers = #tpu.dot_dimension_numbers<[1], [0], [0], [1], [0, 0, 1, 1], [], []>} : vector<16x32xbf16>, vector<32x192xbf16>, vector<16x192xf32> -> vector<16x192xf32>
    %60 = arith.addf %45, %59 : vector<16x192xf32>
    %c0_33 = arith.constant 0 : index
    %c104 = arith.constant 104 : index
    %61 = vector.load %arg22[%c0_33, %c104] : memref<32x416xf32, #tpu.memory_space<vmem>>, vector<32x192xf32>
    %c2_i32_34 = arith.constant 2 : i32
    %62 = vector.broadcast %c2_i32_34 : i32 to vector<1x192xi32>
    %63 = arith.cmpi sge, %0, %62 : vector<1x192xi32>
    %cst_35 = arith.constant 0.000000e+00 : f32
    %64 = vector.shape_cast %63 : vector<1x192xi1> to vector<1x192xi1>
    %65 = vector.broadcast %64 : vector<1x192xi1> to vector<32x192xi1>
    %66 = vector.broadcast %cst_35 : f32 to vector<32x192xf32>
    %67 = arith.select %65, %61, %66 : vector<32x192xi1>, vector<32x192xf32>
    %c2 = arith.constant 2 : index
    %c0_36 = arith.constant 0 : index
    %c0_37 = arith.constant 0 : index
    %68 = vector.load %arg7[%c2, %c0_36, %c0_37] : memref<9x16x32xbf16, #tpu.memory_space<vmem>>, vector<1x16x32xbf16>
    %69 = vector.shape_cast %68 : vector<1x16x32xbf16> to vector<16x32xbf16>
    %70 = arith.truncf %67 : vector<32x192xf32> to vector<32x192xbf16>
    %cst_38 = arith.constant dense<0.000000e+00> : vector<16x192xf32>
    %71 = tpu.matmul %69, %70, %cst_38 {dimension_numbers = #tpu.dot_dimension_numbers<[1], [0], [0], [1], [0, 0, 1, 1], [], []>} : vector<16x32xbf16>, vector<32x192xbf16>, vector<16x192xf32> -> vector<16x192xf32>
    %72 = arith.addf %60, %71 : vector<16x192xf32>
    %c0_39 = arith.constant 0 : index
    %c124 = arith.constant 124 : index
    %73 = vector.load %arg22[%c0_39, %c124] : memref<32x416xf32, #tpu.memory_space<vmem>>, vector<32x192xf32>
    %c4_i32_40 = arith.constant 4 : i32
    %74 = vector.broadcast %c4_i32_40 : i32 to vector<1x192xi32>
    %75 = arith.cmpi sge, %1, %74 : vector<1x192xi32>
    %cst_41 = arith.constant 0.000000e+00 : f32
    %76 = vector.shape_cast %75 : vector<1x192xi1> to vector<1x192xi1>
    %77 = vector.broadcast %76 : vector<1x192xi1> to vector<32x192xi1>
    %78 = vector.broadcast %cst_41 : f32 to vector<32x192xf32>
    %79 = arith.select %77, %73, %78 : vector<32x192xi1>, vector<32x192xf32>
    %c3 = arith.constant 3 : index
    %c0_42 = arith.constant 0 : index
    %c0_43 = arith.constant 0 : index
    %80 = vector.load %arg7[%c3, %c0_42, %c0_43] : memref<9x16x32xbf16, #tpu.memory_space<vmem>>, vector<1x16x32xbf16>
    %81 = vector.shape_cast %80 : vector<1x16x32xbf16> to vector<16x32xbf16>
    %82 = arith.truncf %79 : vector<32x192xf32> to vector<32x192xbf16>
    %cst_44 = arith.constant dense<0.000000e+00> : vector<16x192xf32>
    %83 = tpu.matmul %81, %82, %cst_44 {dimension_numbers = #tpu.dot_dimension_numbers<[1], [0], [0], [1], [0, 0, 1, 1], [], []>} : vector<16x32xbf16>, vector<32x192xbf16>, vector<16x192xf32> -> vector<16x192xf32>
    %84 = arith.addf %72, %83 : vector<16x192xf32>
    %c0_45 = arith.constant 0 : index
    %c126 = arith.constant 126 : index
    %85 = vector.load %arg22[%c0_45, %c126] : memref<32x416xf32, #tpu.memory_space<vmem>>, vector<32x192xf32>
    %c2_i32_46 = arith.constant 2 : i32
    %86 = vector.broadcast %c2_i32_46 : i32 to vector<1x192xi32>
    %87 = arith.cmpi sge, %1, %86 : vector<1x192xi32>
    %cst_47 = arith.constant 0.000000e+00 : f32
    %88 = vector.shape_cast %87 : vector<1x192xi1> to vector<1x192xi1>
    %89 = vector.broadcast %88 : vector<1x192xi1> to vector<32x192xi1>
    %90 = vector.broadcast %cst_47 : f32 to vector<32x192xf32>
    %91 = arith.select %89, %85, %90 : vector<32x192xi1>, vector<32x192xf32>
    %c4 = arith.constant 4 : index
    %c0_48 = arith.constant 0 : index
    %c0_49 = arith.constant 0 : index
    %92 = vector.load %arg7[%c4, %c0_48, %c0_49] : memref<9x16x32xbf16, #tpu.memory_space<vmem>>, vector<1x16x32xbf16>
    %93 = vector.shape_cast %92 : vector<1x16x32xbf16> to vector<16x32xbf16>
    %94 = arith.truncf %91 : vector<32x192xf32> to vector<32x192xbf16>
    %cst_50 = arith.constant dense<0.000000e+00> : vector<16x192xf32>
    %95 = tpu.matmul %93, %94, %cst_50 {dimension_numbers = #tpu.dot_dimension_numbers<[1], [0], [0], [1], [0, 0, 1, 1], [], []>} : vector<16x32xbf16>, vector<32x192xbf16>, vector<16x192xf32> -> vector<16x192xf32>
    %96 = arith.addf %84, %95 : vector<16x192xf32>
    %c0_51 = arith.constant 0 : index
    %c128_52 = arith.constant 128 : index
    %97 = vector.load %arg22[%c0_51, %c128_52] : memref<32x416xf32, #tpu.memory_space<vmem>>, vector<32x192xf32>
    %c5 = arith.constant 5 : index
    %c0_53 = arith.constant 0 : index
    %c0_54 = arith.constant 0 : index
    %98 = vector.load %arg7[%c5, %c0_53, %c0_54] : memref<9x16x32xbf16, #tpu.memory_space<vmem>>, vector<1x16x32xbf16>
    %99 = vector.shape_cast %98 : vector<1x16x32xbf16> to vector<16x32xbf16>
    %100 = arith.truncf %97 : vector<32x192xf32> to vector<32x192xbf16>
    %cst_55 = arith.constant dense<0.000000e+00> : vector<16x192xf32>
    %101 = tpu.matmul %99, %100, %cst_55 {dimension_numbers = #tpu.dot_dimension_numbers<[1], [0], [0], [1], [0, 0, 1, 1], [], []>} : vector<16x32xbf16>, vector<32x192xbf16>, vector<16x192xf32> -> vector<16x192xf32>
    %102 = arith.addf %96, %101 : vector<16x192xf32>
    %c0_56 = arith.constant 0 : index
    %c148 = arith.constant 148 : index
    %103 = vector.load %arg22[%c0_56, %c148] : memref<32x416xf32, #tpu.memory_space<vmem>>, vector<32x192xf32>
    %c6_i32 = arith.constant 6 : i32
    %104 = vector.broadcast %c6_i32 : i32 to vector<1x192xi32>
    %105 = arith.cmpi slt, %0, %104 : vector<1x192xi32>
    %c4_i32_57 = arith.constant 4 : i32
    %106 = vector.broadcast %c4_i32_57 : i32 to vector<1x192xi32>
    %107 = arith.cmpi sge, %1, %106 : vector<1x192xi32>
    %108 = arith.andi %105, %107 : vector<1x192xi1>
    %cst_58 = arith.constant 0.000000e+00 : f32
    %109 = vector.shape_cast %108 : vector<1x192xi1> to vector<1x192xi1>
    %110 = vector.broadcast %109 : vector<1x192xi1> to vector<32x192xi1>
    %111 = vector.broadcast %cst_58 : f32 to vector<32x192xf32>
    %112 = arith.select %110, %103, %111 : vector<32x192xi1>, vector<32x192xf32>
    %c6 = arith.constant 6 : index
    %c0_59 = arith.constant 0 : index
    %c0_60 = arith.constant 0 : index
    %113 = vector.load %arg7[%c6, %c0_59, %c0_60] : memref<9x16x32xbf16, #tpu.memory_space<vmem>>, vector<1x16x32xbf16>
    %114 = vector.shape_cast %113 : vector<1x16x32xbf16> to vector<16x32xbf16>
    %115 = arith.truncf %112 : vector<32x192xf32> to vector<32x192xbf16>
    %cst_61 = arith.constant dense<0.000000e+00> : vector<16x192xf32>
    %116 = tpu.matmul %114, %115, %cst_61 {dimension_numbers = #tpu.dot_dimension_numbers<[1], [0], [0], [1], [0, 0, 1, 1], [], []>} : vector<16x32xbf16>, vector<32x192xbf16>, vector<16x192xf32> -> vector<16x192xf32>
    %117 = arith.addf %102, %116 : vector<16x192xf32>
    %c0_62 = arith.constant 0 : index
    %c150 = arith.constant 150 : index
    %118 = vector.load %arg22[%c0_62, %c150] : memref<32x416xf32, #tpu.memory_space<vmem>>, vector<32x192xf32>
    %c6_i32_63 = arith.constant 6 : i32
    %119 = vector.broadcast %c6_i32_63 : i32 to vector<1x192xi32>
    %120 = arith.cmpi slt, %0, %119 : vector<1x192xi32>
    %c2_i32_64 = arith.constant 2 : i32
    %121 = vector.broadcast %c2_i32_64 : i32 to vector<1x192xi32>
    %122 = arith.cmpi sge, %1, %121 : vector<1x192xi32>
    %123 = arith.andi %120, %122 : vector<1x192xi1>
    %cst_65 = arith.constant 0.000000e+00 : f32
    %124 = vector.shape_cast %123 : vector<1x192xi1> to vector<1x192xi1>
    %125 = vector.broadcast %124 : vector<1x192xi1> to vector<32x192xi1>
    %126 = vector.broadcast %cst_65 : f32 to vector<32x192xf32>
    %127 = arith.select %125, %118, %126 : vector<32x192xi1>, vector<32x192xf32>
    %c7 = arith.constant 7 : index
    %c0_66 = arith.constant 0 : index
    %c0_67 = arith.constant 0 : index
    %128 = vector.load %arg7[%c7, %c0_66, %c0_67] : memref<9x16x32xbf16, #tpu.memory_space<vmem>>, vector<1x16x32xbf16>
    %129 = vector.shape_cast %128 : vector<1x16x32xbf16> to vector<16x32xbf16>
    %130 = arith.truncf %127 : vector<32x192xf32> to vector<32x192xbf16>
    %cst_68 = arith.constant dense<0.000000e+00> : vector<16x192xf32>
    %131 = tpu.matmul %129, %130, %cst_68 {dimension_numbers = #tpu.dot_dimension_numbers<[1], [0], [0], [1], [0, 0, 1, 1], [], []>} : vector<16x32xbf16>, vector<32x192xbf16>, vector<16x192xf32> -> vector<16x192xf32>
    %132 = arith.addf %117, %131 : vector<16x192xf32>
    %c0_69 = arith.constant 0 : index
    %c152 = arith.constant 152 : index
    %133 = vector.load %arg22[%c0_69, %c152] : memref<32x416xf32, #tpu.memory_space<vmem>>, vector<32x192xf32>
    %c6_i32_70 = arith.constant 6 : i32
    %134 = vector.broadcast %c6_i32_70 : i32 to vector<1x192xi32>
    %135 = arith.cmpi slt, %0, %134 : vector<1x192xi32>
    %cst_71 = arith.constant 0.000000e+00 : f32
    %136 = vector.shape_cast %135 : vector<1x192xi1> to vector<1x192xi1>
    %137 = vector.broadcast %136 : vector<1x192xi1> to vector<32x192xi1>
    %138 = vector.broadcast %cst_71 : f32 to vector<32x192xf32>
    %139 = arith.select %137, %133, %138 : vector<32x192xi1>, vector<32x192xf32>
    %c8 = arith.constant 8 : index
    %c0_72 = arith.constant 0 : index
    %c0_73 = arith.constant 0 : index
    %140 = vector.load %arg7[%c8, %c0_72, %c0_73] : memref<9x16x32xbf16, #tpu.memory_space<vmem>>, vector<1x16x32xbf16>
    %141 = vector.shape_cast %140 : vector<1x16x32xbf16> to vector<16x32xbf16>
    %142 = arith.truncf %139 : vector<32x192xf32> to vector<32x192xbf16>
    %cst_74 = arith.constant dense<0.000000e+00> : vector<16x192xf32>
    %143 = tpu.matmul %141, %142, %cst_74 {dimension_numbers = #tpu.dot_dimension_numbers<[1], [0], [0], [1], [0, 0, 1, 1], [], []>} : vector<16x32xbf16>, vector<32x192xbf16>, vector<16x192xf32> -> vector<16x192xf32>
    %144 = arith.addf %132, %143 : vector<16x192xf32>
    %cst_75 = arith.constant dense<0.000000e+00> : vector<16xf32>
    %145 = vector.multi_reduction <add>, %144, %cst_75 [1] : vector<16x192xf32> to vector<16xf32>
    %146 = vector.shape_cast %145 : vector<16xf32> to vector<16x1xf32>
    %cst_76 = arith.constant 1.920000e+02 : f32
    %147 = vector.broadcast %cst_76 : f32 to vector<16x1xf32>
    %148 = arith.divf %146, %147 : vector<16x1xf32>
    %149 = vector.broadcast %148 : vector<16x1xf32> to vector<16x192xf32>
    %150 = arith.subf %144, %149 : vector<16x192xf32>
    %151 = arith.mulf %150, %150 : vector<16x192xf32>
    %cst_77 = arith.constant dense<0.000000e+00> : vector<16xf32>
    %152 = vector.multi_reduction <add>, %151, %cst_77 [1] : vector<16x192xf32> to vector<16xf32>
    %153 = vector.shape_cast %152 : vector<16xf32> to vector<16x1xf32>
    %cst_78 = arith.constant 1.920000e+02 : f32
    %154 = vector.broadcast %cst_78 : f32 to vector<16x1xf32>
    %155 = arith.divf %153, %154 : vector<16x1xf32>
    %cst_79 = arith.constant 9.99999974E-6 : f32
    %156 = vector.broadcast %cst_79 : f32 to vector<16x1xf32>
    %157 = arith.addf %155, %156 : vector<16x1xf32>
    %158 = math.rsqrt %157 : vector<16x1xf32>
    %159 = vector.broadcast %158 : vector<16x1xf32> to vector<16x192xf32>
    %160 = arith.mulf %150, %159 : vector<16x192xf32>
    %c0_80 = arith.constant 0 : index
    %c0_81 = arith.constant 0 : index
    %161 = vector.load %arg8[%c0_80, %c0_81] : memref<16x1xf32, #tpu.memory_space<vmem>>, vector<16x1xf32>
    %162 = vector.broadcast %161 : vector<16x1xf32> to vector<16x192xf32>
    %163 = arith.mulf %160, %162 : vector<16x192xf32>
    %c0_82 = arith.constant 0 : index
    %c0_83 = arith.constant 0 : index
    %164 = vector.load %arg9[%c0_82, %c0_83] : memref<16x1xf32, #tpu.memory_space<vmem>>, vector<16x1xf32>
    %165 = vector.broadcast %164 : vector<16x1xf32> to vector<16x192xf32>
    %166 = arith.addf %163, %165 : vector<16x192xf32>
    %cst_84 = arith.constant 0.707106769 : f32
    %167 = vector.broadcast %cst_84 : f32 to vector<16x192xf32>
    %168 = arith.mulf %166, %167 : vector<16x192xf32>
    %cst_85 = arith.constant 0.000000e+00 : f32
    %169 = vector.broadcast %cst_85 : f32 to vector<16x192xf32>
    %170 = arith.cmpf oge, %168, %169 : vector<16x192xf32>
    %cst_86 = arith.constant 1.000000e+00 : f32
    %cst_87 = arith.constant -1.000000e+00 : f32
    %171 = vector.broadcast %cst_86 : f32 to vector<16x192xf32>
    %172 = vector.broadcast %cst_87 : f32 to vector<16x192xf32>
    %173 = arith.select %170, %171, %172 : vector<16x192xi1>, vector<16x192xf32>
    %174 = math.absf %168 : vector<16x192xf32>
    %cst_88 = arith.constant 0.327591091 : f32
    %175 = vector.broadcast %cst_88 : f32 to vector<16x192xf32>
    %176 = arith.mulf %175, %174 : vector<16x192xf32>
    %cst_89 = arith.constant 1.000000e+00 : f32
    %177 = vector.broadcast %cst_89 : f32 to vector<16x192xf32>
    %178 = arith.addf %177, %176 : vector<16x192xf32>
    %179 = tpu.reciprocal %178 {approx = true} : vector<16x192xf32> -> vector<16x192xf32>
    %cst_90 = arith.constant 1.06140542 : f32
    %180 = vector.broadcast %cst_90 : f32 to vector<16x192xf32>
    %181 = arith.mulf %180, %179 : vector<16x192xf32>
    %cst_91 = arith.constant 1.45315206 : f32
    %182 = vector.broadcast %cst_91 : f32 to vector<16x192xf32>
    %183 = arith.subf %181, %182 : vector<16x192xf32>
    %184 = arith.mulf %183, %179 : vector<16x192xf32>
    %cst_92 = arith.constant 1.42141378 : f32
    %185 = vector.broadcast %cst_92 : f32 to vector<16x192xf32>
    %186 = arith.addf %184, %185 : vector<16x192xf32>
    %187 = arith.mulf %186, %179 : vector<16x192xf32>
    %cst_93 = arith.constant 0.284496725 : f32
    %188 = vector.broadcast %cst_93 : f32 to vector<16x192xf32>
    %189 = arith.subf %187, %188 : vector<16x192xf32>
    %190 = arith.mulf %189, %179 : vector<16x192xf32>
    %cst_94 = arith.constant 0.254829586 : f32
    %191 = vector.broadcast %cst_94 : f32 to vector<16x192xf32>
    %192 = arith.addf %190, %191 : vector<16x192xf32>
    %193 = arith.mulf %192, %179 : vector<16x192xf32>
    %cst_95 = arith.constant 0.000000e+00 : f32
    %194 = vector.broadcast %cst_95 : f32 to vector<16x192xf32>
    %195 = arith.subf %194, %174 : vector<16x192xf32>
    %196 = arith.mulf %195, %174 : vector<16x192xf32>
    %197 = math.exp %196 : vector<16x192xf32>
    %198 = arith.mulf %193, %197 : vector<16x192xf32>
    %cst_96 = arith.constant 1.000000e+00 : f32
    %199 = vector.broadcast %cst_96 : f32 to vector<16x192xf32>
    %200 = arith.subf %199, %198 : vector<16x192xf32>
    %201 = arith.mulf %173, %200 : vector<16x192xf32>
    %cst_97 = arith.constant 5.000000e-01 : f32
    %202 = vector.broadcast %cst_97 : f32 to vector<16x192xf32>
    %203 = arith.mulf %202, %166 : vector<16x192xf32>
    %cst_98 = arith.constant 1.000000e+00 : f32
    %204 = vector.broadcast %cst_98 : f32 to vector<16x192xf32>
    %205 = arith.addf %204, %201 : vector<16x192xf32>
    %206 = arith.mulf %203, %205 : vector<16x192xf32>
    %c0_99 = arith.constant 0 : index
    %c128_100 = arith.constant 128 : index
    %207 = vector.load %arg22[%c0_99, %c128_100] : memref<32x416xf32, #tpu.memory_space<vmem>>, vector<16x192xf32>
    tpu.vector_store %arg22[%c0_99, %c128_100], %206 {strides = array<i32>} : memref<32x416xf32, #tpu.memory_space<vmem>>, vector<16x192xf32>,
    %cst_101 = arith.constant 0.000000e+00 : f32
    %208 = vector.broadcast %cst_101 : f32 to vector<16x192xf32>
    %c0_102 = arith.constant 0 : index
    %c72 = arith.constant 72 : index
    %209 = vector.load %arg22[%c0_102, %c72] : memref<32x416xf32, #tpu.memory_space<vmem>>, vector<16x192xf32>
    %c4_i32_103 = arith.constant 4 : i32
    %210 = vector.broadcast %c4_i32_103 : i32 to vector<1x192xi32>
    %211 = arith.cmpi sge, %0, %210 : vector<1x192xi32>
    %c8_i32 = arith.constant 8 : i32
    %212 = vector.broadcast %c8_i32 : i32 to vector<1x192xi32>
    %213 = arith.cmpi sge, %1, %212 : vector<1x192xi32>
    %214 = arith.andi %211, %213 : vector<1x192xi1>
    %cst_104 = arith.constant 0.000000e+00 : f32
    %215 = vector.shape_cast %214 : vector<1x192xi1> to vector<1x192xi1>
    %216 = vector.broadcast %215 : vector<1x192xi1> to vector<16x192xi1>
    %217 = vector.broadcast %cst_104 : f32 to vector<16x192xf32>
    %218 = arith.select %216, %209, %217 : vector<16x192xi1>, vector<16x192xf32>
    %c0_105 = arith.constant 0 : index
    %c0_106 = arith.constant 0 : index
    %c0_107 = arith.constant 0 : index
    %219 = vector.load %arg10[%c0_105, %c0_106, %c0_107] : memref<9x16x16xbf16, #tpu.memory_space<vmem>>, vector<1x16x16xbf16>
    %220 = vector.shape_cast %219 : vector<1x16x16xbf16> to vector<16x16xbf16>
    %221 = arith.truncf %218 : vector<16x192xf32> to vector<16x192xbf16>
    %cst_108 = arith.constant dense<0.000000e+00> : vector<16x192xf32>
    %222 = tpu.matmul %220, %221, %cst_108 {dimension_numbers = #tpu.dot_dimension_numbers<[1], [0], [0], [1], [0, 0, 1, 1], [], []>} : vector<16x16xbf16>, vector<16x192xbf16>, vector<16x192xf32> -> vector<16x192xf32>
    %223 = arith.addf %208, %222 : vector<16x192xf32>
    %c0_109 = arith.constant 0 : index
    %c76 = arith.constant 76 : index
    %224 = vector.load %arg22[%c0_109, %c76] : memref<32x416xf32, #tpu.memory_space<vmem>>, vector<16x192xf32>
    %c4_i32_110 = arith.constant 4 : i32
    %225 = vector.broadcast %c4_i32_110 : i32 to vector<1x192xi32>
    %226 = arith.cmpi sge, %0, %225 : vector<1x192xi32>
    %c4_i32_111 = arith.constant 4 : i32
    %227 = vector.broadcast %c4_i32_111 : i32 to vector<1x192xi32>
    %228 = arith.cmpi sge, %1, %227 : vector<1x192xi32>
    %229 = arith.andi %226, %228 : vector<1x192xi1>
    %cst_112 = arith.constant 0.000000e+00 : f32
    %230 = vector.shape_cast %229 : vector<1x192xi1> to vector<1x192xi1>
    %231 = vector.broadcast %230 : vector<1x192xi1> to vector<16x192xi1>
    %232 = vector.broadcast %cst_112 : f32 to vector<16x192xf32>
    %233 = arith.select %231, %224, %232 : vector<16x192xi1>, vector<16x192xf32>
    %c1_113 = arith.constant 1 : index
    %c0_114 = arith.constant 0 : index
    %c0_115 = arith.constant 0 : index
    %234 = vector.load %arg10[%c1_113, %c0_114, %c0_115] : memref<9x16x16xbf16, #tpu.memory_space<vmem>>, vector<1x16x16xbf16>
    %235 = vector.shape_cast %234 : vector<1x16x16xbf16> to vector<16x16xbf16>
    %236 = arith.truncf %233 : vector<16x192xf32> to vector<16x192xbf16>
    %cst_116 = arith.constant dense<0.000000e+00> : vector<16x192xf32>
    %237 = tpu.matmul %235, %236, %cst_116 {dimension_numbers = #tpu.dot_dimension_numbers<[1], [0], [0], [1], [0, 0, 1, 1], [], []>} : vector<16x16xbf16>, vector<16x192xbf16>, vector<16x192xf32> -> vector<16x192xf32>
    %238 = arith.addf %223, %237 : vector<16x192xf32>
    %c0_117 = arith.constant 0 : index
    %c80 = arith.constant 80 : index
    %239 = vector.load %arg22[%c0_117, %c80] : memref<32x416xf32, #tpu.memory_space<vmem>>, vector<16x192xf32>
    %c4_i32_118 = arith.constant 4 : i32
    %240 = vector.broadcast %c4_i32_118 : i32 to vector<1x192xi32>
    %241 = arith.cmpi sge, %0, %240 : vector<1x192xi32>
    %cst_119 = arith.constant 0.000000e+00 : f32
    %242 = vector.shape_cast %241 : vector<1x192xi1> to vector<1x192xi1>
    %243 = vector.broadcast %242 : vector<1x192xi1> to vector<16x192xi1>
    %244 = vector.broadcast %cst_119 : f32 to vector<16x192xf32>
    %245 = arith.select %243, %239, %244 : vector<16x192xi1>, vector<16x192xf32>
    %c2_120 = arith.constant 2 : index
    %c0_121 = arith.constant 0 : index
    %c0_122 = arith.constant 0 : index
    %246 = vector.load %arg10[%c2_120, %c0_121, %c0_122] : memref<9x16x16xbf16, #tpu.memory_space<vmem>>, vector<1x16x16xbf16>
    %247 = vector.shape_cast %246 : vector<1x16x16xbf16> to vector<16x16xbf16>
    %248 = arith.truncf %245 : vector<16x192xf32> to vector<16x192xbf16>
    %cst_123 = arith.constant dense<0.000000e+00> : vector<16x192xf32>
    %249 = tpu.matmul %247, %248, %cst_123 {dimension_numbers = #tpu.dot_dimension_numbers<[1], [0], [0], [1], [0, 0, 1, 1], [], []>} : vector<16x16xbf16>, vector<16x192xbf16>, vector<16x192xf32> -> vector<16x192xf32>
    %250 = arith.addf %238, %249 : vector<16x192xf32>
    %c0_124 = arith.constant 0 : index
    %c120 = arith.constant 120 : index
    %251 = vector.load %arg22[%c0_124, %c120] : memref<32x416xf32, #tpu.memory_space<vmem>>, vector<16x192xf32>
    %c8_i32_125 = arith.constant 8 : i32
    %252 = vector.broadcast %c8_i32_125 : i32 to vector<1x192xi32>
    %253 = arith.cmpi sge, %1, %252 : vector<1x192xi32>
    %cst_126 = arith.constant 0.000000e+00 : f32
    %254 = vector.shape_cast %253 : vector<1x192xi1> to vector<1x192xi1>
    %255 = vector.broadcast %254 : vector<1x192xi1> to vector<16x192xi1>
    %256 = vector.broadcast %cst_126 : f32 to vector<16x192xf32>
    %257 = arith.select %255, %251, %256 : vector<16x192xi1>, vector<16x192xf32>
    %c3_127 = arith.constant 3 : index
    %c0_128 = arith.constant 0 : index
    %c0_129 = arith.constant 0 : index
    %258 = vector.load %arg10[%c3_127, %c0_128, %c0_129] : memref<9x16x16xbf16, #tpu.memory_space<vmem>>, vector<1x16x16xbf16>
    %259 = vector.shape_cast %258 : vector<1x16x16xbf16> to vector<16x16xbf16>
    %260 = arith.truncf %257 : vector<16x192xf32> to vector<16x192xbf16>
    %cst_130 = arith.constant dense<0.000000e+00> : vector<16x192xf32>
    %261 = tpu.matmul %259, %260, %cst_130 {dimension_numbers = #tpu.dot_dimension_numbers<[1], [0], [0], [1], [0, 0, 1, 1], [], []>} : vector<16x16xbf16>, vector<16x192xbf16>, vector<16x192xf32> -> vector<16x192xf32>
    %262 = arith.addf %250, %261 : vector<16x192xf32>
    %c0_131 = arith.constant 0 : index
    %c124_132 = arith.constant 124 : index
    %263 = vector.load %arg22[%c0_131, %c124_132] : memref<32x416xf32, #tpu.memory_space<vmem>>, vector<16x192xf32>
    %c4_i32_133 = arith.constant 4 : i32
    %264 = vector.broadcast %c4_i32_133 : i32 to vector<1x192xi32>
    %265 = arith.cmpi sge, %1, %264 : vector<1x192xi32>
    %cst_134 = arith.constant 0.000000e+00 : f32
    %266 = vector.shape_cast %265 : vector<1x192xi1> to vector<1x192xi1>
    %267 = vector.broadcast %266 : vector<1x192xi1> to vector<16x192xi1>
    %268 = vector.broadcast %cst_134 : f32 to vector<16x192xf32>
    %269 = arith.select %267, %263, %268 : vector<16x192xi1>, vector<16x192xf32>
    %c4_135 = arith.constant 4 : index
    %c0_136 = arith.constant 0 : index
    %c0_137 = arith.constant 0 : index
    %270 = vector.load %arg10[%c4_135, %c0_136, %c0_137] : memref<9x16x16xbf16, #tpu.memory_space<vmem>>, vector<1x16x16xbf16>
    %271 = vector.shape_cast %270 : vector<1x16x16xbf16> to vector<16x16xbf16>
    %272 = arith.truncf %269 : vector<16x192xf32> to vector<16x192xbf16>
    %cst_138 = arith.constant dense<0.000000e+00> : vector<16x192xf32>
    %273 = tpu.matmul %271, %272, %cst_138 {dimension_numbers = #tpu.dot_dimension_numbers<[1], [0], [0], [1], [0, 0, 1, 1], [], []>} : vector<16x16xbf16>, vector<16x192xbf16>, vector<16x192xf32> -> vector<16x192xf32>
    %274 = arith.addf %262, %273 : vector<16x192xf32>
    %c0_139 = arith.constant 0 : index
    %c128_140 = arith.constant 128 : index
    %275 = vector.load %arg22[%c0_139, %c128_140] : memref<32x416xf32, #tpu.memory_space<vmem>>, vector<16x192xf32>
    %c5_141 = arith.constant 5 : index
    %c0_142 = arith.constant 0 : index
    %c0_143 = arith.constant 0 : index
    %276 = vector.load %arg10[%c5_141, %c0_142, %c0_143] : memref<9x16x16xbf16, #tpu.memory_space<vmem>>, vector<1x16x16xbf16>
    %277 = vector.shape_cast %276 : vector<1x16x16xbf16> to vector<16x16xbf16>
    %278 = arith.truncf %275 : vector<16x192xf32> to vector<16x192xbf16>
    %cst_144 = arith.constant dense<0.000000e+00> : vector<16x192xf32>
    %279 = tpu.matmul %277, %278, %cst_144 {dimension_numbers = #tpu.dot_dimension_numbers<[1], [0], [0], [1], [0, 0, 1, 1], [], []>} : vector<16x16xbf16>, vector<16x192xbf16>, vector<16x192xf32> -> vector<16x192xf32>
    %280 = arith.addf %274, %279 : vector<16x192xf32>
    %c0_145 = arith.constant 0 : index
    %c168 = arith.constant 168 : index
    %281 = vector.load %arg22[%c0_145, %c168] : memref<32x416xf32, #tpu.memory_space<vmem>>, vector<16x192xf32>
    %c4_i32_146 = arith.constant 4 : i32
    %282 = vector.broadcast %c4_i32_146 : i32 to vector<1x192xi32>
    %283 = arith.cmpi slt, %0, %282 : vector<1x192xi32>
    %c8_i32_147 = arith.constant 8 : i32
    %284 = vector.broadcast %c8_i32_147 : i32 to vector<1x192xi32>
    %285 = arith.cmpi sge, %1, %284 : vector<1x192xi32>
    %286 = arith.andi %283, %285 : vector<1x192xi1>
    %cst_148 = arith.constant 0.000000e+00 : f32
    %287 = vector.shape_cast %286 : vector<1x192xi1> to vector<1x192xi1>
    %288 = vector.broadcast %287 : vector<1x192xi1> to vector<16x192xi1>
    %289 = vector.broadcast %cst_148 : f32 to vector<16x192xf32>
    %290 = arith.select %288, %281, %289 : vector<16x192xi1>, vector<16x192xf32>
    %c6_149 = arith.constant 6 : index
    %c0_150 = arith.constant 0 : index
    %c0_151 = arith.constant 0 : index
    %291 = vector.load %arg10[%c6_149, %c0_150, %c0_151] : memref<9x16x16xbf16, #tpu.memory_space<vmem>>, vector<1x16x16xbf16>
    %292 = vector.shape_cast %291 : vector<1x16x16xbf16> to vector<16x16xbf16>
    %293 = arith.truncf %290 : vector<16x192xf32> to vector<16x192xbf16>
    %cst_152 = arith.constant dense<0.000000e+00> : vector<16x192xf32>
    %294 = tpu.matmul %292, %293, %cst_152 {dimension_numbers = #tpu.dot_dimension_numbers<[1], [0], [0], [1], [0, 0, 1, 1], [], []>} : vector<16x16xbf16>, vector<16x192xbf16>, vector<16x192xf32> -> vector<16x192xf32>
    %295 = arith.addf %280, %294 : vector<16x192xf32>
    %c0_153 = arith.constant 0 : index
    %c172 = arith.constant 172 : index
    %296 = vector.load %arg22[%c0_153, %c172] : memref<32x416xf32, #tpu.memory_space<vmem>>, vector<16x192xf32>
    %c4_i32_154 = arith.constant 4 : i32
    %297 = vector.broadcast %c4_i32_154 : i32 to vector<1x192xi32>
    %298 = arith.cmpi slt, %0, %297 : vector<1x192xi32>
    %c4_i32_155 = arith.constant 4 : i32
    %299 = vector.broadcast %c4_i32_155 : i32 to vector<1x192xi32>
    %300 = arith.cmpi sge, %1, %299 : vector<1x192xi32>
    %301 = arith.andi %298, %300 : vector<1x192xi1>
    %cst_156 = arith.constant 0.000000e+00 : f32
    %302 = vector.shape_cast %301 : vector<1x192xi1> to vector<1x192xi1>
    %303 = vector.broadcast %302 : vector<1x192xi1> to vector<16x192xi1>
    %304 = vector.broadcast %cst_156 : f32 to vector<16x192xf32>
    %305 = arith.select %303, %296, %304 : vector<16x192xi1>, vector<16x192xf32>
    %c7_157 = arith.constant 7 : index
    %c0_158 = arith.constant 0 : index
    %c0_159 = arith.constant 0 : index
    %306 = vector.load %arg10[%c7_157, %c0_158, %c0_159] : memref<9x16x16xbf16, #tpu.memory_space<vmem>>, vector<1x16x16xbf16>
    %307 = vector.shape_cast %306 : vector<1x16x16xbf16> to vector<16x16xbf16>
    %308 = arith.truncf %305 : vector<16x192xf32> to vector<16x192xbf16>
    %cst_160 = arith.constant dense<0.000000e+00> : vector<16x192xf32>
    %309 = tpu.matmul %307, %308, %cst_160 {dimension_numbers = #tpu.dot_dimension_numbers<[1], [0], [0], [1], [0, 0, 1, 1], [], []>} : vector<16x16xbf16>, vector<16x192xbf16>, vector<16x192xf32> -> vector<16x192xf32>
    %310 = arith.addf %295, %309 : vector<16x192xf32>
    %c0_161 = arith.constant 0 : index
    %c176 = arith.constant 176 : index
    %311 = vector.load %arg22[%c0_161, %c176] : memref<32x416xf32, #tpu.memory_space<vmem>>, vector<16x192xf32>
    %c4_i32_162 = arith.constant 4 : i32
    %312 = vector.broadcast %c4_i32_162 : i32 to vector<1x192xi32>
    %313 = arith.cmpi slt, %0, %312 : vector<1x192xi32>
    %cst_163 = arith.constant 0.000000e+00 : f32
    %314 = vector.shape_cast %313 : vector<1x192xi1> to vector<1x192xi1>
    %315 = vector.broadcast %314 : vector<1x192xi1> to vector<16x192xi1>
    %316 = vector.broadcast %cst_163 : f32 to vector<16x192xf32>
    %317 = arith.select %315, %311, %316 : vector<16x192xi1>, vector<16x192xf32>
    %c8_164 = arith.constant 8 : index
    %c0_165 = arith.constant 0 : index
    %c0_166 = arith.constant 0 : index
    %318 = vector.load %arg10[%c8_164, %c0_165, %c0_166] : memref<9x16x16xbf16, #tpu.memory_space<vmem>>, vector<1x16x16xbf16>
    %319 = vector.shape_cast %318 : vector<1x16x16xbf16> to vector<16x16xbf16>
    %320 = arith.truncf %317 : vector<16x192xf32> to vector<16x192xbf16>
    %cst_167 = arith.constant dense<0.000000e+00> : vector<16x192xf32>
    %321 = tpu.matmul %319, %320, %cst_167 {dimension_numbers = #tpu.dot_dimension_numbers<[1], [0], [0], [1], [0, 0, 1, 1], [], []>} : vector<16x16xbf16>, vector<16x192xbf16>, vector<16x192xf32> -> vector<16x192xf32>
    %322 = arith.addf %310, %321 : vector<16x192xf32>
    %cst_168 = arith.constant dense<0.000000e+00> : vector<16xf32>
    %323 = vector.multi_reduction <add>, %322, %cst_168 [1] : vector<16x192xf32> to vector<16xf32>
    %324 = vector.shape_cast %323 : vector<16xf32> to vector<16x1xf32>
    %cst_169 = arith.constant 1.920000e+02 : f32
    %325 = vector.broadcast %cst_169 : f32 to vector<16x1xf32>
    %326 = arith.divf %324, %325 : vector<16x1xf32>
    %327 = vector.broadcast %326 : vector<16x1xf32> to vector<16x192xf32>
    %328 = arith.subf %322, %327 : vector<16x192xf32>
    %329 = arith.mulf %328, %328 : vector<16x192xf32>
    %cst_170 = arith.constant dense<0.000000e+00> : vector<16xf32>
    %330 = vector.multi_reduction <add>, %329, %cst_170 [1] : vector<16x192xf32> to vector<16xf32>
    %331 = vector.shape_cast %330 : vector<16xf32> to vector<16x1xf32>
    %cst_171 = arith.constant 1.920000e+02 : f32
    %332 = vector.broadcast %cst_171 : f32 to vector<16x1xf32>
    %333 = arith.divf %331, %332 : vector<16x1xf32>
    %cst_172 = arith.constant 9.99999974E-6 : f32
    %334 = vector.broadcast %cst_172 : f32 to vector<16x1xf32>
    %335 = arith.addf %333, %334 : vector<16x1xf32>
    %336 = math.rsqrt %335 : vector<16x1xf32>
    %337 = vector.broadcast %336 : vector<16x1xf32> to vector<16x192xf32>
    %338 = arith.mulf %328, %337 : vector<16x192xf32>
    %c0_173 = arith.constant 0 : index
    %c0_174 = arith.constant 0 : index
    %339 = vector.load %arg11[%c0_173, %c0_174] : memref<16x1xf32, #tpu.memory_space<vmem>>, vector<16x1xf32>
    %340 = vector.broadcast %339 : vector<16x1xf32> to vector<16x192xf32>
    %341 = arith.mulf %338, %340 : vector<16x192xf32>
    %c0_175 = arith.constant 0 : index
    %c0_176 = arith.constant 0 : index
    %342 = vector.load %arg12[%c0_175, %c0_176] : memref<16x1xf32, #tpu.memory_space<vmem>>, vector<16x1xf32>
    %343 = vector.broadcast %342 : vector<16x1xf32> to vector<16x192xf32>
    %344 = arith.addf %341, %343 : vector<16x192xf32>
    %cst_177 = arith.constant 0.707106769 : f32
    %345 = vector.broadcast %cst_177 : f32 to vector<16x192xf32>
    %346 = arith.mulf %344, %345 : vector<16x192xf32>
    %cst_178 = arith.constant 0.000000e+00 : f32
    %347 = vector.broadcast %cst_178 : f32 to vector<16x192xf32>
    %348 = arith.cmpf oge, %346, %347 : vector<16x192xf32>
    %cst_179 = arith.constant 1.000000e+00 : f32
    %cst_180 = arith.constant -1.000000e+00 : f32
    %349 = vector.broadcast %cst_179 : f32 to vector<16x192xf32>
    %350 = vector.broadcast %cst_180 : f32 to vector<16x192xf32>
    %351 = arith.select %348, %349, %350 : vector<16x192xi1>, vector<16x192xf32>
    %352 = math.absf %346 : vector<16x192xf32>
    %cst_181 = arith.constant 0.327591091 : f32
    %353 = vector.broadcast %cst_181 : f32 to vector<16x192xf32>
    %354 = arith.mulf %353, %352 : vector<16x192xf32>
    %cst_182 = arith.constant 1.000000e+00 : f32
    %355 = vector.broadcast %cst_182 : f32 to vector<16x192xf32>
    %356 = arith.addf %355, %354 : vector<16x192xf32>
    %357 = tpu.reciprocal %356 {approx = true} : vector<16x192xf32> -> vector<16x192xf32>
    %cst_183 = arith.constant 1.06140542 : f32
    %358 = vector.broadcast %cst_183 : f32 to vector<16x192xf32>
    %359 = arith.mulf %358, %357 : vector<16x192xf32>
    %cst_184 = arith.constant 1.45315206 : f32
    %360 = vector.broadcast %cst_184 : f32 to vector<16x192xf32>
    %361 = arith.subf %359, %360 : vector<16x192xf32>
    %362 = arith.mulf %361, %357 : vector<16x192xf32>
    %cst_185 = arith.constant 1.42141378 : f32
    %363 = vector.broadcast %cst_185 : f32 to vector<16x192xf32>
    %364 = arith.addf %362, %363 : vector<16x192xf32>
    %365 = arith.mulf %364, %357 : vector<16x192xf32>
    %cst_186 = arith.constant 0.284496725 : f32
    %366 = vector.broadcast %cst_186 : f32 to vector<16x192xf32>
    %367 = arith.subf %365, %366 : vector<16x192xf32>
    %368 = arith.mulf %367, %357 : vector<16x192xf32>
    %cst_187 = arith.constant 0.254829586 : f32
    %369 = vector.broadcast %cst_187 : f32 to vector<16x192xf32>
    %370 = arith.addf %368, %369 : vector<16x192xf32>
    %371 = arith.mulf %370, %357 : vector<16x192xf32>
    %cst_188 = arith.constant 0.000000e+00 : f32
    %372 = vector.broadcast %cst_188 : f32 to vector<16x192xf32>
    %373 = arith.subf %372, %352 : vector<16x192xf32>
    %374 = arith.mulf %373, %352 : vector<16x192xf32>
    %375 = math.exp %374 : vector<16x192xf32>
    %376 = arith.mulf %371, %375 : vector<16x192xf32>
    %cst_189 = arith.constant 1.000000e+00 : f32
    %377 = vector.broadcast %cst_189 : f32 to vector<16x192xf32>
    %378 = arith.subf %377, %376 : vector<16x192xf32>
    %379 = arith.mulf %351, %378 : vector<16x192xf32>
    %cst_190 = arith.constant 5.000000e-01 : f32
    %380 = vector.broadcast %cst_190 : f32 to vector<16x192xf32>
    %381 = arith.mulf %380, %344 : vector<16x192xf32>
    %cst_191 = arith.constant 1.000000e+00 : f32
    %382 = vector.broadcast %cst_191 : f32 to vector<16x192xf32>
    %383 = arith.addf %382, %379 : vector<16x192xf32>
    %384 = arith.mulf %381, %383 : vector<16x192xf32>
    %c0_192 = arith.constant 0 : index
    %c128_193 = arith.constant 128 : index
    %385 = vector.load %arg22[%c0_192, %c128_193] : memref<32x416xf32, #tpu.memory_space<vmem>>, vector<16x192xf32>
    tpu.vector_store %arg22[%c0_192, %c128_193], %384 {strides = array<i32>} : memref<32x416xf32, #tpu.memory_space<vmem>>, vector<16x192xf32>,
    %cst_194 = arith.constant 0.000000e+00 : f32
    %386 = vector.broadcast %cst_194 : f32 to vector<16x192xf32>
    %c0_195 = arith.constant 0 : index
    %c120_196 = arith.constant 120 : index
    %387 = vector.load %arg22[%c0_195, %c120_196] : memref<32x416xf32, #tpu.memory_space<vmem>>, vector<16x192xf32>
    %c8_i32_197 = arith.constant 8 : i32
    %388 = vector.broadcast %c8_i32_197 : i32 to vector<1x192xi32>
    %389 = arith.cmpi sge, %1, %388 : vector<1x192xi32>
    %cst_198 = arith.constant 0.000000e+00 : f32
    %390 = vector.shape_cast %389 : vector<1x192xi1> to vector<1x192xi1>
    %391 = vector.broadcast %390 : vector<1x192xi1> to vector<16x192xi1>
    %392 = vector.broadcast %cst_198 : f32 to vector<16x192xf32>
    %393 = arith.select %391, %387, %392 : vector<16x192xi1>, vector<16x192xf32>
    %c4_199 = arith.constant 4 : index
    %c0_200 = arith.constant 0 : index
    %c0_201 = arith.constant 0 : index
    %394 = vector.load %arg13[%c4_199, %c0_200, %c0_201] : memref<9x16x16xbf16, #tpu.memory_space<vmem>>, vector<1x16x16xbf16>
    %395 = vector.shape_cast %394 : vector<1x16x16xbf16> to vector<16x16xbf16>
    %396 = arith.truncf %393 : vector<16x192xf32> to vector<16x192xbf16>
    %cst_202 = arith.constant dense<0.000000e+00> : vector<16x192xf32>
    %397 = tpu.matmul %395, %396, %cst_202 {dimension_numbers = #tpu.dot_dimension_numbers<[1], [0], [0], [1], [0, 0, 1, 1], [], []>} : vector<16x16xbf16>, vector<16x192xbf16>, vector<16x192xf32> -> vector<16x192xf32>
    %398 = arith.addf %386, %397 : vector<16x192xf32>
    %c0_203 = arith.constant 0 : index
    %c128_204 = arith.constant 128 : index
    %399 = vector.load %arg22[%c0_203, %c128_204] : memref<32x416xf32, #tpu.memory_space<vmem>>, vector<16x192xf32>
    %c5_205 = arith.constant 5 : index
    %c0_206 = arith.constant 0 : index
    %c0_207 = arith.constant 0 : index
    %400 = vector.load %arg13[%c5_205, %c0_206, %c0_207] : memref<9x16x16xbf16, #tpu.memory_space<vmem>>, vector<1x16x16xbf16>
    %401 = vector.shape_cast %400 : vector<1x16x16xbf16> to vector<16x16xbf16>
    %402 = arith.truncf %399 : vector<16x192xf32> to vector<16x192xbf16>
    %cst_208 = arith.constant dense<0.000000e+00> : vector<16x192xf32>
    %403 = tpu.matmul %401, %402, %cst_208 {dimension_numbers = #tpu.dot_dimension_numbers<[1], [0], [0], [1], [0, 0, 1, 1], [], []>} : vector<16x16xbf16>, vector<16x192xbf16>, vector<16x192xf32> -> vector<16x192xf32>
    %404 = arith.addf %398, %403 : vector<16x192xf32>
    %cst_209 = arith.constant dense<0.000000e+00> : vector<16xf32>
    %405 = vector.multi_reduction <add>, %404, %cst_209 [1] : vector<16x192xf32> to vector<16xf32>
    %406 = vector.shape_cast %405 : vector<16xf32> to vector<16x1xf32>
    %cst_210 = arith.constant 1.920000e+02 : f32
    %407 = vector.broadcast %cst_210 : f32 to vector<16x1xf32>
    %408 = arith.divf %406, %407 : vector<16x1xf32>
    %409 = vector.broadcast %408 : vector<16x1xf32> to vector<16x192xf32>
    %410 = arith.subf %404, %409 : vector<16x192xf32>
    %411 = arith.mulf %410, %410 : vector<16x192xf32>
    %cst_211 = arith.constant dense<0.000000e+00> : vector<16xf32>
    %412 = vector.multi_reduction <add>, %411, %cst_211 [1] : vector<16x192xf32> to vector<16xf32>
    %413 = vector.shape_cast %412 : vector<16xf32> to vector<16x1xf32>
    %cst_212 = arith.constant 1.920000e+02 : f32
    %414 = vector.broadcast %cst_212 : f32 to vector<16x1xf32>
    %415 = arith.divf %413, %414 : vector<16x1xf32>
    %cst_213 = arith.constant 9.99999974E-6 : f32
    %416 = vector.broadcast %cst_213 : f32 to vector<16x1xf32>
    %417 = arith.addf %415, %416 : vector<16x1xf32>
    %418 = math.rsqrt %417 : vector<16x1xf32>
    %419 = vector.broadcast %418 : vector<16x1xf32> to vector<16x192xf32>
    %420 = arith.mulf %410, %419 : vector<16x192xf32>
    %c0_214 = arith.constant 0 : index
    %c0_215 = arith.constant 0 : index
    %421 = vector.load %arg14[%c0_214, %c0_215] : memref<16x1xf32, #tpu.memory_space<vmem>>, vector<16x1xf32>
    %422 = vector.broadcast %421 : vector<16x1xf32> to vector<16x192xf32>
    %423 = arith.mulf %420, %422 : vector<16x192xf32>
    %c0_216 = arith.constant 0 : index
    %c0_217 = arith.constant 0 : index
    %424 = vector.load %arg15[%c0_216, %c0_217] : memref<16x1xf32, #tpu.memory_space<vmem>>, vector<16x1xf32>
    %425 = vector.broadcast %424 : vector<16x1xf32> to vector<16x192xf32>
    %426 = arith.addf %423, %425 : vector<16x192xf32>
    %cst_218 = arith.constant 0.707106769 : f32
    %427 = vector.broadcast %cst_218 : f32 to vector<16x192xf32>
    %428 = arith.mulf %426, %427 : vector<16x192xf32>
    %cst_219 = arith.constant 0.000000e+00 : f32
    %429 = vector.broadcast %cst_219 : f32 to vector<16x192xf32>
    %430 = arith.cmpf oge, %428, %429 : vector<16x192xf32>
    %cst_220 = arith.constant 1.000000e+00 : f32
    %cst_221 = arith.constant -1.000000e+00 : f32
    %431 = vector.broadcast %cst_220 : f32 to vector<16x192xf32>
    %432 = vector.broadcast %cst_221 : f32 to vector<16x192xf32>
    %433 = arith.select %430, %431, %432 : vector<16x192xi1>, vector<16x192xf32>
    %434 = math.absf %428 : vector<16x192xf32>
    %cst_222 = arith.constant 0.327591091 : f32
    %435 = vector.broadcast %cst_222 : f32 to vector<16x192xf32>
    %436 = arith.mulf %435, %434 : vector<16x192xf32>
    %cst_223 = arith.constant 1.000000e+00 : f32
    %437 = vector.broadcast %cst_223 : f32 to vector<16x192xf32>
    %438 = arith.addf %437, %436 : vector<16x192xf32>
    %439 = tpu.reciprocal %438 {approx = true} : vector<16x192xf32> -> vector<16x192xf32>
    %cst_224 = arith.constant 1.06140542 : f32
    %440 = vector.broadcast %cst_224 : f32 to vector<16x192xf32>
    %441 = arith.mulf %440, %439 : vector<16x192xf32>
    %cst_225 = arith.constant 1.45315206 : f32
    %442 = vector.broadcast %cst_225 : f32 to vector<16x192xf32>
    %443 = arith.subf %441, %442 : vector<16x192xf32>
    %444 = arith.mulf %443, %439 : vector<16x192xf32>
    %cst_226 = arith.constant 1.42141378 : f32
    %445 = vector.broadcast %cst_226 : f32 to vector<16x192xf32>
    %446 = arith.addf %444, %445 : vector<16x192xf32>
    %447 = arith.mulf %446, %439 : vector<16x192xf32>
    %cst_227 = arith.constant 0.284496725 : f32
    %448 = vector.broadcast %cst_227 : f32 to vector<16x192xf32>
    %449 = arith.subf %447, %448 : vector<16x192xf32>
    %450 = arith.mulf %449, %439 : vector<16x192xf32>
    %cst_228 = arith.constant 0.254829586 : f32
    %451 = vector.broadcast %cst_228 : f32 to vector<16x192xf32>
    %452 = arith.addf %450, %451 : vector<16x192xf32>
    %453 = arith.mulf %452, %439 : vector<16x192xf32>
    %cst_229 = arith.constant 0.000000e+00 : f32
    %454 = vector.broadcast %cst_229 : f32 to vector<16x192xf32>
    %455 = arith.subf %454, %434 : vector<16x192xf32>
    %456 = arith.mulf %455, %434 : vector<16x192xf32>
    %457 = math.exp %456 : vector<16x192xf32>
    %458 = arith.mulf %453, %457 : vector<16x192xf32>
    %cst_230 = arith.constant 1.000000e+00 : f32
    %459 = vector.broadcast %cst_230 : f32 to vector<16x192xf32>
    %460 = arith.subf %459, %458 : vector<16x192xf32>
    %461 = arith.mulf %433, %460 : vector<16x192xf32>
    %cst_231 = arith.constant 5.000000e-01 : f32
    %462 = vector.broadcast %cst_231 : f32 to vector<16x192xf32>
    %463 = arith.mulf %462, %426 : vector<16x192xf32>
    %cst_232 = arith.constant 1.000000e+00 : f32
    %464 = vector.broadcast %cst_232 : f32 to vector<16x192xf32>
    %465 = arith.addf %464, %461 : vector<16x192xf32>
    %466 = arith.mulf %463, %465 : vector<16x192xf32>
    %c0_233 = arith.constant 0 : index
    %c0_234 = arith.constant 0 : index
    %467 = vector.load %arg16[%c0_233, %c0_234] : memref<16x16xbf16, #tpu.memory_space<vmem>>, vector<16x16xbf16>
    %468 = arith.truncf %466 : vector<16x192xf32> to vector<16x192xbf16>
    %cst_235 = arith.constant dense<0.000000e+00> : vector<16x192xf32>
    %469 = tpu.matmul %467, %468, %cst_235 {dimension_numbers = #tpu.dot_dimension_numbers<[1], [0], [0], [1], [0, 0, 1, 1], [], []>} : vector<16x16xbf16>, vector<16x192xbf16>, vector<16x192xf32> -> vector<16x192xf32>
    %cst_236 = arith.constant dense<0.000000e+00> : vector<16xf32>
    %470 = vector.multi_reduction <add>, %469, %cst_236 [1] : vector<16x192xf32> to vector<16xf32>
    %471 = vector.shape_cast %470 : vector<16xf32> to vector<16x1xf32>
    %cst_237 = arith.constant 1.920000e+02 : f32
    %472 = vector.broadcast %cst_237 : f32 to vector<16x1xf32>
    %473 = arith.divf %471, %472 : vector<16x1xf32>
    %474 = vector.broadcast %473 : vector<16x1xf32> to vector<16x192xf32>
    %475 = arith.subf %469, %474 : vector<16x192xf32>
    %476 = arith.mulf %475, %475 : vector<16x192xf32>
    %cst_238 = arith.constant dense<0.000000e+00> : vector<16xf32>
    %477 = vector.multi_reduction <add>, %476, %cst_238 [1] : vector<16x192xf32> to vector<16xf32>
    %478 = vector.shape_cast %477 : vector<16xf32> to vector<16x1xf32>
    %cst_239 = arith.constant 1.920000e+02 : f32
    %479 = vector.broadcast %cst_239 : f32 to vector<16x1xf32>
    %480 = arith.divf %478, %479 : vector<16x1xf32>
    %cst_240 = arith.constant 9.99999974E-6 : f32
    %481 = vector.broadcast %cst_240 : f32 to vector<16x1xf32>
    %482 = arith.addf %480, %481 : vector<16x1xf32>
    %483 = math.rsqrt %482 : vector<16x1xf32>
    %484 = vector.broadcast %483 : vector<16x1xf32> to vector<16x192xf32>
    %485 = arith.mulf %475, %484 : vector<16x192xf32>
    %c0_241 = arith.constant 0 : index
    %c0_242 = arith.constant 0 : index
    %486 = vector.load %arg17[%c0_241, %c0_242] : memref<16x1xf32, #tpu.memory_space<vmem>>, vector<16x1xf32>
    %487 = vector.broadcast %486 : vector<16x1xf32> to vector<16x192xf32>
    %488 = arith.mulf %485, %487 : vector<16x192xf32>
    %c0_243 = arith.constant 0 : index
    %c0_244 = arith.constant 0 : index
    %489 = vector.load %arg18[%c0_243, %c0_244] : memref<16x1xf32, #tpu.memory_space<vmem>>, vector<16x1xf32>
    %490 = vector.broadcast %489 : vector<16x1xf32> to vector<16x192xf32>
    %491 = arith.addf %488, %490 : vector<16x192xf32>
    %cst_245 = arith.constant 0.707106769 : f32
    %492 = vector.broadcast %cst_245 : f32 to vector<16x192xf32>
    %493 = arith.mulf %491, %492 : vector<16x192xf32>
    %cst_246 = arith.constant 0.000000e+00 : f32
    %494 = vector.broadcast %cst_246 : f32 to vector<16x192xf32>
    %495 = arith.cmpf oge, %493, %494 : vector<16x192xf32>
    %cst_247 = arith.constant 1.000000e+00 : f32
    %cst_248 = arith.constant -1.000000e+00 : f32
    %496 = vector.broadcast %cst_247 : f32 to vector<16x192xf32>
    %497 = vector.broadcast %cst_248 : f32 to vector<16x192xf32>
    %498 = arith.select %495, %496, %497 : vector<16x192xi1>, vector<16x192xf32>
    %499 = math.absf %493 : vector<16x192xf32>
    %cst_249 = arith.constant 0.327591091 : f32
    %500 = vector.broadcast %cst_249 : f32 to vector<16x192xf32>
    %501 = arith.mulf %500, %499 : vector<16x192xf32>
    %cst_250 = arith.constant 1.000000e+00 : f32
    %502 = vector.broadcast %cst_250 : f32 to vector<16x192xf32>
    %503 = arith.addf %502, %501 : vector<16x192xf32>
    %504 = tpu.reciprocal %503 {approx = true} : vector<16x192xf32> -> vector<16x192xf32>
    %cst_251 = arith.constant 1.06140542 : f32
    %505 = vector.broadcast %cst_251 : f32 to vector<16x192xf32>
    %506 = arith.mulf %505, %504 : vector<16x192xf32>
    %cst_252 = arith.constant 1.45315206 : f32
    %507 = vector.broadcast %cst_252 : f32 to vector<16x192xf32>
    %508 = arith.subf %506, %507 : vector<16x192xf32>
    %509 = arith.mulf %508, %504 : vector<16x192xf32>
    %cst_253 = arith.constant 1.42141378 : f32
    %510 = vector.broadcast %cst_253 : f32 to vector<16x192xf32>
    %511 = arith.addf %509, %510 : vector<16x192xf32>
    %512 = arith.mulf %511, %504 : vector<16x192xf32>
    %cst_254 = arith.constant 0.284496725 : f32
    %513 = vector.broadcast %cst_254 : f32 to vector<16x192xf32>
    %514 = arith.subf %512, %513 : vector<16x192xf32>
    %515 = arith.mulf %514, %504 : vector<16x192xf32>
    %cst_255 = arith.constant 0.254829586 : f32
    %516 = vector.broadcast %cst_255 : f32 to vector<16x192xf32>
    %517 = arith.addf %515, %516 : vector<16x192xf32>
    %518 = arith.mulf %517, %504 : vector<16x192xf32>
    %cst_256 = arith.constant 0.000000e+00 : f32
    %519 = vector.broadcast %cst_256 : f32 to vector<16x192xf32>
    %520 = arith.subf %519, %499 : vector<16x192xf32>
    %521 = arith.mulf %520, %499 : vector<16x192xf32>
    %522 = math.exp %521 : vector<16x192xf32>
    %523 = arith.mulf %518, %522 : vector<16x192xf32>
    %cst_257 = arith.constant 1.000000e+00 : f32
    %524 = vector.broadcast %cst_257 : f32 to vector<16x192xf32>
    %525 = arith.subf %524, %523 : vector<16x192xf32>
    %526 = arith.mulf %498, %525 : vector<16x192xf32>
    %cst_258 = arith.constant 5.000000e-01 : f32
    %527 = vector.broadcast %cst_258 : f32 to vector<16x192xf32>
    %528 = arith.mulf %527, %491 : vector<16x192xf32>
    %cst_259 = arith.constant 1.000000e+00 : f32
    %529 = vector.broadcast %cst_259 : f32 to vector<16x192xf32>
    %530 = arith.addf %529, %526 : vector<16x192xf32>
    %531 = arith.mulf %528, %530 : vector<16x192xf32>
    %c0_260 = arith.constant 0 : index
    %c0_261 = arith.constant 0 : index
    %532 = vector.load %arg19[%c0_260, %c0_261] : memref<1x16xf32, #tpu.memory_space<vmem>>, vector<1x16xf32>
    %cst_262 = arith.constant dense<0.000000e+00> : vector<1x192xf32>
    %533 = tpu.matmul %532, %531, %cst_262 {dimension_numbers = #tpu.dot_dimension_numbers<[1], [0], [0], [1], [0, 0, 1, 1], [], []>} : vector<1x16xf32>, vector<16x192xf32>, vector<1x192xf32> -> vector<1x192xf32>
    %c0_263 = arith.constant 0 : index
    %c0_264 = arith.constant 0 : index
    %534 = vector.load %arg20[%c0_263, %c0_264] : memref<1x1xf32, #tpu.memory_space<vmem>>, vector<1x1xf32>
    %535 = vector.broadcast %534 : vector<1x1xf32> to vector<1x192xf32>
    %536 = arith.addf %533, %535 : vector<1x192xf32>
    %c0_265 = arith.constant 0 : index
    %c0_266 = arith.constant 0 : index
    %537 = vector.load %arg21[%c0_265, %c0_266] : memref<1x192xf32, #tpu.memory_space<vmem>>, vector<1x192xf32>
    tpu.vector_store %arg21[%c0_265, %c0_266], %536 {strides = array<i32>} : memref<1x192xf32, #tpu.memory_space<vmem>>, vector<1x192xf32>,
    return
  }
  func.func @transform_0(%arg0: i32) -> (i32, i32) {
    %c0_i32 = arith.constant 0 : i32
    %c0_i32_0 = arith.constant 0 : i32
    %c0_i32_1 = arith.constant 0 : i32
    return %c0_i32, %c0_i32_0 : i32, i32
  }
  func.func @transform_1(%arg0: i32) -> (i32, i32) {
    %c0_i32 = arith.constant 0 : i32
    %c0_i32_0 = arith.constant 0 : i32
    %c0_i32_1 = arith.constant 0 : i32
    return %c0_i32, %c0_i32_0 : i32, i32
  }
  func.func @transform_2(%arg0: i32) -> (i32, i32) {
    %c0_i32 = arith.constant 0 : i32
    %c0_i32_0 = arith.constant 0 : i32
    %c0_i32_1 = arith.constant 0 : i32
    return %c0_i32, %c0_i32_0 : i32, i32
  }
  func.func @transform_3(%arg0: i32) -> (i32, i32) {
    %c0_i32 = arith.constant 0 : i32
    %c0_i32_0 = arith.constant 0 : i32
    %c0_i32_1 = arith.constant 0 : i32
    return %c0_i32, %c0_i32_0 : i32, i32
  }
  func.func @transform_4(%arg0: i32) -> (i32, i32) {
    %c0_i32 = arith.constant 0 : i32
    %c0_i32_0 = arith.constant 0 : i32
    %c0_i32_1 = arith.constant 0 : i32
    return %c0_i32, %c0_i32_0 : i32, i32
  }
  func.func @transform_5(%arg0: i32) -> (i32, i32) {
    %c0_i32 = arith.constant 0 : i32
    %c0_i32_0 = arith.constant 0 : i32
    %c0_i32_1 = arith.constant 0 : i32
    return %c0_i32, %c0_i32_0 : i32, i32
  }
  func.func @transform_6(%arg0: i32) -> (i32, i32, i32) {
    %c0_i32 = arith.constant 0 : i32
    %c0_i32_0 = arith.constant 0 : i32
    %c0_i32_1 = arith.constant 0 : i32
    %c0_i32_2 = arith.constant 0 : i32
    return %c0_i32, %c0_i32_0, %c0_i32_1 : i32, i32, i32
  }
  func.func @transform_7(%arg0: i32) -> (i32, i32) {
    %c0_i32 = arith.constant 0 : i32
    %c0_i32_0 = arith.constant 0 : i32
    %c0_i32_1 = arith.constant 0 : i32
    return %c0_i32, %c0_i32_0 : i32, i32
  }
  func.func @transform_8(%arg0: i32) -> (i32, i32) {
    %c0_i32 = arith.constant 0 : i32
    %c0_i32_0 = arith.constant 0 : i32
    %c0_i32_1 = arith.constant 0 : i32
    return %c0_i32, %c0_i32_0 : i32, i32
  }
  func.func @transform_9(%arg0: i32) -> (i32, i32, i32) {
    %c0_i32 = arith.constant 0 : i32
    %c0_i32_0 = arith.constant 0 : i32
    %c0_i32_1 = arith.constant 0 : i32
    %c0_i32_2 = arith.constant 0 : i32
    return %c0_i32, %c0_i32_0, %c0_i32_1 : i32, i32, i32
  }
  func.func @transform_10(%arg0: i32) -> (i32, i32) {
    %c0_i32 = arith.constant 0 : i32
    %c0_i32_0 = arith.constant 0 : i32
    %c0_i32_1 = arith.constant 0 : i32
    return %c0_i32, %c0_i32_0 : i32, i32
  }
  func.func @transform_11(%arg0: i32) -> (i32, i32) {
    %c0_i32 = arith.constant 0 : i32
    %c0_i32_0 = arith.constant 0 : i32
    %c0_i32_1 = arith.constant 0 : i32
    return %c0_i32, %c0_i32_0 : i32, i32
  }
  func.func @transform_12(%arg0: i32) -> (i32, i32, i32) {
    %c0_i32 = arith.constant 0 : i32
    %c0_i32_0 = arith.constant 0 : i32
    %c0_i32_1 = arith.constant 0 : i32
    %c0_i32_2 = arith.constant 0 : i32
    return %c0_i32, %c0_i32_0, %c0_i32_1 : i32, i32, i32
  }
  func.func @transform_13(%arg0: i32) -> (i32, i32) {
    %c0_i32 = arith.constant 0 : i32
    %c0_i32_0 = arith.constant 0 : i32
    %c0_i32_1 = arith.constant 0 : i32
    return %c0_i32, %c0_i32_0 : i32, i32
  }
  func.func @transform_14(%arg0: i32) -> (i32, i32) {
    %c0_i32 = arith.constant 0 : i32
    %c0_i32_0 = arith.constant 0 : i32
    %c0_i32_1 = arith.constant 0 : i32
    return %c0_i32, %c0_i32_0 : i32, i32
  }
  func.func @transform_15(%arg0: i32) -> (i32, i32) {
    %c0_i32 = arith.constant 0 : i32
    %c0_i32_0 = arith.constant 0 : i32
    %c0_i32_1 = arith.constant 0 : i32
    return %c0_i32, %c0_i32_0 : i32, i32
  }
  func.func @transform_16(%arg0: i32) -> (i32, i32) {
    %c0_i32 = arith.constant 0 : i32
    %c0_i32_0 = arith.constant 0 : i32
    %c0_i32_1 = arith.constant 0 : i32
    return %c0_i32, %c0_i32_0 : i32, i32
  }
  func.func @transform_17(%arg0: i32) -> (i32, i32) {
    %c0_i32 = arith.constant 0 : i32
    %c0_i32_0 = arith.constant 0 : i32
    %c0_i32_1 = arith.constant 0 : i32
    return %c0_i32, %c0_i32_0 : i32, i32
  }
  func.func @transform_18(%arg0: i32) -> (i32, i32) {
    %c0_i32 = arith.constant 0 : i32
    %c0_i32_0 = arith.constant 0 : i32
    %c0_i32_1 = arith.constant 0 : i32
    return %c0_i32, %c0_i32_0 : i32, i32
  }
  func.func @transform_19(%arg0: i32) -> (i32, i32) {
    %c0_i32 = arith.constant 0 : i32
    %c0_i32_0 = arith.constant 0 : i32
    %c0_i32_1 = arith.constant 0 : i32
    return %c0_i32, %c0_i32_0 : i32, i32
  }
  func.func @transform_20(%arg0: i32) -> (i32, i32) {
    %c0_i32 = arith.constant 0 : i32
    %c0_i32_0 = arith.constant 0 : i32
    %c0_i32_1 = arith.constant 0 : i32
    return %c0_i32, %c0_i32_0 : i32, i32
  }
}

</mosaic_0001>

<bundles_post_ra>
// kernel: tile.7
= control target key start
LH: loop header
LB: loop body
LE: loop exit
PB: predicated region body
PF: predicated region fallthrough
CT: control target
= control target key end

     0   :  { %vm163_vm0 = vcmask 1047556   ;;  %vm206_vm1 = vcmask 261120   ;;  %s353_s4 = smov 96   ;;  %vm165_vm2 = vcmask 785408   ;;  %vm210_vm3 = vcmask 523264   ;;  %s520_s0 = inlined_call_operand.vmem [shape: f32[32,2,96], index: 0, kind: input, shape index: {}]   ;;  %s521_s1 = inlined_call_operand.vmem [shape: f32[32,192], index: 1, kind: output, shape index: {}]  }
   0x1   :  { %v335_v0 = vld [vmem:[%s520_s0 + $0xe] sm:$0x3]  ;;  %v336_v1 = vld [vmem:[%s520_s0 + $0xc] sm:$0x3]  ;;  %v337_v2 = vld [vmem:[%s520_s0 + $0xa] sm:$0x3] }
   0x2   :  { %129 = vst [vmem:[#allocation0 + $0x38] sm:$0x3] %v335_v0  ;;  %134 = vst [vmem:[#allocation0 + $0x30] sm:$0x3] %v336_v1  ;;  %v338_v3 = vld [vmem:[%s520_s0 + $0x8] sm:$0x3] }
   0x3   :  { %139 = vst [vmem:[#allocation0 + $0x28] sm:$0x3] %v337_v2  ;;  %v339_v4 = vld [vmem:[%s520_s0 + $0x6] sm:$0x3]  ;;  %v340_v5 = vld [vmem:[%s520_s0 + $0x4] sm:$0x3] }
   0x4   :  { %144 = vst [vmem:[#allocation0 + $0x20] sm:$0x3] %v338_v3  ;;  %149 = vst [vmem:[#allocation0 + $0x18] sm:$0x3] %v339_v4  ;;  %v341_v6 = vld [vmem:[%s520_s0 + $0x2] sm:$0x3] }
   0x5   :  { %154 = vst [vmem:[#allocation0 + $0x10] sm:$0x3] %v340_v5  ;;  %v159_v7 = vld [vmem:[%s520_s0] sm:$0x3]  ;;  %158 = vst [vmem:[#allocation0 + $0x8] sm:$0x3] %v341_v6 }
   0x6   :  { %160 = vst [vmem:[#allocation0] sm:$0x3] %v159_v7  ;;  %v327_v8 = vld [vmem:[%s520_s0 + $0x1e] sm:$0x3]  ;;  %v328_v9 = vld [vmem:[%s520_s0 + $0x1c] sm:$0x3] }
   0x7   :  { %89 = vst [vmem:[#allocation0 + $0x78] sm:$0x3] %v327_v8  ;;  %94 = vst [vmem:[#allocation0 + $0x70] sm:$0x3] %v328_v9  ;;  %v329_v10 = vld [vmem:[%s520_s0 + $0x1a] sm:$0x3] }
   0x8   :  { %v330_v11 = vld [vmem:[%s520_s0 + $0x18] sm:$0x3]  ;;  %v331_v12 = vld [vmem:[%s520_s0 + $0x16] sm:$0x3]  ;;  %99 = vst [vmem:[#allocation0 + $0x68] sm:$0x3] %v329_v10 }
   0x9   :  { %104 = vst [vmem:[#allocation0 + $0x60] sm:$0x3] %v330_v11  ;;  %109 = vst [vmem:[#allocation0 + $0x58] sm:$0x3] %v331_v12  ;;  %v332_v13 = vld [vmem:[%s520_s0 + $0x14] sm:$0x3] }
   0xa   :  { %v333_v14 = vld [vmem:[%s520_s0 + $0x12] sm:$0x3]  ;;  %v334_v15 = vld [vmem:[%s520_s0 + $0x10] sm:$0x3]  ;;  %114 = vst [vmem:[#allocation0 + $0x50] sm:$0x3] %v332_v13 }
   0xb   :  { %119 = vst [vmem:[#allocation0 + $0x48] sm:$0x3] %v333_v14  ;;  %124 = vst [vmem:[#allocation0 + $0x40] sm:$0x3] %v334_v15  ;;  %v319_v16 = vld [vmem:[%s520_s0 + $0x2e] sm:$0x3] }
   0xc   :  { %v320_v17 = vld [vmem:[%s520_s0 + $0x2c] sm:$0x3]  ;;  %v321_v18 = vld [vmem:[%s520_s0 + $0x2a] sm:$0x3]  ;;  %49 = vst [vmem:[#allocation0 + $0xb8] sm:$0x3] %v319_v16 }
   0xd   :  { %54 = vst [vmem:[#allocation0 + $0xb0] sm:$0x3] %v320_v17  ;;  %59 = vst [vmem:[#allocation0 + $0xa8] sm:$0x3] %v321_v18  ;;  %v322_v19 = vld [vmem:[%s520_s0 + $0x28] sm:$0x3] }
   0xe   :  { %v323_v20 = vld [vmem:[%s520_s0 + $0x26] sm:$0x3]  ;;  %v324_v21 = vld [vmem:[%s520_s0 + $0x24] sm:$0x3]  ;;  %64 = vst [vmem:[#allocation0 + $0xa0] sm:$0x3] %v322_v19 }
   0xf   :  { %69 = vst [vmem:[#allocation0 + $0x98] sm:$0x3] %v323_v20  ;;  %74 = vst [vmem:[#allocation0 + $0x90] sm:$0x3] %v324_v21  ;;  %v325_v22 = vld [vmem:[%s520_s0 + $0x22] sm:$0x3] }
  0x10   :  { %v326_v23 = vld [vmem:[%s520_s0 + $0x20] sm:$0x3]  ;;  %v311_v24 = vld [vmem:[%s520_s0 + $0x3e] sm:$0x3]  ;;  %79 = vst [vmem:[#allocation0 + $0x88] sm:$0x3] %v325_v22 }
  0x11   :  { %v197_v25 = vld [vmem:[#allocation0 + $0x1] ss:$8 sm:$0xf0]   ;;  %84 = vst [vmem:[#allocation0 + $0x80] sm:$0x3] %v326_v23  ;;  %vm213_vm4 = vcmask 1048320  }
  0x12   :  { %v203_v26 = vld [vmem:[#allocation0 + $0x1] ss:$8 sm:$0xf0]   ;;  %9 = vst [vmem:[#allocation0 + $0xf8] sm:$0x3] %v311_v24 }
  0x13   :  { %v195_v27 = vld [vmem:[#allocation0 + $0x1] ss:$8 sm:$0xf]   ;;  %v312_v31 = vld [vmem:[%s520_s0 + $0x3c] sm:$0x3] }
  0x14   :  { %v201_v28 = vld [vmem:[#allocation0 + $0x1] ss:$8 sm:$0xf]   ;;  %v199_v29 = vsel %vm163_vm0, %v197_v25, %v195_v27  ;;  %v313_v32 = vld [vmem:[%s520_s0 + $0x3a] sm:$0x3] }
  0x15   :  { %v205_v30 = vsel %vm163_vm0, %v203_v26, %v201_v28  ;;  %v314_v33 = vld [vmem:[%s520_s0 + $0x38] sm:$0x3]  ;;  %14 = vst [vmem:[#allocation0 + $0xf0] sm:$0x3] %v312_v31  ;;  %19 = vst [vmem:[#allocation0 + $0xe8] sm:$0x3] %v313_v32 }
  0x16   :  { %v207_v34 = vsel %vm206_vm1, %v205_v30, %v199_v29  ;;  %v240_v35 = vld [vmem:[#allocation0 + $0x41] ss:$8 sm:$0xf0]   ;;  %24 = vst [vmem:[#allocation0 + $0xe0] sm:$0x3] %v314_v33 }
  0x17   :  { %v246_v36 = vld [vmem:[#allocation0 + $0x41] ss:$8 sm:$0xf0]   ;;  %208 = vrot.lane.b32.xlu0 %v207_v34, %s353_s4  ;;  %v315_v41 = vld [vmem:[%s520_s0 + $0x36] sm:$0x3] }
  0x18   :  { %v238_v37 = vld [vmem:[#allocation0 + $0x41] ss:$8 sm:$0xf]   ;;  %v316_v42 = vld [vmem:[%s520_s0 + $0x34] sm:$0x3] }
  0x19   :  { %v244_v38 = vld [vmem:[#allocation0 + $0x41] ss:$8 sm:$0xf]   ;;  %v242_v39 = vsel %vm163_vm0, %v240_v35, %v238_v37  ;;  %v317_v43 = vld [vmem:[%s520_s0 + $0x32] sm:$0x3] }
  0x1a   :  { %v248_v40 = vsel %vm163_vm0, %v246_v36, %v244_v38  ;;  %v218_v45 = vld [vmem:[#allocation0 + $0x81] ss:$8 sm:$0xf0]   ;;  %29 = vst [vmem:[#allocation0 + $0xd8] sm:$0x3] %v315_v41 }
  0x1b   :  { %v250_v44 = vsel %vm206_vm1, %v248_v40, %v242_v39  ;;  %v224_v46 = vld [vmem:[#allocation0 + $0x81] ss:$8 sm:$0xf0]   ;;  %34 = vst [vmem:[#allocation0 + $0xd0] sm:$0x3] %v316_v42 }
  0x1c   :  { %39 = vst [vmem:[#allocation0 + $0xc8] sm:$0x3] %v317_v43  ;;  %251 = vrot.lane.b32.xlu1 %v250_v44, %s353_s4  ;;  %v216_v47 = vld [vmem:[#allocation0 + $0x81] ss:$8 sm:$0xf]  }
  0x1d   :  { %v222_v48 = vld [vmem:[#allocation0 + $0x81] ss:$8 sm:$0xf]   ;;  %v220_v49 = vsel %vm163_vm0, %v218_v45, %v216_v47  ;;  %v161_v52 = vld [vmem:[#allocation0] ss:$8 sm:$0xf]  }
  0x1e   :  { %v226_v50 = vsel %vm163_vm0, %v224_v46, %v222_v48  ;;  %v318_v51 = vld [vmem:[%s520_s0 + $0x30] sm:$0x3] }
  0x1f   :  { %v228_v53 = vsel %vm206_vm1, %v226_v50, %v220_v49  ;;  %44 = vst [vmem:[#allocation0 + $0xc0] sm:$0x3] %v318_v51  ;;  %v162_v54 = vld [vmem:[#allocation0] ss:$8 sm:$0xf0]  }
  0x20   :  { %229 = vrot.lane.b32.xlu0 %v228_v53, %s353_s4  ;;  %v164_v55 = vsel %vm163_vm0, %v162_v54, %v161_v52  ;;  %v168_v56 = vld [vmem:[#allocation0 + $0x40] ss:$8 sm:$0xf]   ;;  %v262_v62 = vld [vmem:[#allocation0 + $0xc1] ss:$8 sm:$0xf0]  }
  0x21   :  { %166 = vst.msk [vmem:[%s521_s1] sm:$0xff] %vm165_vm2, %v164_v55   ;;  %v170_v57 = vld [vmem:[#allocation0 + $0x40] ss:$8 sm:$0xf0]  }
  0x22   :  { %v172_v58 = vsel %vm163_vm0, %v170_v57, %v168_v56  ;;  %v177_v59 = vld [vmem:[#allocation0 + $0x80] ss:$8 sm:$0xf]   ;;  %v268_v63 = vld [vmem:[#allocation0 + $0xc1] ss:$8 sm:$0xf0]  }
  0x23   :  { %v179_v60 = vld [vmem:[#allocation0 + $0x80] ss:$8 sm:$0xf0]   ;;  %342 = vst.msk [vmem:[%s521_s1 + $0x10] sm:$0xff] %vm165_vm2, %v172_v58  }
  0x24   :  { %v181_v61 = vsel %vm163_vm0, %v179_v60, %v177_v59  ;;  %v188_v0 = vld [vmem:[#allocation0 + $0xc0] ss:$8 sm:$0xf0]  }
  0x25   :  { %343 = vst.msk [vmem:[%s521_s1 + $0x20] sm:$0xff] %vm165_vm2, %v181_v61  }
  0x26   :  { %v260_v1 = vld [vmem:[#allocation0 + $0xc1] ss:$8 sm:$0xf]   ;;  %v186_v5 = vld [vmem:[#allocation0 + $0xc0] ss:$8 sm:$0xf]  }
  0x27   :  { %v266_v2 = vld [vmem:[#allocation0 + $0xc1] ss:$8 sm:$0xf]   ;;  %v264_v3 = vsel %vm163_vm0, %v262_v62, %v260_v1  ;;  %v190_v7 = vsel %vm163_vm0, %v188_v0, %v186_v5 }
  0x28   :  { %v270_v4 = vsel %vm163_vm0, %v268_v63, %v266_v2  ;;  %344 = vst.msk [vmem:[%s521_s1 + $0x30] sm:$0xff] %vm165_vm2, %v190_v7  }
  0x29   :  { %v272_v6 = vsel %vm206_vm1, %v270_v4, %v264_v3 }
  0x2a   :  { %273 = vrot.lane.b32.xlu1 %v272_v6, %s353_s4 }
  0x89   :  { %v209_v8 = vpop.permute.xlu0 %208  }
  0x8a   :  { %345 = vst.msk [vmem:[%s521_s1 + $0x8] sm:$0xff] %vm210_vm3, %v209_v8  }
  0x8b   :  { %214 = vst.msk [vmem:[%s521_s1] sm:$0xff] %vm213_vm4, %v209_v8  }
  0x8e   :  { %v252_v9 = vpop.permute.xlu1 %251  }
  0x8f   :  { %348 = vst.msk [vmem:[%s521_s1 + $0x18] sm:$0xff] %vm210_vm3, %v252_v9  }
  0x90   :  { %349 = vst.msk [vmem:[%s521_s1 + $0x10] sm:$0xff] %vm213_vm4, %v252_v9  }
  0x92   :  { %v230_v10 = vpop.permute.xlu0 %229  }
  0x93   :  { %346 = vst.msk [vmem:[%s521_s1 + $0x28] sm:$0xff] %vm210_vm3, %v230_v10  }
  0x94   :  { %347 = vst.msk [vmem:[%s521_s1 + $0x20] sm:$0xff] %vm213_vm4, %v230_v10  }
  0x9c   :  { %v274_v11 = vpop.permute.xlu1 %273  }
  0x9d   :  { %350 = vst.msk [vmem:[%s521_s1 + $0x38] sm:$0xff] %vm210_vm3, %v274_v11  }
  0x9e   :  { %351 = vst.msk [vmem:[%s521_s1 + $0x30] sm:$0xff] %vm213_vm4, %v274_v11  }

// kernel: graph_encoder_causal_pred_forward.1
= control target key start
LH: loop header
LB: loop body
LE: loop exit
PB: predicated region body
PF: predicated region fallthrough
CT: control target
= control target key end

     0   :  { %v3828_v0 = vmov 0   ;;  %v3829_v3 = vmov 0.0   ;;  %vm5229_vm0 = vcmask 523264   ;;  %vm73_vm1 = vcmask 261120   ;;  %s3836_s22 = smov 106   ;;  %s3837_s24 = smov 104   ;;  %s5203_s5 = inlined_call_operand.vmem [shape: f32[32,1], index: 5, kind: input, shape index: {}]   ;;  %s5204_s4 = inlined_call_operand.vmem [shape: f32[32,1], index: 4, kind: input, shape index: {}]   ;;  %s5205_s0 = inlined_call_operand.vmem [shape: f32[32,192], index: 0, kind: input, shape index: {}]   ;;  %s5206_s1 = inlined_call_operand.vmem [shape: f32[32,192], index: 1, kind: input, shape index: {}]   ;;  %s5207_s6 = inlined_call_operand.vmem [shape: bf16[9,16,32], index: 6, kind: input, shape index: {}]   ;;  %s5208_s2 = inlined_call_operand.vmem [shape: s32[1,192], index: 2, kind: input, shape index: {}]   ;;  %s5209_s3 = inlined_call_operand.vmem [shape: s32[1,192], index: 3, kind: input, shape index: {}]   ;;  %s5210_s7 = inlined_call_operand.vmem [shape: f32[16,1], index: 7, kind: input, shape index: {}]   ;;  %s5211_s8 = inlined_call_operand.vmem [shape: f32[16,1], index: 8, kind: input, shape index: {}]   ;;  %s5212_s9 = inlined_call_operand.vmem [shape: bf16[9,16,16], index: 9, kind: input, shape index: {}]   ;;  %s5213_s10 = inlined_call_operand.vmem [shape: f32[16,1], index: 10, kind: input, shape index: {}]   ;;  %s5214_s11 = inlined_call_operand.vmem [shape: f32[16,1], index: 11, kind: input, shape index: {}]   ;;  %s5215_s12 = inlined_call_operand.vmem [shape: bf16[9,16,16], index: 12, kind: input, shape index: {}]   ;;  %s5216_s13 = inlined_call_operand.vmem [shape: f32[16,1], index: 13, kind: input, shape index: {}]   ;;  %s5217_s14 = inlined_call_operand.vmem [shape: f32[16,1], index: 14, kind: input, shape index: {}]   ;;  %s5218_s15 = inlined_call_operand.vmem [shape: bf16[16,16], index: 15, kind: input, shape index: {}]   ;;  %s5219_s16 = inlined_call_operand.vmem [shape: f32[16,1], index: 16, kind: input, shape index: {}]   ;;  %s5220_s17 = inlined_call_operand.vmem [shape: f32[16,1], index: 17, kind: input, shape index: {}]   ;;  %s5221_s19 = inlined_call_operand.<no memory space> [shape: f32[1,1], index: 19, kind: input, shape index: {}]   ;;  %s5222_s18 = inlined_call_operand.vmem [shape: f32[1,16], index: 18, kind: input, shape index: {}]   ;;  %s5223_s20 = inlined_call_operand.vmem [shape: f32[1,192], index: 20, kind: output, shape index: {}]  }
   0x1   :  { %5231 = sst [smem:[#allocation4_spill]] %s5203_s5  ;;  %3388 = vset.pattern.permute.xlu1 %v3828_v0  ;;  %3387 = vset.pattern.permute.xlu0 %v3828_v0  ;;  %79 = vst [vmem:[#allocation2 + $0x40] sm:$0xff] %v3829_v3  ;;  %72 = vst [vmem:[#allocation2 + $0x10] sm:$0xff] %v3829_v3  ;;  %vm391_vm8 = vcmask 211968   ;;  %vm323_vm12 = vcmask 228352   ;;  %vm560_vm15 = vcmask 195584  }
   0x2   :  { %5232 = sst [smem:[#allocation5_spill]] %s5204_s4  ;;  %77 = vst [vmem:[#allocation2 + $0x30] sm:$0xff] %v3829_v3  ;;  %81 = vst [vmem:[#allocation2 + $0x50] sm:$0xff] %v3829_v3  ;;  %463 = vmatprep.mubr.bf16.mxu0 %v3828_v0  ;;  %514 = vmatprep.mubr.bf16.mxu1 %v3828_v0  ;;  %s3835_s4 = smov 108  }
   0x3   :  { %5233 = sst [smem:[#allocation6_spill]] %s5205_s0  ;;  %85 = vst [vmem:[#allocation2 + $0x70] sm:$0xff] %v3829_v3  ;;  %s3838_s0 = smov 52  }
   0x4   :  { %5234 = sst [smem:[#allocation7_spill]] %s5206_s1  ;;  %s3839_s1 = smov 56  }
   0x5   :  { %5235 = sst [smem:[#allocation8_spill]] %s5207_s6  ;;  %s3840_s26 = smov 48  }
   0x6   :  { %5236 = sst [smem:[#allocation9_spill]] %s5223_s20  ;;  %s3834_s20 = smov 2  }
   0x7   :  { %s5237_s23 = sld [smem:[#allocation4_spill]]  ;;  %s3843_s27 = smov 88  }
   0x8   :  { %s5238_s25 = sld [smem:[#allocation5_spill]]  ;;  %s3844_s28 = smov 84  }
   0x9   :  { %s5239_s30 = sld [smem:[#allocation6_spill]]  ;;  %s3845_s6 = smov 80  }
   0xa   :  { %s5240_s5 = sld [smem:[#allocation7_spill]] }
   0xb   :  { %s5249_s29 = sld [smem:[#allocation8_spill]] }
   0xd   :  { %v223_v1 = vld [vmem:[%s5237_s23 + $0x10] sm:$0xff]  ;;  %v224_v4 = vld [vmem:[%s5237_s23 + $0x18] sm:$0xff]  ;;  %v222_v29 = vld [vmem:[%s5237_s23 + $0x8] sm:$0xff] }
   0xe   :  { %v191_v2 = vld [vmem:[%s5238_s25 + $0x10] sm:$0xff]  ;;  %237 = vperm.xlu1 %3388, %v223_v1   ;;  %v192_v5 = vld [vmem:[%s5238_s25 + $0x18] sm:$0xff]  ;;  %v190_v7 = vld [vmem:[%s5238_s25 + $0x8] sm:$0xff] }
   0xf   :  { %205 = vperm.xlu0 %3387, %v191_v2   ;;  %v88_v6 = vld [vmem:[%s5239_s30 + $0x8] sm:$0xff]  ;;  %v87_v8 = vld [vmem:[%s5239_s30] sm:$0xff]  ;;  %v89_v9 = vld [vmem:[%s5239_s30 + $0x10] sm:$0xff] }
  0x10   :  { %v90_v10 = vld [vmem:[%s5239_s30 + $0x18] sm:$0xff]  ;;  %v92_v11 = vld [vmem:[%s5239_s30 + $0x28] sm:$0xff]  ;;  %v95_v12 = vld [vmem:[%s5240_s5] sm:$0xff] }
  0x11   :  { %v96_v13 = vld [vmem:[%s5240_s5 + $0x8] sm:$0xff]  ;;  %v189_v14 = vld [vmem:[%s5238_s25] sm:$0xff]  ;;  %v97_v15 = vld [vmem:[%s5240_s5 + $0x10] sm:$0xff]  ;;  %v103_v22 = vadd.f32 %v95_v12, %v87_v8  ;;  %s3831_s25 = smov 28  }
  0x12   :  { %242 = vperm.xlu1 %3388, %v224_v4   ;;  %v98_v16 = vld [vmem:[%s5240_s5 + $0x18] sm:$0xff]  ;;  %v104_v17 = vadd.f32 %v96_v13, %v88_v6  ;;  %v100_v18 = vld [vmem:[%s5240_s5 + $0x28] sm:$0xff]  ;;  %v105_v23 = vadd.f32 %v97_v15, %v89_v9  ;;  %v91_v26 = vld [vmem:[%s5239_s30 + $0x20] sm:$0xff] }
  0x13   :  { %210 = vperm.xlu0 %3387, %v192_v5   ;;  %v106_v19 = vadd.f32 %v98_v16, %v90_v10  ;;  %v94_v20 = vld [vmem:[%s5239_s30 + $0x38] sm:$0xff]  ;;  %v108_v24 = vadd.f32 %v100_v18, %v92_v11  ;;  %v99_v27 = vld [vmem:[%s5240_s5 + $0x20] sm:$0xff]  ;;  %v93_v36 = vld [vmem:[%s5239_s30 + $0x30] sm:$0xff]  ;;  %s3832_s30 = smov 24  }
  0x14   :  { %v102_v21 = vld [vmem:[%s5240_s5 + $0x38] sm:$0xff]  ;;  %v121_v25 = vsel %vm5229_vm0, %v104_v17, 0.0  ;;  %v221_v30 = vld [vmem:[%s5237_s23] sm:$0xff]  ;;  %v107_v34 = vadd.f32 %v99_v27, %v91_v26  ;;  %v111_v35 = vadd.f32 %v105_v23, %v103_v22  ;;  %v101_v37 = vld [vmem:[%s5240_s5 + $0x30] sm:$0xff]  ;;  %s3830_s23 = smov 26   ;;  %s3833_s5 = smov 4  }
  0x15   :  { %v122_v28 = vsel %vm5229_vm0, %v106_v19, 0.0  ;;  %v110_v32 = vadd.f32 %v102_v21, %v94_v20  ;;  %v124_v33 = vsel %vm5229_vm0, %v108_v24, 0.0  ;;  %v109_v40 = vadd.f32 %v101_v37, %v93_v36 }
  0x16   :  { %200 = vperm.xlu1 %3388, %v190_v7   ;;  %v123_v31 = vadd.f32 %v122_v28, %v121_v25  ;;  %v112_v41 = vadd.f32 %v111_v35, %v107_v34 }
  0x17   :  { %195 = vperm.xlu0 %3387, %v189_v14   ;;  %v126_v39 = vsel %vm5229_vm0, %v110_v32, 0.0 }
  0x18   :  { %v125_v38 = vadd.f32 %v124_v33, %v123_v31  ;;  %v113_v43 = vadd.f32 %v112_v41, %v109_v40 }
  0x1a   :  { %232 = vperm.xlu1 %3388, %v222_v29   ;;  %v127_v42 = vadd.f32 %v126_v39, %v125_v38  ;;  %v114_v45 = vrot.slane %v113_v43, 4 }
  0x1b   :  { %227 = vperm.xlu0 %3387, %v221_v30  }
  0x1c   :  { %v128_v44 = vrot.slane %v127_v42, 4  ;;  %v115_v47 = vadd.f32 %v114_v45, %v113_v43 }
  0x1e   :  { %3395 = vrot.lane.b32.xlu1 %v3829_v3, %s3830_s23  ;;  %v129_v46 = vadd.f32 %v128_v44, %v127_v42  ;;  %v116_v49 = vrot.slane %v115_v47, 2 }
  0x1f   :  { %3390 = vrot.lane.b32.xlu0 %v3829_v3, %s3830_s23 }
  0x20   :  { %v130_v48 = vrot.slane %v129_v46, 2  ;;  %v117_v51 = vadd.f32 %v116_v49, %v115_v47 }
  0x22   :  { %3405 = vrot.lane.b32.xlu1 %v3829_v3, %s3832_s30  ;;  %v131_v50 = vadd.f32 %v130_v48, %v129_v46  ;;  %v118_v53 = vrot.slane %v117_v51, 1 }
  0x23   :  { %3400 = vrot.lane.b32.xlu0 %v3829_v3, %s3831_s25 }
  0x24   :  { %v132_v52 = vrot.slane %v131_v50, 1  ;;  %v119_v55 = vadd.f32 %v118_v53, %v117_v51 }
  0x26   :  { %3415 = vrot.lane.b32.xlu1 %v3829_v3, %s3832_s30  ;;  %v133_v54 = vadd.f32 %v132_v52, %v131_v50  ;;  %v135_v57 = vmul.f32 0.03125, %v119_v55 }
  0x27   :  { %3410 = vrot.lane.b32.xlu0 %v3829_v3, %s3831_s25 }
  0x28   :  { %v136_v56 = vmul.f32 0.03125, %v133_v54  ;;  %v137_v60 = vsub.f32 %v103_v22, %v135_v57  ;;  %v139_v61 = vsub.f32 %v105_v23, %v135_v57  ;;  %v141_v2 = vsub.f32 %v107_v34, %v135_v57 }
  0x29   :  { %v143_v9 = vsub.f32 %v109_v40, %v135_v57 }
  0x2a   :  { %3425 = vrot.lane.b32.xlu1 %v3829_v3, %s3834_s20  ;;  %v4057_v58 = vsub.f32 %v104_v17, %v136_v56  ;;  %v4059_v59 = vsub.f32 %v106_v19, %v136_v56  ;;  %v142_v62 = vsub.f32 %v108_v24, %v136_v56  ;;  %v147_v4 = vmul.f32 %v139_v61, %v139_v61 }
  0x2b   :  { %3420 = vrot.lane.b32.xlu0 %v3829_v3, %s3833_s5  ;;  %v144_v5 = vsub.f32 %v110_v32, %v136_v56  ;;  %v149_v10 = vmul.f32 %v141_v2, %v141_v2  ;;  %v151_v15 = vmul.f32 %v143_v9, %v143_v9 }
  0x2c   :  { %v146_v63 = vmul.f32 %v4057_v58, %v4057_v58  ;;  %v148_v1 = vmul.f32 %v4059_v59, %v4059_v59  ;;  %v150_v6 = vmul.f32 %v142_v62, %v142_v62 }
  0x2d   :  { %v152_v13 = vmul.f32 %v144_v5, %v144_v5 }
  0x2e   :  { %3435 = vrot.lane.b32.xlu1 %v3829_v3, %s3834_s20  ;;  %v162_v7 = vsel %vm5229_vm0, %v146_v63, 0.0  ;;  %v163_v8 = vsel %vm5229_vm0, %v148_v1, 0.0  ;;  %v165_v14 = vsel %vm5229_vm0, %v150_v6, 0.0 }
  0x2f   :  { %3430 = vrot.lane.b32.xlu0 %v3829_v3, %s3833_s5  ;;  %v145_v3 = vmul.f32 %v137_v60, %v137_v60  ;;  %v164_v12 = vadd.f32 %v163_v8, %v162_v7  ;;  %v167_v18 = vsel %vm5229_vm0, %v152_v13, 0.0 }
  0x31   :  { %v153_v11 = vadd.f32 %v147_v4, %v145_v3  ;;  %v166_v17 = vadd.f32 %v165_v14, %v164_v12 }
  0x33   :  { %v154_v16 = vadd.f32 %v153_v11, %v149_v10  ;;  %v168_v20 = vadd.f32 %v167_v18, %v166_v17 }
  0x35   :  { %v155_v19 = vadd.f32 %v154_v16, %v151_v15  ;;  %v169_v22 = vrot.slane %v168_v20, 4 }
  0x37   :  { %v156_v21 = vrot.slane %v155_v19, 4  ;;  %v170_v24 = vadd.f32 %v169_v22, %v168_v20 }
  0x39   :  { %v157_v23 = vadd.f32 %v156_v21, %v155_v19  ;;  %v171_v26 = vrot.slane %v170_v24, 2 }
  0x3b   :  { %v158_v25 = vrot.slane %v157_v23, 2  ;;  %v172_v28 = vadd.f32 %v171_v26, %v170_v24  ;;  %v4143_v26 = vld [vmem:[%s5209_s3] sm:$0x3] }
  0x3c   :  { %vm354_vm3 = vcmp.ge.s32.totalorder %v4143_v26, 2  ;;  %vm274_vm5 = vcmp.ge.s32.totalorder %v4143_v26, 4 }
  0x3d   :  { %v159_v27 = vadd.f32 %v158_v25, %v157_v23  ;;  %v173_v30 = vrot.slane %v172_v28, 1  ;;  %v4138_v25 = vld [vmem:[%s5208_s2] sm:$0x3] }
  0x3e   :  { %vm273_vm2 = vcmp.ge.s32.totalorder %v4138_v25, 2 }
  0x3f   :  { %v160_v29 = vrot.slane %v159_v27, 1  ;;  %v174_v32 = vadd.f32 %v173_v30, %v172_v28  ;;  %vm355_vm4 = vmand %vm273_vm2, %vm354_vm3 }
  0x40   :  { %vm275_vm6 = vmand %vm273_vm2, %vm274_vm5 }
  0x41   :  { %v161_v31 = vadd.f32 %v160_v29, %v159_v27  ;;  %v176_v34 = vmul.f32 0.03125, %v174_v32  ;;  %v277_v27 = vlaneseq }
  0x43   :  { %v175_v33 = vmul.f32 0.03125, %v161_v31  ;;  %v178_v36 = vadd.f32 1e-05, %v176_v34  ;;  %v4152_v30 = vshrl.u32 %v277_v27, 7  ;;  %v356_v34 = vsel %vm355_vm4, 1, %v3828_v0 }
  0x45   :  { %v177_v35 = vadd.f32 1e-05, %v175_v33  ;;  %v4161_v32 = vsub.s32 0, %v4152_v30  ;;  %v4164_v33 = vsub.s32 1, %v4152_v30 }
  0x47   :  { %3740 = vrsqrt.f32 %v177_v35 }
  0x48   :  { %3742 = vrsqrt.f32 %v178_v36  ;;  %v364_v36 = vrot.slane %v356_v34, %v4164_v33 }
  0x4a   :  { %vm4176_vm7 = vcmp.eq.s32.totalorder %v364_v36, 1 }
  0x4b   :  { %vm3110_vm10 = vmpackc.low %vm4176_vm7, %vm4176_vm7 }
  0x54   :  { %v3741_v37 = vpop.eup %3740 }
  0x55   :  { %v3743_v38 = vpop.eup %3742  ;;  %v185_v39 = vmul.f32 %v3741_v37, %v141_v2  ;;  %v187_v45 = vmul.f32 %v3741_v37, %v143_v9  ;;  %v183_v53 = vmul.f32 %v3741_v37, %v139_v61  ;;  %v181_v54 = vmul.f32 %v3741_v37, %v137_v60 }
  0x56   :  { %v186_v40 = vmul.f32 %v3743_v38, %v142_v62  ;;  %v188_v46 = vmul.f32 %v3743_v38, %v144_v5  ;;  %v184_v57 = vmul.f32 %v3743_v38, %v4059_v59  ;;  %v182_v62 = vmul.f32 %v3743_v38, %v4057_v58 }
  0x57   :  { %v360_v37 = vrot.slane %v356_v34, %v4161_v32 }
  0x59   :  { %vm4180_vm9 = vcmp.eq.s32.totalorder %v360_v37, 1 }
  0x5a   :  { %vm3113_vm11 = vmpackc.low %vm4180_vm9, %vm4180_vm9 }
  0x89   :  { %v238_v41 = vpop.permute.xlu1 %237 }
  0x8a   :  { %v206_v42 = vpop.permute.xlu0 %205 }
  0x8b   :  { %v217_v43 = vmul.f32 %v206_v42, %v185_v39  ;;  %v218_v44 = vmul.f32 %v206_v42, %v186_v40 }
  0x8d   :  { %v4069_v47 = vadd.f32 %v238_v41, %v217_v43  ;;  %v250_v48 = vadd.f32 %v238_v41, %v218_v44  ;;  %v243_v49 = vpop.permute.xlu1 %242 }
  0x8e   :  { %v211_v50 = vpop.permute.xlu0 %210 }
  0x8f   :  { %258 = vst.msk [vmem:[#allocation2 + $0x50] sm:$0xff] %vm5229_vm0, %v250_v48  ;;  %v219_v51 = vmul.f32 %v211_v50, %v187_v45  ;;  %v220_v52 = vmul.f32 %v211_v50, %v188_v46 }
  0x91   :  { %v4072_v55 = vadd.f32 %v243_v49, %v219_v51  ;;  %v252_v56 = vadd.f32 %v243_v49, %v220_v52  ;;  %v201_v63 = vpop.permute.xlu1 %200  ;;  %v276_v49 = vsel %vm275_vm6, 1, %v3828_v0 }
  0x92   :  { %v196_v1 = vpop.permute.xlu0 %195  ;;  %v215_v3 = vmul.f32 %v201_v63, %v183_v53  ;;  %v216_v4 = vmul.f32 %v201_v63, %v184_v57  ;;  %v284_v57 = vrot.slane %v276_v49, %v4164_v33 }
  0x93   :  { %260 = vst.msk [vmem:[#allocation2 + $0x70] sm:$0xff] %vm5229_vm0, %v252_v56  ;;  %v896_v2 = vpack.c.bf16 %v4072_v55, %v4069_v47  ;;  %v213_v5 = vmul.f32 %v196_v1, %v181_v54  ;;  %v214_v6 = vmul.f32 %v196_v1, %v182_v62  ;;  %v280_v62 = vrot.slane %v276_v49, %v4161_v32 }
  0x94   :  { %vm4214_vm13 = vcmp.eq.s32.totalorder %v284_v57, 1 }
  0x95   :  { %v233_v61 = vpop.permute.xlu1 %232  ;;  %vm4218_vm14 = vcmp.eq.s32.totalorder %v280_v62, 1 }
  0x96   :  { %v228_v60 = vpop.permute.xlu0 %227  ;;  %v4079_v7 = vld [vmem:[#allocation2 + $0x50] sm:$0xff]  ;;  %v4081_v8 = vadd.f32 %v233_v61, %v215_v3  ;;  %v248_v59 = vadd.f32 %v233_v61, %v216_v4  ;;  %vm3127_vm4 = vmpackc.low %vm4218_vm14, %vm4218_vm14  ;;  %vm804_vm14 = vcmask 15360  }
  0x97   :  { %v4083_v9 = vadd.f32 %v228_v60, %v213_v5  ;;  %v246_v58 = vadd.f32 %v228_v60, %v214_v6  ;;  %v3439_v10 = vpack.i.bf16 %v4079_v7, %v4069_v47  ;;  %v525_v5 = vsel %vm273_vm2, 1, %v3828_v0  ;;  %vm3124_vm2 = vmpackc.low %vm4214_vm13, %vm4214_vm13 }
  0x98   :  { %256 = vst.msk [vmem:[#allocation2 + $0x30] sm:$0xff] %vm5229_vm0, %v248_v59  ;;  %vm953_vm13 = vcmp.lt.s32.totalorder %v4138_v25, 6 }
  0x99   :  { %254 = vst.msk [vmem:[#allocation2 + $0x10] sm:$0xff] %vm5229_vm0, %v246_v58  ;;  %v894_v11 = vpack.c.bf16 %v4081_v8, %v4083_v9  ;;  %3440 = vrot.lane.b32.xlu0 %v3439_v10, %s3830_s23  ;;  %v4125_v20 = vpop.permute.xlu1 %3395 }
  0x9a   :  { %v4092_v12 = vld [vmem:[#allocation2 + $0x70] sm:$0xff]  ;;  %v3391_v19 = vpop.permute.xlu0 %3390  ;;  %v3398_v63 = vunpack.i.h.bf16 %v4125_v20  ;;  %v3397_v1 = vunpack.i.l.bf16 %v4125_v20 }
  0x9b   :  { %v3444_v13 = vpack.i.bf16 %v4092_v12, %v4072_v55  ;;  %v897_v14 = vpack.c.bf16 %v4092_v12, %v4079_v7  ;;  %v3393_v41 = vunpack.i.h.bf16 %v3391_v19  ;;  %v3392_v45 = vunpack.i.l.bf16 %v3391_v19  ;;  %v3723_v12 = vld [vmem:[%s5249_s29 + $0x20] sm:$0xff]  }
  0x9d   :  { %3445 = vrot.lane.b32.xlu1 %v3444_v13, %s3830_s23  ;;  %v4129_v22 = vpop.permute.xlu1 %3405 }
  0x9e   :  { %v4127_v21 = vpop.permute.xlu0 %3400  ;;  %v3407_v49 = vunpack.i.l.bf16 %v4129_v22 }
  0x9f   :  { %v4099_v15 = vld [vmem:[#allocation2 + $0x30] sm:$0xff]  ;;  %v3403_v58 = vunpack.i.h.bf16 %v4127_v21 }
  0xa0   :  { %v4101_v16 = vld [vmem:[#allocation2 + $0x10] sm:$0xff]  ;;  %v3454_v17 = vpack.i.bf16 %v4099_v15, %v4081_v8 }
  0xa1   :  { %v3449_v18 = vpack.i.bf16 %v4101_v16, %v4083_v9  ;;  %v4133_v24 = vpop.permute.xlu1 %3415  ;;  %v895_v7 = vpack.c.bf16 %v4099_v15, %v4101_v16  ;;  %v1176_v15 = vsel %vm953_vm13, 1, %v3828_v0 }
  0xa2   :  { %3455 = vrot.lane.b32.xlu0 %v3454_v17, %s3830_s23  ;;  %v4131_v23 = vpop.permute.xlu0 %3410  ;;  %v1184_v25 = vrot.slane %v1176_v15, %v4164_v33  ;;  %v1180_v8 = vrot.slane %v1176_v15, %v4161_v32 }
  0xa3   :  { %3450 = vrot.lane.b32.xlu1 %v3449_v18, %s3830_s23 }
  0xa5   :  { %v4149_v29 = vpop.permute.xlu1 %3425 }
  0xa6   :  { %3460 = vrot.lane.b32.xlu0 %v3439_v10, %s3831_s25  ;;  %v4145_v28 = vpop.permute.xlu0 %3420 }
  0xa7   :  { %3465 = vrot.lane.b32.xlu1 %v3444_v13, %s3831_s25 }
  0xa9   :  { %v4167_v35 = vpop.permute.xlu1 %3435 }
  0xaa   :  { %3475 = vrot.lane.b32.xlu0 %v3444_v13, %s3832_s30  ;;  %v4158_v31 = vpop.permute.xlu0 %3430 }
  0xab   :  { %3470 = vrot.lane.b32.xlu1 %v3439_v10, %s3832_s30 }
  0xae   :  { %3480 = vrot.lane.b32.xlu0 %v3449_v18, %s3831_s25 }
  0xaf   :  { %3485 = vrot.lane.b32.xlu1 %v3454_v17, %s3831_s25 }
  0xb2   :  { %3495 = vrot.lane.b32.xlu0 %v3454_v17, %s3832_s30 }
  0xb3   :  { %3490 = vrot.lane.b32.xlu1 %v3449_v18, %s3832_s30 }
  0xb6   :  { %3500 = vrot.lane.b32.xlu0 %v3439_v10, %s3833_s5 }
  0xb7   :  { %3505 = vrot.lane.b32.xlu1 %v3444_v13, %s3833_s5 }
  0xba   :  { %3515 = vrot.lane.b32.xlu0 %v3444_v13, %s3834_s20 }
  0xbb   :  { %3510 = vrot.lane.b32.xlu1 %v3439_v10, %s3834_s20 }
  0xbe   :  { %3520 = vrot.lane.b32.xlu0 %v3449_v18, %s3833_s5 }
  0xbf   :  { %3525 = vrot.lane.b32.xlu1 %v3454_v17, %s3833_s5 }
  0xc2   :  { %3535 = vrot.lane.b32.xlu0 %v3454_v17, %s3834_s20 }
  0xc3   :  { %3530 = vrot.lane.b32.xlu1 %v3449_v18, %s3834_s20 }
  0xc6   :  { %3540 = vrot.lane.b32.xlu0 %v3439_v10, %s3835_s4 }
  0xc7   :  { %3545 = vrot.lane.b32.xlu1 %v3444_v13, %s3835_s4 }
  0xca   :  { %3550 = vrot.lane.b32.xlu0 %v3449_v18, %s3835_s4 }
  0xcb   :  { %3555 = vrot.lane.b32.xlu1 %v3454_v17, %s3835_s4 }
  0xce   :  { %3560 = vrot.lane.b32.xlu0 %v3439_v10, %s3836_s22 }
  0xcf   :  { %3565 = vrot.lane.b32.xlu1 %v3444_v13, %s3836_s22 }
  0xd2   :  { %3570 = vrot.lane.b32.xlu0 %v3439_v10, %s3837_s24  ;;  %v3402_v10 = vunpack.i.l.bf16 %v4127_v21 }
  0xd3   :  { %3575 = vrot.lane.b32.xlu1 %v3444_v13, %s3837_s24 }
  0xd6   :  { %3580 = vrot.lane.b32.xlu0 %v3449_v18, %s3836_s22 }
  0xd7   :  { %3585 = vrot.lane.b32.xlu1 %v3454_v17, %s3836_s22 }
  0xda   :  { %3590 = vrot.lane.b32.xlu0 %v3449_v18, %s3837_s24 }
  0xdb   :  { %3595 = vrot.lane.b32.xlu1 %v3454_v17, %s3837_s24 }
 0x10b   :  { %v3441_v38 = vpop.permute.xlu0 %3440 }
 0x10c   :  { %v3443_v39 = vunpack.i.h.bf16 %v3441_v38  ;;  %v3442_v40 = vunpack.i.l.bf16 %v3441_v38 }
 0x10e   :  { %v397_v50 = vsel %vm391_vm8, %v3442_v40, %v3443_v39  ;;  %v396_v52 = vsel %vm391_vm8, %v3392_v45, %v3442_v40  ;;  %v529_v39 = vrot.slane %v525_v5, %v4161_v32  ;;  %v533_v40 = vrot.slane %v525_v5, %v4164_v33 }
 0x10f   :  { %v3446_v42 = vpop.permute.xlu1 %3445  ;;  %v3413_v5 = vunpack.i.h.bf16 %v4131_v23 }
 0x110   :  { %v3448_v46 = vunpack.i.h.bf16 %v3446_v42  ;;  %v3447_v48 = vunpack.i.l.bf16 %v3446_v42  ;;  %vm4253_vm6 = vcmp.eq.s32.totalorder %v533_v40, 1  ;;  %vm4257_vm7 = vcmp.eq.s32.totalorder %v529_v39, 1 }
 0x111   :  { %vm3143_vm9 = vmpackc.low %vm4257_vm7, %vm4257_vm7  ;;  %v3417_v40 = vunpack.i.l.bf16 %v4133_v24 }
 0x112   :  { %v399_v51 = vsel %vm391_vm8, %v3447_v48, %v3448_v46  ;;  %v398_v53 = vsel %vm391_vm8, %v3393_v41, %v3447_v48  ;;  %v3408_v48 = vunpack.i.h.bf16 %v4129_v22 }
 0x113   :  { %v3111_v54 = vpack.c.bf16 %v399_v51, %v397_v50  ;;  %v3114_v56 = vpack.c.bf16 %v398_v53, %v396_v52  ;;  %v3719_v50 = vld [vmem:[%s5249_s29 + $0x8] sm:$0xff]  }
 0x114   :  { %v3456_v3 = vpop.permute.xlu0 %3455 }
 0x115   :  { %3112 = vmatprep.subr.msk.bf16.mxu0 %vm3110_vm10, %v3111_v54  ;;  %v3451_v4 = vpop.permute.xlu1 %3450  ;;  %v3458_v6 = vunpack.i.h.bf16 %v3456_v3  ;;  %v3457_v61 = vunpack.i.l.bf16 %v3456_v3 }
 0x116   :  { %v3453_v60 = vunpack.i.h.bf16 %v3451_v4  ;;  %v3452_v59 = vunpack.i.l.bf16 %v3451_v4  ;;  %3115 = vmatpush1.bf16.msk.msra.mxu0 %vm3113_vm11, %v3114_v56 }
 0x117   :  { %v394_v18 = vsel %vm391_vm8, %v3398_v63, %v3457_v61  ;;  %v395_v19 = vsel %vm391_vm8, %v3457_v61, %v3458_v6  ;;  %v647_v6 = vsel %vm274_vm5, 1, %v3828_v0 }
 0x118   :  { %v392_v20 = vsel %vm391_vm8, %v3397_v1, %v3452_v59  ;;  %v393_v34 = vsel %vm391_vm8, %v3452_v59, %v3453_v60  ;;  %v3461_v38 = vpop.permute.xlu0 %3460  ;;  %vm3140_vm8 = vmpackc.low %vm4253_vm6, %vm4253_vm6 }
 0x119   :  { %v3117_v36 = vpack.c.bf16 %v395_v19, %v393_v34  ;;  %v3120_v37 = vpack.c.bf16 %v394_v18, %v392_v20  ;;  %v3466_v21 = vpop.permute.xlu1 %3465  ;;  %v3463_v41 = vunpack.i.h.bf16 %v3461_v38  ;;  %v3462_v42 = vunpack.i.l.bf16 %v3461_v38 }
 0x11a   :  { %v3468_v45 = vunpack.i.h.bf16 %v3466_v21  ;;  %v3467_v46 = vunpack.i.l.bf16 %v3466_v21  ;;  %v3418_v18 = vunpack.i.h.bf16 %v4133_v24 }
 0x11b   :  { %3118 = vmatprep.subr.msk.bf16.mxu0 %vm3110_vm10, %v3117_v36  ;;  %v329_v51 = vsel %vm323_vm12, %v3462_v42, %v3463_v41  ;;  %v328_v43 = vsel %vm323_vm12, %v3402_v10, %v3462_v42  ;;  %v3412_v10 = vunpack.i.l.bf16 %v4131_v23  ;;  %v651_v23 = vrot.slane %v647_v6, %v4161_v32 }
 0x11c   :  { %3121 = vmatpush1.bf16.msk.msra.mxu0 %vm3113_vm11, %v3120_v37  ;;  %v331_v22 = vsel %vm323_vm12, %v3467_v46, %v3468_v45  ;;  %v330_v52 = vsel %vm323_vm12, %v3403_v58, %v3467_v46  ;;  %v3476_v53 = vpop.permute.xlu0 %3475  ;;  %v655_v41 = vrot.slane %v647_v6, %v4164_v33  ;;  %v769_v42 = vsel %vm354_vm3, 1, %v3828_v0 }
 0x11d   :  { %v3471_v54 = vpop.permute.xlu1 %3470  ;;  %v3125_v56 = vpack.c.bf16 %v331_v22, %v329_v51  ;;  %v3128_v44 = vpack.c.bf16 %v330_v52, %v328_v43  ;;  %v3478_v63 = vunpack.i.h.bf16 %v3476_v53  ;;  %v3477_v1 = vunpack.i.l.bf16 %v3476_v53 }
 0x11e   :  { %v3473_v3 = vunpack.i.h.bf16 %v3471_v54  ;;  %v3472_v4 = vunpack.i.l.bf16 %v3471_v54  ;;  %vm5230_vm10 = vcmask 31744   ;;  %vm4316_vm11 = vcmp.eq.s32.totalorder %v655_v41, 1 }
 0x11f   :  { %3126 = vmatprep.subr.msk.bf16.mxu1 %vm3124_vm2, %v3125_v56  ;;  %3122 = vmatmul.mubr.msk.bf16.vlgmr.msra.gmra.mxu0 %vm73_vm1, %v3719_v50  ;;  %v567_v61 = vsel %vm560_vm15, %v3408_v48, %v3477_v1  ;;  %v568_v60 = vsel %vm560_vm15, %v3477_v1, %v3478_v63  ;;  %v3422_v50 = vunpack.i.l.bf16 %v4145_v28 }
 0x120   :  { %v565_v59 = vsel %vm560_vm15, %v3407_v49, %v3472_v4  ;;  %v566_v58 = vsel %vm560_vm15, %v3472_v4, %v3473_v3  ;;  %3129 = vmatpush1.bf16.msk.msra.mxu1 %vm3127_vm4, %v3128_v44  ;;  %v3481_v34 = vpop.permute.xlu0 %3480  ;;  %632 = vmatprep.mubr.bf16.mxu0 %v3828_v0  ;;  %v3423_v49 = vunpack.i.h.bf16 %v4145_v28  ;;  %v3720_v28 = vld [vmem:[%s5249_s29] sm:$0xff]   ;;  %v777_v3 = vrot.slane %v769_v42, %v4164_v33 }
 0x121   :  { %v3141_v19 = vpack.c.bf16 %v568_v60, %v566_v58  ;;  %v3144_v20 = vpack.c.bf16 %v567_v61, %v565_v59  ;;  %v3486_v36 = vpop.permute.xlu1 %3485  ;;  %v3483_v37 = vunpack.i.h.bf16 %v3481_v34  ;;  %v3482_v38 = vunpack.i.l.bf16 %v3481_v34 }
 0x122   :  { %v3488_v21 = vunpack.i.h.bf16 %v3486_v36  ;;  %v3487_v39 = vunpack.i.l.bf16 %v3486_v36  ;;  %v3428_v36 = vunpack.i.h.bf16 %v4149_v29  ;;  %vm4377_vm6 = vcmp.eq.s32.totalorder %v777_v3, 1 }
 0x123   :  { %3142 = vmatprep.subr.msk.bf16.mxu0 %vm3140_vm8, %v3141_v19  ;;  %v324_v45 = vsel %vm323_vm12, %v3412_v10, %v3482_v38  ;;  %v325_v46 = vsel %vm323_vm12, %v3482_v38, %v3483_v37  ;;  %v773_v10 = vrot.slane %v769_v42, %v4161_v32  ;;  %v3427_v37 = vunpack.i.l.bf16 %v4149_v29  ;;  %v3721_v29 = vld [vmem:[%s5249_s29 + $0x10] sm:$0xff]  }
 0x124   :  { %v326_v24 = vsel %vm323_vm12, %v3413_v5, %v3487_v39  ;;  %v327_v48 = vsel %vm323_vm12, %v3487_v39, %v3488_v21  ;;  %3145 = vmatpush1.bf16.msk.msra.mxu0 %vm3143_vm9, %v3144_v20  ;;  %v3496_v43 = vpop.permute.xlu0 %3495  ;;  %vm4323_vm12 = vcmp.eq.s32.totalorder %v651_v23, 1 }
 0x125   :  { %v3131_v51 = vpack.c.bf16 %v327_v48, %v325_v46  ;;  %v3134_v22 = vpack.c.bf16 %v326_v24, %v324_v45  ;;  %v3491_v52 = vpop.permute.xlu1 %3490  ;;  %v3498_v53 = vunpack.i.h.bf16 %v3496_v43  ;;  %v3497_v54 = vunpack.i.l.bf16 %v3496_v43 }
 0x126   :  { %v3493_v56 = vunpack.i.h.bf16 %v3491_v52  ;;  %v3492_v44 = vunpack.i.l.bf16 %v3491_v52  ;;  %vm4381_vm7 = vcmp.eq.s32.totalorder %v773_v10, 1  ;;  %v3437_v10 = vunpack.i.l.bf16 %v4167_v35 }
 0x127   :  { %3132 = vmatprep.subr.msk.bf16.mxu1 %vm3124_vm2, %v3131_v51  ;;  %v563_v4 = vsel %vm560_vm15, %v3418_v18, %v3497_v54  ;;  %v564_v13 = vsel %vm560_vm15, %v3497_v54, %v3498_v53  ;;  %vm954_vm2 = vmand %vm953_vm13, %vm274_vm5  ;;  %v3433_v54 = vunpack.i.h.bf16 %v4158_v31 }
 0x128   :  { %v561_v5 = vsel %vm560_vm15, %v3417_v40, %v3492_v44  ;;  %v562_v6 = vsel %vm560_vm15, %v3492_v44, %v3493_v56  ;;  %3135 = vmatpush1.bf16.msk.msra.mxu1 %vm3127_vm4, %v3134_v22  ;;  %v3501_v59 = vpop.permute.xlu0 %3500  ;;  %vm4349_vm15 = vmpackc.low %vm4316_vm11, %vm4316_vm11  ;;  %v955_v51 = vsel %vm954_vm2, 1, %v3828_v0  ;;  %v3432_v56 = vunpack.i.l.bf16 %v4158_v31 }
 0x129   :  { %v3147_v61 = vpack.c.bf16 %v564_v13, %v562_v6  ;;  %v3150_v60 = vpack.c.bf16 %v563_v4, %v561_v5  ;;  %v3506_v58 = vpop.permute.xlu1 %3505  ;;  %v3503_v18 = vunpack.i.h.bf16 %v3501_v59  ;;  %v3502_v19 = vunpack.i.l.bf16 %v3501_v59  ;;  %vm4373_vm4 = vmpackc.low %vm4323_vm12, %vm4323_vm12 }
 0x12a   :  { %v3508_v20 = vunpack.i.h.bf16 %v3506_v58  ;;  %v3507_v34 = vunpack.i.l.bf16 %v3506_v58  ;;  %v3438_v6 = vunpack.i.h.bf16 %v4167_v35  ;;  %v963_v31 = vrot.slane %v955_v51, %v4164_v33  ;;  %vm1065_vm11 = vmand %vm953_vm13, %vm354_vm3 }
 0x12b   :  { %3148 = vmatprep.subr.msk.bf16.mxu0 %vm3140_vm8, %v3147_v61  ;;  %3136 = vmatmul.mubr.msk.bf16.vlgmr.msra.gmra.mxu1 %vm73_vm1, %v3720_v28  ;;  %v687_v38 = vsel %vm5230_vm10, %v3422_v50, %v3502_v19  ;;  %v688_v57 = vsel %vm5230_vm10, %v3502_v19, %v3503_v18  ;;  %vm3172_vm8 = vmpackc.low %vm4377_vm6, %vm4377_vm6  ;;  %v1066_v35 = vsel %vm1065_vm11, 1, %v3828_v0  ;;  %vm982_vm12 = vcmask 883712  }
 0x12c   :  { %v689_v21 = vsel %vm5230_vm10, %v3423_v49, %v3507_v34  ;;  %v690_v39 = vsel %vm5230_vm10, %v3507_v34, %v3508_v20  ;;  %3151 = vmatpush1.bf16.msk.msra.mxu0 %vm3143_vm9, %v3150_v60  ;;  %v3516_v41 = vpop.permute.xlu0 %3515  ;;  %754 = vmatprep.mubr.bf16.mxu1 %v3828_v0  ;;  %vm3175_vm9 = vmpackc.low %vm4381_vm7, %vm4381_vm7  ;;  %vm4432_vm3 = vcmp.eq.s32.totalorder %v963_v31, 1  ;;  %v1070_v46 = vrot.slane %v1066_v35, %v4161_v32 }
 0x12d   :  { %v3157_v40 = vpack.c.bf16 %v690_v39, %v688_v57  ;;  %v3160_v23 = vpack.c.bf16 %v689_v21, %v687_v38  ;;  %v3511_v42 = vpop.permute.xlu1 %3510  ;;  %v3518_v24 = vunpack.i.h.bf16 %v3516_v41  ;;  %v3517_v48 = vunpack.i.l.bf16 %v3516_v41  ;;  %v3722_v21 = vld [vmem:[%s5249_s29 + $0x18] sm:$0xff]  }
 0x12e   :  { %v3513_v49 = vunpack.i.h.bf16 %v3511_v42  ;;  %v3512_v50 = vunpack.i.l.bf16 %v3511_v42  ;;  %vm1093_vm7 = vcmask 867328  }
 0x12f   :  { %3158 = vmatprep.subr.msk.bf16.mxu1 %vm4349_vm15, %v3157_v40  ;;  %3152 = vmatmul.mubr.msk.bf16.vlgmr.msra.gmra.mxu0 %vm73_vm1, %v3721_v29  ;;  %v811_v22 = vsel %vm804_vm14, %v3428_v36, %v3517_v48  ;;  %v812_v43 = vsel %vm804_vm14, %v3517_v48, %v3518_v24  ;;  %v959_v36 = vrot.slane %v955_v51, %v4161_v32 }
 0x130   :  { %v809_v52 = vsel %vm804_vm14, %v3427_v37, %v3512_v50  ;;  %v810_v53 = vsel %vm804_vm14, %v3512_v50, %v3513_v49  ;;  %3161 = vmatpush1.bf16.msk.msra.mxu1 %vm4373_vm4, %v3160_v23  ;;  %v3521_v28 = vpop.permute.xlu0 %3520  ;;  %876 = vmatprep.mubr.bf16.mxu0 %v3828_v0 }
 0x131   :  { %v3173_v44 = vpack.c.bf16 %v812_v43, %v810_v53  ;;  %v3176_v63 = vpack.c.bf16 %v811_v22, %v809_v52  ;;  %v3526_v1 = vpop.permute.xlu1 %3525  ;;  %v3523_v3 = vunpack.i.h.bf16 %v3521_v28  ;;  %v3522_v4 = vunpack.i.l.bf16 %v3521_v28 }
 0x132   :  { %v3528_v13 = vunpack.i.h.bf16 %v3526_v1  ;;  %v3527_v5 = vunpack.i.l.bf16 %v3526_v1  ;;  %vm4446_vm2 = vcmp.eq.s32.totalorder %v959_v36, 1 }
 0x133   :  { %3174 = vmatprep.subr.msk.bf16.mxu0 %vm3172_vm8, %v3173_v44  ;;  %v683_v61 = vsel %vm5230_vm10, %v3432_v56, %v3522_v4  ;;  %v684_v60 = vsel %vm5230_vm10, %v3522_v4, %v3523_v3  ;;  %vm3195_vm6 = vmpackc.low %vm4446_vm2, %vm4446_vm2 }
 0x134   :  { %v685_v59 = vsel %vm5230_vm10, %v3433_v54, %v3527_v5  ;;  %v686_v58 = vsel %vm5230_vm10, %v3527_v5, %v3528_v13  ;;  %3177 = vmatpush1.bf16.msk.msra.mxu0 %vm3175_vm9, %v3176_v63  ;;  %v3536_v20 = vpop.permute.xlu0 %3535 }
 0x135   :  { %v3163_v18 = vpack.c.bf16 %v686_v58, %v684_v60  ;;  %v3166_v19 = vpack.c.bf16 %v685_v59, %v683_v61  ;;  %v3531_v34 = vpop.permute.xlu1 %3530  ;;  %v3538_v37 = vunpack.i.h.bf16 %v3536_v20  ;;  %v3537_v29 = vunpack.i.l.bf16 %v3536_v20 }
 0x136   :  { %v3533_v38 = vunpack.i.h.bf16 %v3531_v34  ;;  %v3532_v57 = vunpack.i.l.bf16 %v3531_v34 }
 0x137   :  { %3164 = vmatprep.subr.msk.bf16.mxu1 %vm4349_vm15, %v3163_v18  ;;  %v807_v40 = vsel %vm804_vm14, %v3438_v6, %v3537_v29  ;;  %v808_v23 = vsel %vm804_vm14, %v3537_v29, %v3538_v37 }
 0x138   :  { %v805_v41 = vsel %vm804_vm14, %v3437_v10, %v3532_v57  ;;  %v806_v42 = vsel %vm804_vm14, %v3532_v57, %v3533_v38  ;;  %3167 = vmatpush1.bf16.msk.msra.mxu1 %vm4373_vm4, %v3166_v19  ;;  %v3541_v49 = vpop.permute.xlu0 %3540  ;;  %vm3192_vm14 = vmpackc.low %vm4432_vm3, %vm4432_vm3  ;;  %v3725_v10 = vld [vmem:[%s5249_s29 + $0x30] sm:$0xff]   ;;  %vm4535_vm3 = vcmp.eq.s32.totalorder %v1184_v25, 1 }
 0x139   :  { %v3179_v24 = vpack.c.bf16 %v808_v23, %v806_v42  ;;  %v3182_v48 = vpack.c.bf16 %v807_v40, %v805_v41  ;;  %v3546_v50 = vpop.permute.xlu1 %3545  ;;  %918 = vmatprep.subr.bf16.mxu1 %v897_v14  ;;  %v3543_v22 = vunpack.i.h.bf16 %v3541_v49  ;;  %v3542_v43 = vunpack.i.l.bf16 %v3541_v49  ;;  %vm3224_vm2 = vmpackc.low %vm4535_vm3, %vm4535_vm3 }
 0x13a   :  { %v3548_v52 = vunpack.i.h.bf16 %v3546_v50  ;;  %v3547_v53 = vunpack.i.l.bf16 %v3546_v50  ;;  %v1074_v14 = vrot.slane %v1066_v35, %v4164_v33 }
 0x13b   :  { %3168 = vmatmul.mubr.msk.bf16.vlgmr.msra.gmra.mxu1 %vm73_vm1, %v3722_v21  ;;  %3180 = vmatprep.subr.msk.bf16.mxu0 %vm3172_vm8, %v3179_v24  ;;  %v985_v54 = vsel %vm982_vm12, %v3542_v43, %v3543_v22  ;;  %vm4508_vm8 = vcmp.eq.s32.totalorder %v1070_v46, 1 }
 0x13c   :  { %v3193_v56 = vpack.c.bf16 %v3548_v52, %v3543_v22  ;;  %v986_v62 = vsel %vm982_vm12, %v3547_v53, %v3548_v52  ;;  %3183 = vmatpush1.bf16.msk.msra.mxu0 %vm3175_vm9, %v3182_v48  ;;  %919 = vmatpush1.bf16.msra.mxu1 %v896_v2  ;;  %v3551_v44 = vpop.permute.xlu0 %3550  ;;  %v3724_v2 = vld [vmem:[%s5249_s29 + $0x28] sm:$0xff]   ;;  %vm4503_vm13 = vcmp.eq.s32.totalorder %v1074_v14, 1  ;;  %vm3211_vm11 = vmpackc.low %vm4508_vm8, %vm4508_vm8 }
 0x13d   :  { %v3196_v16 = vpack.c.bf16 %v986_v62, %v985_v54  ;;  %v3556_v63 = vpop.permute.xlu1 %3555  ;;  %920 = vmatprep.subr.bf16.mxu1 %v895_v7  ;;  %938 = vmatprep.mubr.bf16.mxu1 %v3828_v0  ;;  %v3553_v28 = vunpack.i.h.bf16 %v3551_v44  ;;  %v3552_v1 = vunpack.i.l.bf16 %v3551_v44  ;;  %vm3208_vm9 = vmpackc.low %vm4503_vm13, %vm4503_vm13 }
 0x13e   :  { %v3558_v47 = vunpack.i.h.bf16 %v3556_v63  ;;  %v3557_v55 = vunpack.i.l.bf16 %v3556_v63  ;;  %3194 = vmatprep.subr.msk.bf16.mxu0 %vm3192_vm14, %v3193_v56 }
 0x13f   :  { %3184 = vmatmul.mubr.msk.bf16.vlgmr.msra.gmra.mxu0 %vm73_vm1, %v3723_v12  ;;  %v983_v3 = vsel %vm982_vm12, %v3552_v1, %v3553_v28  ;;  %v3727_v1 = vld [vmem:[%s5249_s29 + $0x40] sm:$0xff]  }
 0x140   :  { %v3199_v4 = vpack.c.bf16 %v3558_v47, %v3553_v28  ;;  %v984_v13 = vsel %vm982_vm12, %v3557_v55, %v3558_v47  ;;  %921 = vmatpush1.bf16.msra.mxu1 %v894_v11  ;;  %3197 = vmatpush1.bf16.msk.msra.mxu0 %vm3195_vm6, %v3196_v16  ;;  %v3561_v31 = vpop.permute.xlu0 %3560  ;;  %vm1203_vm12 = vcmask 850944   ;;  %v3726_v16 = vld [vmem:[%s5249_s29 + $0x38] sm:$0xff]  }
 0x141   :  { %v3202_v6 = vpack.c.bf16 %v984_v13, %v983_v3  ;;  %v3566_v61 = vpop.permute.xlu1 %3565  ;;  %1050 = vmatprep.mubr.bf16.mxu0 %v3828_v0  ;;  %v3563_v9 = vunpack.i.h.bf16 %v3561_v31  ;;  %v3562_v11 = vunpack.i.l.bf16 %v3561_v31 }
 0x142   :  { %v3568_v59 = vunpack.i.h.bf16 %v3566_v61  ;;  %v3567_v58 = vunpack.i.l.bf16 %v3566_v61  ;;  %3200 = vmatprep.subr.msk.bf16.mxu0 %vm3192_vm14, %v3199_v4  ;;  %vm4540_vm14 = vcmp.eq.s32.totalorder %v1180_v8, 1 }
 0x143   :  { %3188 = vmatmul.mubr.msk.bf16.vlgmr.msra.gmra.mxu1 %vm73_vm1, %v3724_v2  ;;  %v1096_v18 = vsel %vm1093_vm7, %v3562_v11, %v3563_v9 }
 0x144   :  { %v3209_v19 = vpack.c.bf16 %v3568_v59, %v3563_v9  ;;  %v1097_v20 = vsel %vm1093_vm7, %v3567_v58, %v3568_v59  ;;  %3203 = vmatpush1.bf16.msk.msra.mxu0 %vm3195_vm6, %v3202_v6  ;;  %1161 = vmatprep.mubr.bf16.mxu1 %v3828_v0  ;;  %v3571_v37 = vpop.permute.xlu0 %3570  ;;  %vm3227_vm6 = vmpackc.low %vm4540_vm14, %vm4540_vm14  ;;  %vm1542_vm14 = vcmask 424960  }
 0x145   :  { %v3212_v36 = vpack.c.bf16 %v1097_v20, %v1096_v18  ;;  %v3576_v29 = vpop.permute.xlu1 %3575  ;;  %v3573_v57 = vunpack.i.h.bf16 %v3571_v37  ;;  %v3572_v21 = vunpack.i.l.bf16 %v3571_v37 }
 0x146   :  { %v3578_v39 = vunpack.i.h.bf16 %v3576_v29  ;;  %v3577_v35 = vunpack.i.l.bf16 %v3576_v29  ;;  %3210 = vmatprep.subr.msk.bf16.mxu1 %vm3208_vm9, %v3209_v19 }
 0x147   :  { %3204 = vmatmul.mubr.msk.bf16.vlgmr.msra.gmra.mxu0 %vm73_vm1, %v3725_v10  ;;  %3213 = vmatpush1.bf16.msk.msra.mxu1 %vm3211_vm11, %v3212_v36  ;;  %v1206_v40 = vsel %vm1203_vm12, %v3572_v21, %v3573_v57 }
 0x148   :  { %v3225_v23 = vpack.c.bf16 %v3578_v39, %v3573_v57  ;;  %v1207_v41 = vsel %vm1203_vm12, %v3577_v35, %v3578_v39  ;;  %1271 = vmatprep.mubr.bf16.mxu0 %v3828_v0  ;;  %v3581_v24 = vpop.permute.xlu0 %3580 }
 0x149   :  { %v3228_v42 = vpack.c.bf16 %v1207_v41, %v1206_v40  ;;  %v3586_v48 = vpop.permute.xlu1 %3585  ;;  %v3583_v49 = vunpack.i.h.bf16 %v3581_v24  ;;  %v3582_v50 = vunpack.i.l.bf16 %v3581_v24 }
 0x14a   :  { %v3588_v51 = vunpack.i.h.bf16 %v3586_v48  ;;  %v3587_v22 = vunpack.i.l.bf16 %v3586_v48  ;;  %3226 = vmatprep.subr.msk.bf16.mxu0 %vm3224_vm2, %v3225_v23 }
 0x14b   :  { %3229 = vmatpush1.bf16.msk.msra.mxu0 %vm3227_vm6, %v3228_v42  ;;  %v1094_v43 = vsel %vm1093_vm7, %v3582_v50, %v3583_v49 }
 0x14c   :  { %v3215_v52 = vpack.c.bf16 %v3588_v51, %v3583_v49  ;;  %v1095_v53 = vsel %vm1093_vm7, %v3587_v22, %v3588_v51  ;;  %v3591_v12 = vpop.permute.xlu0 %3590 }
 0x14d   :  { %v3218_v7 = vpack.c.bf16 %v1095_v53, %v1094_v43  ;;  %v3596_v14 = vpop.permute.xlu1 %3595  ;;  %v3593_v54 = vunpack.i.h.bf16 %v3591_v12  ;;  %v3592_v56 = vunpack.i.l.bf16 %v3591_v12 }
 0x14e   :  { %v3598_v62 = vunpack.i.h.bf16 %v3596_v14  ;;  %v3597_v15 = vunpack.i.l.bf16 %v3596_v14  ;;  %3216 = vmatprep.subr.msk.bf16.mxu1 %vm3208_vm9, %v3215_v52 }
 0x14f   :  { %3219 = vmatpush1.bf16.msk.msra.mxu1 %vm3211_vm11, %v3218_v7  ;;  %v1204_v44 = vsel %vm1203_vm12, %v3592_v56, %v3593_v54 }
 0x150   :  { %v3231_v63 = vpack.c.bf16 %v3598_v62, %v3593_v54  ;;  %v1205_v46 = vsel %vm1203_vm12, %v3597_v15, %v3598_v62 }
 0x151   :  { %v3234_v28 = vpack.c.bf16 %v1205_v46, %v1204_v44 }
 0x152   :  { %3220 = vmatmul.mubr.msk.bf16.vlgmr.msra.gmra.mxu1 %vm73_vm1, %v3726_v16  ;;  %3232 = vmatprep.subr.msk.bf16.mxu0 %vm3224_vm2, %v3231_v63  ;;  %vm1501_vm2 = vcmask 457728  }
 0x153   :  { %3235 = vmatpush1.bf16.msk.msra.mxu0 %vm3227_vm6, %v3234_v28  ;;  %1601 = vmatprep.mubr.bf16.mxu1 %v3828_v0 }
 0x156   :  { %3236 = vmatmul.mubr.msk.bf16.vlgmr.msra.gmra.mxu0 %vm73_vm1, %v3727_v1 }
 0x157   :  { %1652 = vmatprep.mubr.bf16.mxu0 %v3828_v0 }
 0x1df   :  { %v465_v47 = vpop.f32.mrf.mxu0 }
 0x1e1   :  { %v467_v55 = vpop.f32.mrf.mxu0 }
 0x1e3   :  { %v469_v2 = vpop.f32.mrf.mxu0 }
 0x1e5   :  { %v471_v25 = vpop.f32.mrf.mxu0 }
 0x1eb   :  { %v516_v3 = vpop.f32.mrf.mxu1 }
 0x1ec   :  { %v517_v34 = vadd.f32 %v516_v3, %v465_v47 }
 0x1ed   :  { %v518_v4 = vpop.f32.mrf.mxu1 }
 0x1ee   :  { %v519_v29 = vadd.f32 %v518_v4, %v467_v55 }
 0x1ef   :  { %v634_v13 = vpop.f32.mrf.mxu0  ;;  %v520_v5 = vpop.f32.mrf.mxu1 }
 0x1f0   :  { %v643_v38 = vadd.f32 %v634_v13, %v517_v34  ;;  %v521_v40 = vadd.f32 %v520_v5, %v469_v2 }
 0x1f1   :  { %v636_v6 = vpop.f32.mrf.mxu0  ;;  %v522_v31 = vpop.f32.mrf.mxu1 }
 0x1f2   :  { %v644_v39 = vadd.f32 %v636_v6, %v519_v29  ;;  %v523_v35 = vadd.f32 %v522_v31, %v471_v25 }
 0x1f3   :  { %v638_v61 = vpop.f32.mrf.mxu0 }
 0x1f4   :  { %v645_v50 = vadd.f32 %v638_v61, %v521_v40 }
 0x1f5   :  { %v640_v8 = vpop.f32.mrf.mxu0 }
 0x1f6   :  { %v646_v48 = vadd.f32 %v640_v8, %v523_v35 }
 0x1fb   :  { %v756_v60 = vpop.f32.mrf.mxu1 }
 0x1fc   :  { %v765_v41 = vadd.f32 %v756_v60, %v643_v38 }
 0x1fd   :  { %v758_v9 = vpop.f32.mrf.mxu1 }
 0x1fe   :  { %v766_v23 = vadd.f32 %v758_v9, %v644_v39 }
 0x1ff   :  { %v760_v11 = vpop.f32.mrf.mxu1  ;;  %v878_v59 = vpop.f32.mrf.mxu0 }
 0x200   :  { %v887_v51 = vadd.f32 %v878_v59, %v765_v41  ;;  %v767_v53 = vadd.f32 %v760_v11, %v645_v50 }
 0x201   :  { %v762_v58 = vpop.f32.mrf.mxu1  ;;  %v880_v10 = vpop.f32.mrf.mxu0 }
 0x202   :  { %v888_v49 = vadd.f32 %v880_v10, %v766_v23  ;;  %v768_v43 = vadd.f32 %v762_v58, %v646_v48  ;;  %v1323_v58 = vld [vmem:[%s5210_s7] sm:$0xff]  ;;  %v1324_v48 = vld [vmem:[%s5210_s7 + $0x8] sm:$0xff]  ;;  %s3842_s7 = smov 8  }
 0x203   :  { %v882_v18 = vpop.f32.mrf.mxu0  ;;  %v940_v19 = vpop.f32.mrf.mxu1  ;;  %v1339_v10 = vld [vmem:[%s5211_s8] sm:$0xff] }
 0x204   :  { %v949_v7 = vadd.f32 %v940_v19, %v887_v51  ;;  %v889_v62 = vadd.f32 %v882_v18, %v767_v53  ;;  %v1340_v18 = vld [vmem:[%s5211_s8 + $0x8] sm:$0xff] }
 0x205   :  { %v884_v20 = vpop.f32.mrf.mxu0  ;;  %v942_v36 = vpop.f32.mrf.mxu1 }
 0x206   :  { %v950_v52 = vadd.f32 %v942_v36, %v888_v49  ;;  %v890_v54 = vadd.f32 %v884_v20, %v768_v43  ;;  %v3824_v49 = vld [vmem:[#allocation2 + $0x40] sm:$0xff] }
 0x207   :  { %v1052_v37 = vpop.f32.mrf.mxu0  ;;  %v944_v57 = vpop.f32.mrf.mxu1  ;;  %v4624_v50 = vpack.i.bf16 %v3824_v49, %v3824_v49 }
 0x208   :  { %v1061_v15 = vadd.f32 %v1052_v37, %v949_v7  ;;  %v951_v28 = vadd.f32 %v944_v57, %v889_v62 }
 0x209   :  { %v1054_v21 = vpop.f32.mrf.mxu0  ;;  %v946_v42 = vpop.f32.mrf.mxu1 }
 0x20a   :  { %v1062_v56 = vadd.f32 %v1054_v21, %v950_v52  ;;  %v952_v63 = vadd.f32 %v946_v42, %v890_v54 }
 0x20b   :  { %v1056_v24 = vpop.f32.mrf.mxu0 }
 0x20c   :  { %v1063_v3 = vadd.f32 %v1056_v24, %v951_v28 }
 0x20d   :  { %v1058_v12 = vpop.f32.mrf.mxu0 }
 0x20e   :  { %v1064_v2 = vadd.f32 %v1058_v12, %v952_v63 }
 0x212   :  { %v1163_v22 = vpop.f32.mrf.mxu1 }
 0x213   :  { %v1172_v1 = vadd.f32 %v1163_v22, %v1061_v15 }
 0x214   :  { %v1165_v14 = vpop.f32.mrf.mxu1 }
 0x215   :  { %v1173_v46 = vadd.f32 %v1165_v14, %v1062_v56 }
 0x216   :  { %v1167_v16 = vpop.f32.mrf.mxu1  ;;  %v1273_v44 = vpop.f32.mrf.mxu0 }
 0x217   :  { %v1282_v4 = vadd.f32 %v1273_v44, %v1172_v1  ;;  %v1174_v31 = vadd.f32 %v1167_v16, %v1063_v3 }
 0x218   :  { %v1169_v47 = vpop.f32.mrf.mxu1  ;;  %v1275_v55 = vpop.f32.mrf.mxu0 }
 0x219   :  { %v1283_v25 = vadd.f32 %v1275_v55, %v1173_v46  ;;  %v1175_v5 = vadd.f32 %v1169_v47, %v1064_v2 }
 0x21a   :  { %v1277_v13 = vpop.f32.mrf.mxu0 }
 0x21b   :  { %v1286_v6 = vsel %vm5229_vm0, %v1283_v25, 0.0  ;;  %v1284_v9 = vadd.f32 %v1277_v13, %v1174_v31 }
 0x21c   :  { %v1279_v61 = vpop.f32.mrf.mxu0  ;;  %v1287_v60 = vadd.f32 %v1286_v6, %v1282_v4 }
 0x21d   :  { %v1285_v8 = vadd.f32 %v1279_v61, %v1175_v5 }
 0x21e   :  { %1288 = vadd.xlane.f32.xlu0 %v1287_v60 }
 0x21f   :  { %v1290_v11 = vsel %vm5229_vm0, %v1285_v8, 0.0 }
 0x220   :  { %v1291_v59 = vadd.f32 %v1290_v11, %v1284_v9 }
 0x222   :  { %1292 = vadd.xlane.f32.xlu1 %v1291_v59 }
 0x233   :  { %1327 = vperm.xlu1 %3388, %v1323_v58  }
 0x237   :  { %1343 = vperm.xlu1 %3388, %v1339_v10  }
 0x23b   :  { %1348 = vperm.xlu1 %3388, %v1340_v18  }
 0x23f   :  { %3605 = vrot.lane.b32.xlu1 %v4624_v50, %s3839_s1 }
 0x2a7   :  { %v1289_v19 = vpop.xlane.xlu0 %1288 }
 0x2a8   :  { %v1295_v20 = vmul.f32 0.0052083335, %v1289_v19 }
 0x2aa   :  { %v1297_v34 = vsub.f32 %v1282_v4, %v1295_v20  ;;  %v1298_v36 = vsub.f32 %v1283_v25, %v1295_v20 }
 0x2ab   :  { %v1293_v37 = vpop.xlane.xlu1 %1292 }
 0x2ac   :  { %v1296_v29 = vmul.f32 0.0052083335, %v1293_v37  ;;  %v1301_v38 = vmul.f32 %v1297_v34, %v1297_v34  ;;  %v1302_v57 = vmul.f32 %v1298_v36, %v1298_v36 }
 0x2ae   :  { %v1299_v21 = vsub.f32 %v1284_v9, %v1296_v29  ;;  %v1300_v39 = vsub.f32 %v1285_v8, %v1296_v29  ;;  %v1305_v35 = vsel %vm5229_vm0, %v1302_v57, 0.0 }
 0x2af   :  { %v1306_v40 = vadd.f32 %v1305_v35, %v1301_v38  ;;  %v1328_v12 = vpop.permute.xlu1 %1327 }
 0x2b0   :  { %v1303_v23 = vmul.f32 %v1299_v21, %v1299_v21  ;;  %v1304_v41 = vmul.f32 %v1300_v39, %v1300_v39 }
 0x2b1   :  { %1307 = vadd.xlane.f32.xlu0 %v1306_v40 }
 0x2b2   :  { %v1309_v42 = vsel %vm5229_vm0, %v1304_v41, 0.0 }
 0x2b3   :  { %v1310_v24 = vadd.f32 %v1309_v42, %v1303_v23  ;;  %v1344_v62 = vpop.permute.xlu1 %1343 }
 0x2b5   :  { %1311 = vadd.xlane.f32.xlu0 %v1310_v24 }
 0x2b7   :  { %v1349_v4 = vpop.permute.xlu1 %1348 }
 0x2cb   :  { %1332 = vperm.xlu0 %3387, %v1324_v48  }
 0x2cf   :  { %3600 = vrot.lane.b32.xlu0 %v4624_v50, %s3838_s0 }
 0x2d3   :  { %3610 = vrot.lane.b32.xlu0 %v4624_v50, %s3840_s26 }
 0x33a   :  { %v1308_v51 = vpop.xlane.xlu0 %1307 }
 0x33b   :  { %v1313_v22 = vmul.f32 0.0052083335, %v1308_v51 }
 0x33d   :  { %v1315_v43 = vadd.f32 1e-05, %v1313_v22 }
 0x33e   :  { %v1312_v52 = vpop.xlane.xlu0 %1311 }
 0x33f   :  { %3744 = vrsqrt.f32 %v1315_v43  ;;  %v1314_v53 = vmul.f32 0.0052083335, %v1312_v52 }
 0x341   :  { %v1316_v7 = vadd.f32 1e-05, %v1314_v53 }
 0x343   :  { %3746 = vrsqrt.f32 %v1316_v7 }
 0x346   :  { %v1333_v2 = vpop.permute.xlu0 %1332 }
 0x34c   :  { %v3745_v14 = vpop.eup %3744 }
 0x34d   :  { %v1319_v54 = vmul.f32 %v3745_v14, %v1297_v34  ;;  %v1320_v56 = vmul.f32 %v3745_v14, %v1298_v36 }
 0x34f   :  { %v1335_v15 = vmul.f32 %v1328_v12, %v1319_v54  ;;  %v1336_v16 = vmul.f32 %v1328_v12, %v1320_v56 }
 0x350   :  { %v3747_v44 = vpop.eup %3746 }
 0x351   :  { %v4632_v63 = vadd.f32 %v1344_v62, %v1335_v15  ;;  %v4634_v46 = vadd.f32 %v1344_v62, %v1336_v16  ;;  %v1321_v28 = vmul.f32 %v3747_v44, %v1299_v21  ;;  %v1322_v1 = vmul.f32 %v3747_v44, %v1300_v39 }
 0x353   :  { %v4637_v47 = vmul.f32 0.70710677, %v4632_v63  ;;  %v4640_v55 = vmul.f32 0.70710677, %v4634_v46  ;;  %v1337_v25 = vmul.f32 %v1333_v2, %v1321_v28  ;;  %v1338_v3 = vmul.f32 %v1333_v2, %v1322_v1 }
 0x355   :  { %v1367_v13 = vand.u32 2147483647, %v4637_v47  ;;  %v1368_v5 = vand.u32 2147483647, %v4640_v55  ;;  %v4644_v6 = vadd.f32 %v1349_v4, %v1337_v25  ;;  %v4646_v31 = vadd.f32 %v1349_v4, %v1338_v3 }
 0x356   :  { %vm1359_vm1 = vcmp.ge.f32.partialorder %v4637_v47, 0.0  ;;  %vm1360_vm13 = vcmp.ge.f32.partialorder %v4640_v55, 0.0 }
 0x357   :  { %v1371_v61 = vmul.f32 0.3275911, %v1367_v13  ;;  %v1372_v60 = vmul.f32 0.3275911, %v1368_v5  ;;  %v4649_v8 = vmul.f32 0.70710677, %v4644_v6 }
 0x358   :  { %v4652_v9 = vmul.f32 0.70710677, %v4646_v31  ;;  %v1419_v36 = vsub.f32 0.0, %v1367_v13  ;;  %v1420_v37 = vsub.f32 0.0, %v1368_v5 }
 0x359   :  { %v1375_v11 = vadd.f32 1.0, %v1371_v61  ;;  %v1376_v59 = vadd.f32 1.0, %v1372_v60  ;;  %v1369_v58 = vand.u32 2147483647, %v4649_v8  ;;  %vm1361_vm7 = vcmp.ge.f32.partialorder %v4649_v8, 0.0 }
 0x35a   :  { %v1370_v10 = vand.u32 2147483647, %v4652_v9  ;;  %v1423_v29 = vmul.f32 %v1419_v36, %v1367_v13  ;;  %v1424_v38 = vmul.f32 %v1420_v37, %v1368_v5  ;;  %vm1362_vm8 = vcmp.ge.f32.partialorder %v4652_v9, 0.0 }
 0x35b   :  { %3748 = vrcp.f32 %v1375_v11  ;;  %v1373_v18 = vmul.f32 0.3275911, %v1369_v58  ;;  %v1421_v57 = vsub.f32 0.0, %v1369_v58  ;;  %v1449_v8 = vmul.f32 0.5, %v4644_v6 }
 0x35c   :  { %3750 = vrcp.f32 %v1376_v59  ;;  %v1374_v19 = vmul.f32 0.3275911, %v1370_v10  ;;  %v1422_v21 = vsub.f32 0.0, %v1370_v10  ;;  %v1427_v23 = vmul.f32 1.442695, %v1423_v29 }
 0x35d   :  { %v1377_v20 = vadd.f32 1.0, %v1373_v18  ;;  %v1429_v42 = vmul.f32 1.442695, %v1424_v38  ;;  %v1425_v24 = vmul.f32 %v1421_v57, %v1369_v58 }
 0x35e   :  { %v1378_v34 = vadd.f32 1.0, %v1374_v19  ;;  %v1426_v49 = vmul.f32 %v1422_v21, %v1370_v10 }
 0x35f   :  { %3752 = vrcp.f32 %v1377_v20  ;;  %v1431_v12 = vmul.f32 1.442695, %v1425_v24 }
 0x360   :  { %3754 = vrcp.f32 %v1378_v34  ;;  %v1433_v56 = vmul.f32 1.442695, %v1426_v49 }
 0x361   :  { %3756 = vpow2.f32 %v1427_v23 }
 0x362   :  { %3758 = vpow2.f32 %v1429_v42 }
 0x363   :  { %3760 = vpow2.f32 %v1431_v12 }
 0x364   :  { %3762 = vpow2.f32 %v1433_v56 }
 0x368   :  { %v3749_v39 = vpop.eup %3748 }
 0x369   :  { %v3751_v35 = vpop.eup %3750  ;;  %v1383_v40 = vmul.f32 1.0614054, %v3749_v39 }
 0x36a   :  { %v1384_v41 = vmul.f32 1.0614054, %v3751_v35 }
 0x36b   :  { %v3237_v48 = vadd.f32 -1.4531521, %v1383_v40 }
 0x36c   :  { %v3238_v51 = vadd.f32 -1.4531521, %v1384_v41  ;;  %v3753_v22 = vpop.eup %3752 }
 0x36d   :  { %v1391_v43 = vmul.f32 %v3749_v39, %v3237_v48  ;;  %v3755_v52 = vpop.eup %3754  ;;  %v1385_v7 = vmul.f32 1.0614054, %v3753_v22  ;;  %v3841_v48 = vmov -1.0  }
 0x36e   :  { %v1392_v53 = vmul.f32 %v3751_v35, %v3238_v51  ;;  %v1386_v54 = vmul.f32 1.0614054, %v3755_v52  ;;  %v3757_v20 = vpop.eup %3756 }
 0x36f   :  { %v1395_v14 = vadd.f32 1.4214138, %v1391_v43  ;;  %v3239_v15 = vadd.f32 -1.4531521, %v1385_v7  ;;  %v3759_v37 = vpop.eup %3758  ;;  %v1448_v7 = vmul.f32 0.5, %v4634_v46  ;;  %v1450_v46 = vmul.f32 0.5, %v4646_v31 }
 0x370   :  { %v1396_v62 = vadd.f32 1.4214138, %v1392_v53  ;;  %v3240_v44 = vadd.f32 -1.4531521, %v1386_v54  ;;  %v3761_v24 = vpop.eup %3760 }
 0x371   :  { %v1399_v16 = vmul.f32 %v3749_v39, %v1395_v14  ;;  %v1393_v1 = vmul.f32 %v3753_v22, %v3239_v15  ;;  %v3763_v51 = vpop.eup %3762  ;;  %v1365_v14 = vsel %vm1361_vm7, 1.0, %v3841_v48 }
 0x372   :  { %v1400_v28 = vmul.f32 %v3751_v35, %v1396_v62  ;;  %v1394_v25 = vmul.f32 %v3755_v52, %v3240_v44  ;;  %v1447_v44 = vmul.f32 0.5, %v4632_v63 }
 0x373   :  { %v3241_v2 = vadd.f32 -0.28449672, %v1399_v16  ;;  %v1397_v4 = vadd.f32 1.4214138, %v1393_v1 }
 0x374   :  { %v3242_v3 = vadd.f32 -0.28449672, %v1400_v28  ;;  %v1398_v5 = vadd.f32 1.4214138, %v1394_v25 }
 0x375   :  { %v1407_v13 = vmul.f32 %v3749_v39, %v3241_v2  ;;  %v1401_v60 = vmul.f32 %v3753_v22, %v1397_v4 }
 0x376   :  { %v1408_v61 = vmul.f32 %v3751_v35, %v3242_v3  ;;  %v1402_v59 = vmul.f32 %v3755_v52, %v1398_v5  ;;  %v4701_v5 = vld [vmem:[%s5208_s2] sm:$0x3] }
 0x377   :  { %v1411_v11 = vadd.f32 0.2548296, %v1407_v13  ;;  %v3243_v10 = vadd.f32 -0.28449672, %v1401_v60  ;;  %v3601_v13 = vpop.permute.xlu0 %3600  ;;  %vm1469_vm9 = vcmp.ge.s32.totalorder %v4701_v5, 4  ;;  %v3606_v60 = vpop.permute.xlu1 %3605 }
 0x378   :  { %v1412_v58 = vadd.f32 0.2548296, %v1408_v61  ;;  %v3244_v19 = vadd.f32 -0.28449672, %v1402_v59  ;;  %vm1518_vm3 = vmand %vm1469_vm9, %vm274_vm5 }
 0x379   :  { %v1415_v18 = vmul.f32 %v3749_v39, %v1411_v11  ;;  %v1409_v36 = vmul.f32 %v3753_v22, %v3243_v10  ;;  %v1363_v39 = vsel %vm1359_vm1, 1.0, %v3841_v48  ;;  %v1519_v11 = vsel %vm1518_vm3, 1, %v3828_v0 }
 0x37a   :  { %v1416_v34 = vmul.f32 %v3751_v35, %v1412_v58  ;;  %v1410_v38 = vmul.f32 %v3755_v52, %v3244_v19  ;;  %v1364_v35 = vsel %vm1360_vm13, 1.0, %v3841_v48  ;;  %v1527_v19 = vrot.slane %v1519_v11, %v4164_v33 }
 0x37b   :  { %v1435_v29 = vmul.f32 %v3757_v20, %v1415_v18  ;;  %v1413_v21 = vadd.f32 0.2548296, %v1409_v36  ;;  %v4710_v61 = vpop.permute.xlu0 %3610  ;;  %v1523_v18 = vrot.slane %v1519_v11, %v4161_v32  ;;  %v3603_v36 = vunpack.i.h.bf16 %v3601_v13 }
 0x37c   :  { %v1436_v57 = vmul.f32 %v3759_v37, %v1416_v34  ;;  %v1414_v23 = vadd.f32 0.2548296, %v1410_v38  ;;  %v3602_v37 = vunpack.i.l.bf16 %v3601_v13  ;;  %v1663_v38 = vsel %vm1469_vm9, 1, %v3828_v0  ;;  %v3728_v13 = vld [vmem:[%s5212_s9 + $0x8] sm:$0xff]  }
 0x37d   :  { %v1439_v40 = vsub.f32 1.0, %v1435_v29  ;;  %v1417_v42 = vmul.f32 %v3753_v22, %v1413_v21  ;;  %v3608_v29 = vunpack.i.h.bf16 %v3606_v60  ;;  %vm4731_vm6 = vcmp.eq.s32.totalorder %v1527_v19, 1 }
 0x37e   :  { %v1440_v41 = vsub.f32 1.0, %v1436_v57  ;;  %v1418_v49 = vmul.f32 %v3755_v52, %v1414_v23  ;;  %v1366_v52 = vsel %vm1362_vm8, 1.0, %v3841_v48  ;;  %v3607_v57 = vunpack.i.l.bf16 %v3606_v60  ;;  %vm3248_vm3 = vmpackc.low %vm4731_vm6, %vm4731_vm6 }
 0x37f   :  { %v1443_v43 = vmul.f32 %v1439_v40, %v1363_v39  ;;  %v1437_v47 = vmul.f32 %v3761_v24, %v1417_v42  ;;  %vm4735_vm1 = vcmp.eq.s32.totalorder %v1523_v18, 1  ;;  %vm1565_vm13 = vcmask 130048  }
 0x380   :  { %v1444_v53 = vmul.f32 %v1440_v41, %v1364_v35  ;;  %v1438_v55 = vmul.f32 %v3763_v51, %v1418_v49  ;;  %v3613_v19 = vunpack.i.h.bf16 %v4710_v61  ;;  %vm1686_vm6 = vcmask 392192  }
 0x381   :  { %v1441_v22 = vsub.f32 1.0, %v1437_v47  ;;  %v1451_v56 = vadd.f32 1.0, %v1443_v43  ;;  %v1671_v43 = vrot.slane %v1663_v38, %v4164_v33 }
 0x382   :  { %v1452_v12 = vadd.f32 1.0, %v1444_v53  ;;  %v1442_v54 = vsub.f32 1.0, %v1438_v55 }
 0x383   :  { %v1445_v15 = vmul.f32 %v1441_v22, %v1365_v14  ;;  %v4669_v1 = vmul.f32 %v1451_v56, %v1447_v44  ;;  %v1667_v44 = vrot.slane %v1663_v38, %v4161_v32 }
 0x384   :  { %v1456_v62 = vmul.f32 %v1452_v12, %v1448_v7  ;;  %v1446_v16 = vmul.f32 %v1442_v54, %v1366_v52 }
 0x385   :  { %v1453_v9 = vadd.f32 1.0, %v1445_v15 }
 0x386   :  { %1460 = vst.msk [vmem:[#allocation2 + $0x10] sm:$0xff] %vm5229_vm0, %v1456_v62  ;;  %v1454_v28 = vadd.f32 1.0, %v1446_v16 }
 0x387   :  { %v4671_v2 = vmul.f32 %v1453_v9, %v1449_v8 }
 0x388   :  { %v1458_v25 = vmul.f32 %v1454_v28, %v1450_v46 }
 0x389   :  { %v1942_v3 = vpack.c.bf16 %v4671_v2, %v4669_v1 }
 0x38a   :  { %1462 = vst.msk [vmem:[#allocation2 + $0x30] sm:$0xff] %vm5229_vm0, %v1458_v25 }
 0x38d   :  { %v4676_v4 = vld [vmem:[#allocation2 + $0x10] sm:$0xff] }
 0x38e   :  { %v3619_v63 = vpack.i.bf16 %v4676_v4, %v4669_v1 }
 0x390   :  { %3620 = vrot.lane.b32.xlu1 %v3619_v63, %s3839_s1  ;;  %3615 = vrot.lane.b32.xlu0 %v3619_v63, %s3838_s0 }
 0x391   :  { %v4682_v6 = vld [vmem:[#allocation2 + $0x30] sm:$0xff] }
 0x392   :  { %v3629_v31 = vpack.i.bf16 %v4682_v6, %v4671_v2 }
 0x394   :  { %3625 = vrot.lane.b32.xlu0 %v3619_v63, %s3840_s26  ;;  %3630 = vrot.lane.b32.xlu1 %v3629_v31, %s3838_s0 }
 0x398   :  { %3640 = vrot.lane.b32.xlu0 %v3629_v31, %s3839_s1  ;;  %3635 = vrot.lane.b32.xlu1 %v3619_v63, %s3842_s7 }
 0x39c   :  { %3655 = vrot.lane.b32.xlu0 %v3619_v63, %s3833_s5  ;;  %3645 = vrot.lane.b32.xlu1 %v3629_v31, %s3840_s26 }
 0x3a0   :  { %3660 = vrot.lane.b32.xlu0 %v3629_v31, %s3842_s7  ;;  %3650 = vrot.lane.b32.xlu1 %v4624_v50, %s3842_s7 }
 0x3a4   :  { %3670 = vrot.lane.b32.xlu0 %v4624_v50, %s3833_s5  ;;  %3665 = vrot.lane.b32.xlu1 %v3629_v31, %s3833_s5  ;;  %v4707_v50 = vld [vmem:[%s5209_s3] sm:$0x3]  ;;  %s5326_s5 = sld [smem:[#allocation9_spill]] }
 0x3a5   :  { %vm1470_vm11 = vcmp.ge.s32.totalorder %v4707_v50, 8  ;;  %v3729_v50 = vld [vmem:[%s5212_s9] sm:$0xff]  }
 0x3a6   :  { %vm1471_vm12 = vmand %vm1469_vm9, %vm1470_vm11  ;;  %v1759_v55 = vsel %vm1470_vm11, 1, %v3828_v0  ;;  %vm1999_vm9 = vcmp.lt.s32.totalorder %v4701_v5, 4  ;;  %v3732_v5 = vld [vmem:[%s5212_s9 + $0x20] sm:$0xff]  }
 0x3a7   :  { %v1472_v59 = vsel %vm1471_vm12, 1, %v3828_v0  ;;  %vm3251_vm12 = vmpackc.low %vm4735_vm1, %vm4735_vm1  ;;  %v1763_v9 = vrot.slane %v1759_v55, %v4161_v32  ;;  %v1767_v46 = vrot.slane %v1759_v55, %v4164_v33 }
 0x3a8   :  { %3690 = vrot.lane.b32.xlu0 %v3629_v31, %s3843_s27  ;;  %3675 = vrot.lane.b32.xlu1 %v3619_v63, %s3843_s27  ;;  %v1480_v20 = vrot.slane %v1472_v59, %v4164_v33  ;;  %v1476_v34 = vrot.slane %v1472_v59, %v4161_v32 }
 0x3a9   :  { %vm4820_vm1 = vcmp.eq.s32.totalorder %v1767_v46, 1 }
 0x3aa   :  { %vm4739_vm7 = vcmp.eq.s32.totalorder %v1480_v20, 1  ;;  %vm4743_vm8 = vcmp.eq.s32.totalorder %v1476_v34, 1  ;;  %v3612_v20 = vunpack.i.l.bf16 %v4710_v61 }
 0x3ab   :  { %vm3256_vm0 = vmpackc.low %vm4739_vm7, %vm4739_vm7  ;;  %vm4835_vm7 = vcmp.eq.s32.totalorder %v1763_v9, 1 }
 0x3ac   :  { %3695 = vrot.lane.b32.xlu0 %v3629_v31, %s3844_s28  ;;  %3680 = vrot.lane.b32.xlu1 %v3619_v63, %s3844_s28  ;;  %vm3259_vm10 = vmpackc.low %vm4743_vm8, %vm4743_vm8 }
 0x3b0   :  { %3700 = vrot.lane.b32.xlu0 %v3629_v31, %s3845_s6  ;;  %3685 = vrot.lane.b32.xlu1 %v3619_v63, %s3845_s6 }
 0x402   :  { %v3616_v58 = vpop.permute.xlu0 %3615  ;;  %v3621_v10 = vpop.permute.xlu1 %3620 }
 0x403   :  { %v3618_v21 = vunpack.i.h.bf16 %v3616_v58  ;;  %v3617_v40 = vunpack.i.l.bf16 %v3616_v58  ;;  %v3623_v53 = vunpack.i.h.bf16 %v3621_v10  ;;  %v3622_v47 = vunpack.i.l.bf16 %v3621_v10 }
 0x405   :  { %v1543_v7 = vsel %vm1542_vm14, %v3602_v37, %v3617_v40  ;;  %v1544_v12 = vsel %vm1542_vm14, %v3617_v40, %v3618_v21  ;;  %v1502_v28 = vsel %vm1501_vm2, %v3607_v57, %v3622_v47  ;;  %v1503_v25 = vsel %vm1501_vm2, %v3622_v47, %v3623_v53 }
 0x406   :  { %v4729_v23 = vpop.permute.xlu0 %3625  ;;  %v3631_v41 = vpop.permute.xlu1 %3630 }
 0x407   :  { %v3633_v35 = vunpack.i.h.bf16 %v3631_v41  ;;  %v3632_v49 = vunpack.i.l.bf16 %v3631_v41  ;;  %v3628_v60 = vunpack.i.h.bf16 %v4729_v23  ;;  %v3627_v11 = vunpack.i.l.bf16 %v4729_v23 }
 0x409   :  { %v1545_v22 = vsel %vm1542_vm14, %v3603_v36, %v3632_v49  ;;  %v1546_v14 = vsel %vm1542_vm14, %v3632_v49, %v3633_v35  ;;  %vm4768_vm14 = vcmp.eq.s32.totalorder %v1671_v43, 1  ;;  %v1687_v23 = vsel %vm1686_vm6, %v3612_v20, %v3627_v11 }
 0x40a   :  { %v3641_v54 = vpop.permute.xlu0 %3640  ;;  %v3249_v56 = vpack.c.bf16 %v1546_v14, %v1544_v12  ;;  %v3252_v62 = vpack.c.bf16 %v1545_v22, %v1543_v7  ;;  %v4759_v16 = vpop.permute.xlu1 %3635  ;;  %v1688_v41 = vsel %vm1686_vm6, %v3627_v11, %v3628_v60  ;;  %v2182_v20 = vsel %vm1999_vm9, 1, %v3828_v0 }
 0x40b   :  { %v3643_v52 = vunpack.i.h.bf16 %v3641_v54  ;;  %v3642_v15 = vunpack.i.l.bf16 %v3641_v54  ;;  %v3638_v38 = vunpack.i.h.bf16 %v4759_v16  ;;  %v3637_v57 = vunpack.i.l.bf16 %v4759_v16  ;;  %v3730_v54 = vld [vmem:[%s5212_s9 + $0x10] sm:$0xff]  }
 0x40c   :  { %3250 = vmatprep.subr.msk.bf16.mxu1 %vm3248_vm3, %v3249_v56  ;;  %vm1782_vm3 = vcmask 64512   ;;  %v2190_v2 = vrot.slane %v2182_v20, %v4164_v33 }
 0x40d   :  { %v1504_v63 = vsel %vm1501_vm2, %v3608_v29, %v3642_v15  ;;  %v1505_v31 = vsel %vm1501_vm2, %v3642_v15, %v3643_v52  ;;  %3253 = vmatpush1.bf16.msk.msra.mxu1 %vm3251_vm12, %v3252_v62  ;;  %vm4802_vm2 = vmand %vm1999_vm9, %vm1470_vm11  ;;  %vm4816_vm11 = vcmp.eq.s32.totalorder %v1667_v44, 1  ;;  %v1784_v12 = vsel %vm1782_vm3, %v3637_v57, %v3638_v38 }
 0x40e   :  { %v3257_v59 = vpack.c.bf16 %v1505_v31, %v1503_v25  ;;  %v3260_v58 = vpack.c.bf16 %v1504_v63, %v1502_v28  ;;  %v4796_v10 = vpop.permute.xlu0 %3655  ;;  %v3646_v34 = vpop.permute.xlu1 %3645  ;;  %v4842_v40 = vsel %vm4802_vm2, 1, %v3828_v0  ;;  %vm3269_vm8 = vmpackc.low %vm4816_vm11, %vm4816_vm11  ;;  %v1943_v25 = vpack.c.bf16 %v4682_v6, %v4676_v4 }
 0x40f   :  { %v3648_v36 = vunpack.i.h.bf16 %v3646_v34  ;;  %v3647_v37 = vunpack.i.l.bf16 %v3646_v34  ;;  %v2009_v26 = vrot.slane %v4842_v40, %v4164_v33  ;;  %v3658_v22 = vunpack.i.h.bf16 %v4796_v10  ;;  %vm3279_vm12 = vmpackc.low %vm4835_vm7, %vm4835_vm7 }
 0x410   :  { %3258 = vmatprep.subr.msk.bf16.mxu0 %vm3256_vm0, %v3257_v59  ;;  %3254 = vmatmul.mubr.msk.bf16.vlgmr.msra.gmra.mxu1 %vm1565_vm13, %v3728_v13  ;;  %vm3266_vm0 = vmpackc.low %vm4768_vm14, %vm4768_vm14  ;;  %v3657_v62 = vunpack.i.l.bf16 %v4796_v10  ;;  %vm2020_vm14 = vcmask 719872   ;;  %v3731_v13 = vld [vmem:[%s5212_s9 + $0x18] sm:$0xff]   ;;  %v2005_v60 = vrot.slane %v4842_v40, %v4161_v32  ;;  %vm5298_vm2 = vcmask 31744  }
 0x411   :  { %3261 = vmatpush1.bf16.msk.msra.mxu0 %vm3259_vm10, %v3260_v58  ;;  %v1689_v42 = vsel %vm1686_vm6, %v3613_v19, %v3647_v37  ;;  %v1690_v24 = vsel %vm1686_vm6, %v3647_v37, %v3648_v36  ;;  %1744 = vmatprep.mubr.bf16.mxu1 %v3828_v0  ;;  %vm4853_vm10 = vmand %vm1999_vm9, %vm274_vm5  ;;  %vm4911_vm6 = vcmp.eq.s32.totalorder %v2009_v26, 1  ;;  %vm2111_vm9 = vcmask 687104  }
 0x412   :  { %v3661_v39 = vpop.permute.xlu0 %3660  ;;  %v3267_v49 = vpack.c.bf16 %v1690_v24, %v1688_v41  ;;  %v3270_v51 = vpack.c.bf16 %v1689_v42, %v1687_v23  ;;  %v3651_v47 = vpop.permute.xlu1 %3650  ;;  %vm3276_vm5 = vmpackc.low %vm4820_vm1, %vm4820_vm1  ;;  %v2092_v56 = vsel %vm4853_vm10, 1, %v3828_v0 }
 0x413   :  { %v3663_v43 = vunpack.i.h.bf16 %v3661_v39  ;;  %v3662_v53 = vunpack.i.l.bf16 %v3661_v39  ;;  %v3653_v55 = vunpack.i.h.bf16 %v3651_v47  ;;  %v3652_v7 = vunpack.i.l.bf16 %v3651_v47  ;;  %vm5301_vm11 = vmmov %vm5298_vm2 }
 0x414   :  { %3262 = vmatmul.mubr.msk.bf16.vlgmr.msra.gmra.mxu0 %vm1565_vm13, %v3729_v50  ;;  %3268 = vmatprep.subr.msk.bf16.mxu1 %vm3266_vm0, %v3267_v49  ;;  %v2096_v6 = vrot.slane %v2092_v56, %v4161_v32  ;;  %v2100_v59 = vrot.slane %v2092_v56, %v4164_v33  ;;  %v1868_v58 = vsel %vm5301_vm11, %v3657_v62, %v3658_v22  ;;  %vm5302_vm0 = vmmov %vm5298_vm2  ;;  %v3733_v33 = vld [vmem:[%s5212_s9 + $0x28] sm:$0xff]  }
 0x415   :  { %v1786_v14 = vsel %vm1782_vm3, %v3662_v53, %v3663_v43  ;;  %1840 = vmatprep.mubr.bf16.mxu0 %v3828_v0  ;;  %v1785_v15 = vsel %vm1782_vm3, %v3653_v55, %v3662_v53  ;;  %v1783_v16 = vsel %vm1782_vm3, %v3652_v7, %v3637_v57  ;;  %3271 = vmatpush1.bf16.msk.msra.mxu1 %vm3269_vm8, %v3270_v51  ;;  %vm5303_vm10 = vmmov %vm5302_vm0  ;;  %vm4925_vm8 = vcmp.eq.s32.totalorder %v2005_v60, 1 }
 0x416   :  { %v3277_v52 = vpack.c.bf16 %v1786_v14, %v1784_v12  ;;  %v3671_v44 = vpop.permute.xlu0 %3670  ;;  %v3280_v8 = vpack.c.bf16 %v1785_v15, %v1783_v16  ;;  %v3666_v28 = vpop.permute.xlu1 %3665  ;;  %vm4953_vm11 = vcmp.eq.s32.totalorder %v2096_v6, 1  ;;  %v2186_v43 = vrot.slane %v2182_v20, %v4161_v32  ;;  %v3734_v15 = vld [vmem:[%s5212_s9 + $0x30] sm:$0xff]  }
 0x417   :  { %v3673_v9 = vunpack.i.h.bf16 %v3671_v44  ;;  %v3672_v46 = vunpack.i.l.bf16 %v3671_v44  ;;  %v3668_v63 = vunpack.i.h.bf16 %v3666_v28  ;;  %v3667_v31 = vunpack.i.l.bf16 %v3666_v28 }
 0x418   :  { %3278 = vmatprep.subr.msk.bf16.mxu0 %vm3276_vm5, %v3277_v52  ;;  %3272 = vmatmul.mubr.msk.bf16.vlgmr.msra.gmra.mxu1 %vm1565_vm13, %v3730_v54 }
 0x419   :  { %v1867_v11 = vsel %vm5298_vm2, %v3672_v46, %v3657_v62  ;;  %3281 = vmatpush1.bf16.msk.msra.mxu0 %vm3279_vm12, %v3280_v8  ;;  %v1869_v10 = vsel %vm5302_vm0, %v3673_v9, %v3667_v31  ;;  %v1870_v18 = vsel %vm5303_vm10, %v3667_v31, %v3668_v63  ;;  %1924 = vmatprep.mubr.bf16.mxu1 %v3828_v0  ;;  %vm3300_vm2 = vmpackc.low %vm4911_vm6, %vm4911_vm6  ;;  %vm2201_vm6 = vcmask 654336   ;;  %v3735_v9 = vld [vmem:[%s5212_s9 + $0x38] sm:$0xff]   ;;  %v3736_v46 = vld [vmem:[%s5212_s9 + $0x40] sm:$0xff]  }
 0x41a   :  { %v3691_v19 = vpop.permute.xlu0 %3690  ;;  %1966 = vmatprep.subr.bf16.mxu0 %v1943_v25  ;;  %v3287_v34 = vpack.c.bf16 %v1870_v18, %v1868_v58  ;;  %v3290_v36 = vpack.c.bf16 %v1869_v10, %v1867_v11  ;;  %v3676_v29 = vpop.permute.xlu1 %3675  ;;  %vm3313_vm0 = vmpackc.low %vm4953_vm11, %vm4953_vm11  ;;  %vm4976_vm10 = vcmp.eq.s32.totalorder %v2190_v2, 1 }
 0x41b   :  { %v3693_v37 = vunpack.i.h.bf16 %v3691_v19  ;;  %v3692_v50 = vunpack.i.l.bf16 %v3691_v19  ;;  %v3678_v38 = vunpack.i.h.bf16 %v3676_v29  ;;  %v3677_v57 = vunpack.i.l.bf16 %v3676_v29 }
 0x41c   :  { %3282 = vmatmul.mubr.msk.bf16.vlgmr.msra.gmra.mxu0 %vm1565_vm13, %v3731_v13  ;;  %3288 = vmatprep.subr.msk.bf16.mxu1 %vm4349_vm15, %v3287_v34  ;;  %vm4945_vm15 = vcmp.eq.s32.totalorder %v2100_v59, 1 }
 0x41d   :  { %v2022_v23 = vsel %vm2020_vm14, %v3692_v50, %v3693_v37  ;;  %1967 = vmatpush1.bf16.msra.mxu0 %v1942_v3  ;;  %v3301_v41 = vpack.c.bf16 %v3693_v37, %v3678_v38  ;;  %v2021_v42 = vsel %vm2020_vm14, %v3677_v57, %v3678_v38  ;;  %3291 = vmatpush1.bf16.msk.msra.mxu1 %vm4373_vm4, %v3290_v36  ;;  %vm3303_vm14 = vmpackc.low %vm4925_vm8, %vm4925_vm8  ;;  %vm2191_vm8 = vcmp.eq.s32.totalorder %v2186_v43, 1 }
 0x41e   :  { %v3696_v17 = vpop.permute.xlu0 %3695  ;;  %1984 = vmatprep.mubr.bf16.mxu0 %v3828_v0  ;;  %v3304_v3 = vpack.c.bf16 %v2022_v23, %v2021_v42  ;;  %v3681_v35 = vpop.permute.xlu1 %3680  ;;  %vm3310_vm4 = vmpackc.low %vm4945_vm15, %vm4945_vm15  ;;  %vm5312_vm15 = vcmask 523264  }
 0x41f   :  { %v3698_v24 = vunpack.i.h.bf16 %v3696_v17  ;;  %v3697_v39 = vunpack.i.l.bf16 %v3696_v17  ;;  %v3683_v49 = vunpack.i.h.bf16 %v3681_v35  ;;  %v3682_v51 = vunpack.i.l.bf16 %v3681_v35  ;;  %3302 = vmatprep.subr.msk.bf16.mxu1 %vm3300_vm2, %v3301_v41  ;;  %vm3323_vm2 = vmpackc.low %vm2191_vm8, %vm2191_vm8 }
 0x420   :  { %3292 = vmatmul.mubr.msk.bf16.vlgmr.msra.gmra.mxu1 %vm1565_vm13, %v3732_v5 }
 0x421   :  { %v2113_v53 = vsel %vm2111_vm9, %v3697_v39, %v3698_v24  ;;  %v3311_v47 = vpack.c.bf16 %v3698_v24, %v3683_v49  ;;  %v2112_v55 = vsel %vm2111_vm9, %v3682_v51, %v3683_v49  ;;  %3305 = vmatpush1.bf16.msk.msra.mxu1 %vm3303_vm14, %v3304_v3  ;;  %2076 = vmatprep.mubr.bf16.mxu1 %v3828_v0  ;;  %vm3320_vm9 = vmpackc.low %vm4976_vm10, %vm4976_vm10 }
 0x422   :  { %v3701_v7 = vpop.permute.xlu0 %3700  ;;  %v3314_v12 = vpack.c.bf16 %v2113_v53, %v2112_v55  ;;  %v3686_v54 = vpop.permute.xlu1 %3685  ;;  %vm5313_vm14 = vmmov %vm5312_vm15 }
 0x423   :  { %v3703_v22 = vunpack.i.h.bf16 %v3701_v7  ;;  %v3702_v14 = vunpack.i.l.bf16 %v3701_v7  ;;  %v3688_v56 = vunpack.i.h.bf16 %v3686_v54  ;;  %v3687_v62 = vunpack.i.l.bf16 %v3686_v54  ;;  %3312 = vmatprep.subr.msk.bf16.mxu0 %vm3310_vm4, %v3311_v47  ;;  %vm5314_vm11 = vmmov %vm5313_vm14 }
 0x424   :  { %3296 = vmatmul.mubr.msk.bf16.vlgmr.msra.gmra.mxu0 %vm1565_vm13, %v3733_v33  ;;  %vm5315_vm4 = vmmov %vm5314_vm11 }
 0x425   :  { %v2203_v52 = vsel %vm2201_vm6, %v3702_v14, %v3703_v22  ;;  %3315 = vmatpush1.bf16.msk.msra.mxu0 %vm3313_vm0, %v3314_v12  ;;  %2167 = vmatprep.mubr.bf16.mxu0 %v3828_v0  ;;  %v3321_v16 = vpack.c.bf16 %v3703_v22, %v3688_v56  ;;  %v2202_v44 = vsel %vm2201_vm6, %v3687_v62, %v3688_v56 }
 0x426   :  { %v3324_v8 = vpack.c.bf16 %v2203_v52, %v2202_v44 }
 0x427   :  { %3322 = vmatprep.subr.msk.bf16.mxu1 %vm3320_vm9, %v3321_v16  ;;  %vm5316_vm9 = vmmov %vm5315_vm4 }
 0x428   :  { %3306 = vmatmul.mubr.msk.bf16.vlgmr.msra.gmra.mxu1 %vm1565_vm13, %v3734_v15 }
 0x429   :  { %3325 = vmatpush1.bf16.msk.msra.mxu1 %vm3323_vm2, %v3324_v8  ;;  %2257 = vmatprep.mubr.bf16.mxu1 %v3828_v0  ;;  %vm5317_vm2 = vmmov %vm5315_vm4 }
 0x42a   :  { %vm5319_vm1 = vmmov %vm5317_vm2 }
 0x42b   :  { %vm5320_vm7 = vmmov %vm5319_vm1 }
 0x42c   :  { %3316 = vmatmul.mubr.msk.bf16.vlgmr.msra.gmra.mxu0 %vm1565_vm13, %v3735_v9 }
 0x42d   :  { %2534 = vmatprep.mubr.bf16.mxu0 %v3828_v0 }
 0x430   :  { %3326 = vmatmul.mubr.msk.bf16.vlgmr.msra.gmra.mxu1 %vm1565_vm13, %v3736_v46 }
 0x431   :  { %2585 = vmatprep.mubr.bf16.mxu1 %v3828_v0 }
 0x4d0   :  { %v1603_v28 = vpop.f32.mrf.mxu1 }
 0x4d2   :  { %v1605_v25 = vpop.f32.mrf.mxu1 }
 0x4d4   :  { %v1654_v63 = vpop.f32.mrf.mxu0  ;;  %v1607_v31 = vpop.f32.mrf.mxu1 }
 0x4d5   :  { %v1655_v40 = vadd.f32 %v1654_v63, %v1603_v28 }
 0x4d6   :  { %v1656_v13 = vpop.f32.mrf.mxu0  ;;  %v1609_v60 = vpop.f32.mrf.mxu1 }
 0x4d7   :  { %v1657_v38 = vadd.f32 %v1656_v13, %v1605_v25 }
 0x4d8   :  { %v1658_v11 = vpop.f32.mrf.mxu0  ;;  %v1746_v4 = vpop.f32.mrf.mxu1 }
 0x4d9   :  { %v1755_v42 = vadd.f32 %v1746_v4, %v1655_v40  ;;  %v1659_v24 = vadd.f32 %v1658_v11, %v1607_v31 }
 0x4da   :  { %v1660_v6 = vpop.f32.mrf.mxu0  ;;  %v1748_v59 = vpop.f32.mrf.mxu1 }
 0x4db   :  { %v1756_v5 = vadd.f32 %v1748_v59, %v1657_v38  ;;  %v1661_v1 = vadd.f32 %v1660_v6, %v1609_v60 }
 0x4dc   :  { %v1842_v58 = vpop.f32.mrf.mxu0  ;;  %v1750_v10 = vpop.f32.mrf.mxu1 }
 0x4dd   :  { %v1851_v39 = vadd.f32 %v1842_v58, %v1755_v42  ;;  %v1757_v33 = vadd.f32 %v1750_v10, %v1659_v24 }
 0x4de   :  { %v1844_v18 = vpop.f32.mrf.mxu0  ;;  %v1752_v19 = vpop.f32.mrf.mxu1 }
 0x4df   :  { %v1852_v2 = vadd.f32 %v1844_v18, %v1756_v5  ;;  %v1758_v45 = vadd.f32 %v1752_v19, %v1661_v1 }
 0x4e0   :  { %v1846_v20 = vpop.f32.mrf.mxu0  ;;  %v1926_v34 = vpop.f32.mrf.mxu1 }
 0x4e1   :  { %v1935_v43 = vadd.f32 %v1926_v34, %v1851_v39  ;;  %v1853_v26 = vadd.f32 %v1846_v20, %v1757_v33  ;;  %v2309_v34 = vld [vmem:[%s5213_s10 + $0x8] sm:$0xff] }
 0x4e2   :  { %v1848_v36 = vpop.f32.mrf.mxu0  ;;  %v1928_v37 = vpop.f32.mrf.mxu1 }
 0x4e3   :  { %v1936_v49 = vadd.f32 %v1928_v37, %v1852_v2  ;;  %v1854_v47 = vadd.f32 %v1848_v36, %v1758_v45  ;;  %v2308_v36 = vld [vmem:[%s5213_s10] sm:$0xff]  ;;  %v2325_v45 = vld [vmem:[%s5214_s11 + $0x8] sm:$0xff] }
 0x4e4   :  { %v1986_v50 = vpop.f32.mrf.mxu0  ;;  %v1930_v29 = vpop.f32.mrf.mxu1 }
 0x4e5   :  { %v1995_v12 = vadd.f32 %v1986_v50, %v1935_v43  ;;  %v1937_v62 = vadd.f32 %v1930_v29, %v1853_v26 }
 0x4e6   :  { %v1988_v57 = vpop.f32.mrf.mxu0  ;;  %v1932_v23 = vpop.f32.mrf.mxu1 }
 0x4e7   :  { %v1996_v55 = vadd.f32 %v1988_v57, %v1936_v49  ;;  %v1938_v14 = vadd.f32 %v1932_v23, %v1854_v47 }
 0x4e8   :  { %v1990_v41 = vpop.f32.mrf.mxu0  ;;  %v2078_v17 = vpop.f32.mrf.mxu1 }
 0x4e9   :  { %v2087_v52 = vadd.f32 %v2078_v17, %v1995_v12  ;;  %v1997_v8 = vadd.f32 %v1990_v41, %v1937_v62 }
 0x4ea   :  { %v1992_v3 = vpop.f32.mrf.mxu0  ;;  %v2080_v35 = vpop.f32.mrf.mxu1 }
 0x4eb   :  { %v2088_v54 = vadd.f32 %v2080_v35, %v1996_v55  ;;  %v1998_v16 = vadd.f32 %v1992_v3, %v1938_v14  ;;  %v2324_v35 = vld [vmem:[%s5214_s11] sm:$0xff] }
 0x4ec   :  { %v2169_v51 = vpop.f32.mrf.mxu0  ;;  %v2082_v53 = vpop.f32.mrf.mxu1 }
 0x4ed   :  { %v2178_v9 = vadd.f32 %v2169_v51, %v2087_v52  ;;  %v2089_v31 = vadd.f32 %v2082_v53, %v1997_v8 }
 0x4ee   :  { %v2171_v7 = vpop.f32.mrf.mxu0  ;;  %v2084_v22 = vpop.f32.mrf.mxu1 }
 0x4ef   :  { %v2179_v44 = vadd.f32 %v2171_v7, %v2088_v54  ;;  %v2090_v25 = vadd.f32 %v2084_v22, %v1998_v16 }
 0x4f0   :  { %v2173_v56 = vpop.f32.mrf.mxu0  ;;  %v2259_v15 = vpop.f32.mrf.mxu1 }
 0x4f1   :  { %v2268_v13 = vadd.f32 %v2259_v15, %v2178_v9  ;;  %v2180_v6 = vadd.f32 %v2173_v56, %v2089_v31 }
 0x4f2   :  { %v2175_v46 = vpop.f32.mrf.mxu0  ;;  %v2261_v28 = vpop.f32.mrf.mxu1 }
 0x4f3   :  { %v2269_v63 = vadd.f32 %v2261_v28, %v2179_v44  ;;  %v2181_v11 = vadd.f32 %v2175_v46, %v2090_v25 }
 0x4f4   :  { %v2263_v60 = vpop.f32.mrf.mxu1 }
 0x4f5   :  { %v2272_v4 = vsel %vm5312_vm15, %v2269_v63, 0.0  ;;  %v2270_v18 = vadd.f32 %v2263_v60, %v2180_v6 }
 0x4f6   :  { %v2265_v59 = vpop.f32.mrf.mxu1  ;;  %v2273_v58 = vadd.f32 %v2272_v4, %v2268_v13 }
 0x4f7   :  { %v2271_v10 = vadd.f32 %v2265_v59, %v2181_v11 }
 0x4f8   :  { %2274 = vadd.xlane.f32.xlu1 %v2273_v58 }
 0x4f9   :  { %v2276_v19 = vsel %vm5313_vm14, %v2271_v10, 0.0 }
 0x4fa   :  { %v2277_v20 = vadd.f32 %v2276_v19, %v2270_v18 }
 0x4fc   :  { %2278 = vadd.xlane.f32.xlu0 %v2277_v20 }
 0x509   :  { %2317 = vperm.xlu1 %3388, %v2309_v34  }
 0x512   :  { %2312 = vperm.xlu0 %3387, %v2308_v36  }
 0x581   :  { %v2275_v37 = vpop.xlane.xlu1 %2274 }
 0x582   :  { %v2280_v50 = vmul.f32 0.0052083335, %v2275_v37 }
 0x584   :  { %v2282_v29 = vsub.f32 %v2268_v13, %v2280_v50  ;;  %v2283_v38 = vsub.f32 %v2269_v63, %v2280_v50 }
 0x585   :  { %v2279_v57 = vpop.xlane.xlu0 %2278  ;;  %v2318_v51 = vpop.permute.xlu1 %2317 }
 0x586   :  { %v2281_v40 = vmul.f32 0.0052083335, %v2279_v57  ;;  %v2286_v23 = vmul.f32 %v2282_v29, %v2282_v29  ;;  %v2287_v5 = vmul.f32 %v2283_v38, %v2283_v38 }
 0x588   :  { %v2284_v41 = vsub.f32 %v2270_v18, %v2281_v40  ;;  %v2285_v42 = vsub.f32 %v2271_v10, %v2281_v40  ;;  %v2290_v17 = vsel %vm5314_vm11, %v2287_v5, 0.0 }
 0x589   :  { %v2291_v1 = vadd.f32 %v2290_v17, %v2286_v23 }
 0x58a   :  { %v2288_v2 = vmul.f32 %v2284_v41, %v2284_v41  ;;  %v2289_v3 = vmul.f32 %v2285_v42, %v2285_v42 }
 0x58b   :  { %2292 = vadd.xlane.f32.xlu0 %v2291_v1 }
 0x58c   :  { %v2294_v24 = vsel %vm5315_vm4, %v2289_v3, 0.0  ;;  %vm5322_vm4 = vmmov %vm5319_vm1 }
 0x58d   :  { %v2295_v39 = vadd.f32 %v2294_v24, %v2288_v2  ;;  %v2313_v49 = vpop.permute.xlu0 %2312 }
 0x58f   :  { %2296 = vadd.xlane.f32.xlu1 %v2295_v39 }
 0x5a0   :  { %2328 = vperm.xlu1 %3388, %v2324_v35  }
 0x5a1   :  { %2333 = vperm.xlu0 %3387, %v2325_v45  }
 0x614   :  { %v2293_v33 = vpop.xlane.xlu0 %2292 }
 0x615   :  { %v2298_v43 = vmul.f32 0.0052083335, %v2293_v33 }
 0x617   :  { %v2300_v53 = vadd.f32 1e-05, %v2298_v43 }
 0x618   :  { %v2297_v47 = vpop.xlane.xlu1 %2296 }
 0x619   :  { %3764 = vrsqrt.f32 %v2300_v53  ;;  %v2299_v55 = vmul.f32 0.0052083335, %v2297_v47 }
 0x61b   :  { %v2301_v7 = vadd.f32 1e-05, %v2299_v55 }
 0x61c   :  { %v2329_v62 = vpop.permute.xlu1 %2328  ;;  %v2334_v25 = vpop.permute.xlu0 %2333 }
 0x61d   :  { %3766 = vrsqrt.f32 %v2301_v7 }
 0x626   :  { %v3765_v26 = vpop.eup %3764 }
 0x627   :  { %v2304_v12 = vmul.f32 %v3765_v26, %v2282_v29  ;;  %v2305_v22 = vmul.f32 %v3765_v26, %v2283_v38 }
 0x629   :  { %v2320_v14 = vmul.f32 %v2313_v49, %v2304_v12  ;;  %v2321_v54 = vmul.f32 %v2313_v49, %v2305_v22 }
 0x62a   :  { %v3767_v56 = vpop.eup %3766 }
 0x62b   :  { %v2306_v52 = vmul.f32 %v3767_v56, %v2284_v41  ;;  %v2307_v15 = vmul.f32 %v3767_v56, %v2285_v42  ;;  %v5018_v16 = vadd.f32 %v2329_v62, %v2320_v14  ;;  %v5020_v44 = vadd.f32 %v2329_v62, %v2321_v54 }
 0x62d   :  { %v2322_v8 = vmul.f32 %v2318_v51, %v2306_v52  ;;  %v2323_v9 = vmul.f32 %v2318_v51, %v2307_v15  ;;  %v5023_v46 = vmul.f32 0.70710677, %v5018_v16  ;;  %v5026_v28 = vmul.f32 0.70710677, %v5020_v44 }
 0x62f   :  { %v5028_v63 = vadd.f32 %v2334_v25, %v2322_v8  ;;  %v5030_v31 = vadd.f32 %v2334_v25, %v2323_v9  ;;  %v2352_v13 = vand.u32 2147483647, %v5023_v46  ;;  %v2353_v60 = vand.u32 2147483647, %v5026_v28 }
 0x630   :  { %vm2344_vm6 = vcmp.ge.f32.partialorder %v5023_v46, 0.0  ;;  %vm2345_vm0 = vcmp.ge.f32.partialorder %v5026_v28, 0.0 }
 0x631   :  { %v5035_v11 = vmul.f32 0.70710677, %v5028_v63  ;;  %v5038_v4 = vmul.f32 0.70710677, %v5030_v31  ;;  %v2356_v6 = vmul.f32 0.3275911, %v2352_v13 }
 0x632   :  { %v2357_v59 = vmul.f32 0.3275911, %v2353_v60  ;;  %v2404_v50 = vsub.f32 0.0, %v2352_v13  ;;  %v2405_v29 = vsub.f32 0.0, %v2353_v60 }
 0x633   :  { %v2354_v58 = vand.u32 2147483647, %v5035_v11  ;;  %v2355_v10 = vand.u32 2147483647, %v5038_v4  ;;  %v2360_v18 = vadd.f32 1.0, %v2356_v6  ;;  %vm2346_vm10 = vcmp.ge.f32.partialorder %v5035_v11, 0.0 }
 0x634   :  { %v2361_v19 = vadd.f32 1.0, %v2357_v59  ;;  %v2408_v40 = vmul.f32 %v2404_v50, %v2352_v13  ;;  %v2409_v23 = vmul.f32 %v2405_v29, %v2353_v60  ;;  %vm2347_vm8 = vcmp.ge.f32.partialorder %v5038_v4, 0.0 }
 0x635   :  { %v2358_v20 = vmul.f32 0.3275911, %v2354_v58  ;;  %v2359_v34 = vmul.f32 0.3275911, %v2355_v10  ;;  %3768 = vrcp.f32 %v2360_v18  ;;  %v2406_v38 = vsub.f32 0.0, %v2354_v58 }
 0x636   :  { %3770 = vrcp.f32 %v2361_v19  ;;  %v2407_v57 = vsub.f32 0.0, %v2355_v10  ;;  %v2412_v1 = vmul.f32 1.442695, %v2408_v40  ;;  %v2414_v35 = vmul.f32 1.442695, %v2409_v23 }
 0x637   :  { %v2362_v36 = vadd.f32 1.0, %v2358_v20  ;;  %v2363_v37 = vadd.f32 1.0, %v2359_v34  ;;  %v2410_v41 = vmul.f32 %v2406_v38, %v2354_v58  ;;  %v2350_v28 = vsel %vm2346_vm10, 1.0, %v3841_v48 }
 0x638   :  { %v2411_v42 = vmul.f32 %v2407_v57, %v2355_v10  ;;  %v2351_v11 = vsel %vm2347_vm8, 1.0, %v3841_v48 }
 0x639   :  { %3772 = vrcp.f32 %v2362_v36  ;;  %v2416_v51 = vmul.f32 1.442695, %v2410_v41 }
 0x63a   :  { %3774 = vrcp.f32 %v2363_v37  ;;  %v2418_v33 = vmul.f32 1.442695, %v2411_v42 }
 0x63b   :  { %3776 = vpow2.f32 %v2412_v1 }
 0x63c   :  { %3778 = vpow2.f32 %v2414_v35 }
 0x63d   :  { %3780 = vpow2.f32 %v2416_v51 }
 0x63e   :  { %3782 = vpow2.f32 %v2418_v33 }
 0x642   :  { %v3769_v5 = vpop.eup %3768 }
 0x643   :  { %v2368_v17 = vmul.f32 1.0614054, %v3769_v5  ;;  %v3771_v2 = vpop.eup %3770 }
 0x644   :  { %v2369_v24 = vmul.f32 1.0614054, %v3771_v2 }
 0x645   :  { %v3327_v39 = vadd.f32 -1.4531521, %v2368_v17 }
 0x646   :  { %v3773_v3 = vpop.eup %3772  ;;  %v3328_v53 = vadd.f32 -1.4531521, %v2369_v24 }
 0x647   :  { %v3775_v45 = vpop.eup %3774  ;;  %v2370_v49 = vmul.f32 1.0614054, %v3773_v3  ;;  %v2376_v47 = vmul.f32 %v3769_v5, %v3327_v39 }
 0x648   :  { %v2371_v43 = vmul.f32 1.0614054, %v3775_v45  ;;  %v2377_v26 = vmul.f32 %v3771_v2, %v3328_v53  ;;  %v3777_v36 = vpop.eup %3776 }
 0x649   :  { %v3329_v55 = vadd.f32 -1.4531521, %v2370_v49  ;;  %v2380_v12 = vadd.f32 1.4214138, %v2376_v47  ;;  %v3779_v57 = vpop.eup %3778  ;;  %v2433_v47 = vmul.f32 0.5, %v5020_v44 }
 0x64a   :  { %v3330_v7 = vadd.f32 -1.4531521, %v2371_v43  ;;  %v2381_v54 = vadd.f32 1.4214138, %v2377_v26  ;;  %v3781_v23 = vpop.eup %3780 }
 0x64b   :  { %v2378_v22 = vmul.f32 %v3773_v3, %v3329_v55  ;;  %v2384_v56 = vmul.f32 %v3769_v5, %v2380_v12  ;;  %v3783_v1 = vpop.eup %3782  ;;  %v2435_v12 = vmul.f32 0.5, %v5030_v31  ;;  %v3737_v31 = vld [vmem:[%s5215_s12 + $0x28] sm:$0xff]  }
 0x64c   :  { %v2379_v14 = vmul.f32 %v3775_v45, %v3330_v7  ;;  %v2385_v15 = vmul.f32 %v3771_v2, %v2381_v54  ;;  %v2434_v7 = vmul.f32 0.5, %v5028_v63 }
 0x64d   :  { %v2382_v62 = vadd.f32 1.4214138, %v2378_v22  ;;  %v3331_v8 = vadd.f32 -0.28449672, %v2384_v56 }
 0x64e   :  { %v2383_v52 = vadd.f32 1.4214138, %v2379_v14  ;;  %v3332_v13 = vadd.f32 -0.28449672, %v2385_v15 }
 0x64f   :  { %v2386_v9 = vmul.f32 %v3773_v3, %v2382_v62  ;;  %v2392_v60 = vmul.f32 %v3769_v5, %v3331_v8  ;;  %v3827_v8 = vld [vmem:[#allocation2 + $0x40] sm:$0xff] }
 0x650   :  { %v2387_v25 = vmul.f32 %v3775_v45, %v2383_v52  ;;  %v2393_v58 = vmul.f32 %v3771_v2, %v3332_v13  ;;  %v3714_v63 = vpack.i.bf16 %v3827_v8, %v3827_v8 }
 0x651   :  { %v3333_v6 = vadd.f32 -0.28449672, %v2386_v9  ;;  %v2396_v10 = vadd.f32 0.2548296, %v2392_v60 }
 0x652   :  { %v3334_v59 = vadd.f32 -0.28449672, %v2387_v25  ;;  %v2397_v20 = vadd.f32 0.2548296, %v2393_v58 }
 0x653   :  { %v2394_v18 = vmul.f32 %v3773_v3, %v3333_v6  ;;  %v2400_v34 = vmul.f32 %v3769_v5, %v2396_v10  ;;  %v2348_v5 = vsel %vm2344_vm6, 1.0, %v3841_v48  ;;  %vm5323_vm6 = vmmov %vm5319_vm1 }
 0x654   :  { %v2395_v19 = vmul.f32 %v3775_v45, %v3334_v59  ;;  %v2401_v29 = vmul.f32 %v3771_v2, %v2397_v20 }
 0x655   :  { %v2398_v37 = vadd.f32 0.2548296, %v2394_v18  ;;  %v2420_v38 = vmul.f32 %v3777_v36, %v2400_v34 }
 0x656   :  { %v2399_v50 = vadd.f32 0.2548296, %v2395_v19  ;;  %v2421_v42 = vmul.f32 %v3779_v57, %v2401_v29 }
 0x657   :  { %v2402_v40 = vmul.f32 %v3773_v3, %v2398_v37  ;;  %v2424_v17 = vsub.f32 1.0, %v2420_v38  ;;  %v2349_v3 = vsel %vm2345_vm0, 1.0, %v3841_v48  ;;  %vm5324_vm0 = vmmov %vm5319_vm1 }
 0x658   :  { %v2403_v41 = vmul.f32 %v3775_v45, %v2399_v50  ;;  %v2425_v46 = vsub.f32 1.0, %v2421_v42  ;;  %v2432_v45 = vmul.f32 0.5, %v5018_v16  ;;  %vm5325_vm10 = vmmov %vm5324_vm0 }
 0x659   :  { %v2422_v24 = vmul.f32 %v3781_v23, %v2402_v40  ;;  %v2428_v2 = vmul.f32 %v2424_v17, %v2348_v5 }
 0x65a   :  { %v2423_v39 = vmul.f32 %v3783_v1, %v2403_v41  ;;  %v2429_v51 = vmul.f32 %v2425_v46, %v2349_v3  ;;  %v2632_v3 = vld [vmem:[%s5216_s13] sm:$0xff] }
 0x65b   :  { %v2426_v35 = vsub.f32 1.0, %v2422_v24  ;;  %v2436_v33 = vadd.f32 1.0, %v2428_v2 }
 0x65c   :  { %v2427_v49 = vsub.f32 1.0, %v2423_v39  ;;  %v2437_v4 = vadd.f32 1.0, %v2429_v51 }
 0x65d   :  { %v2430_v43 = vmul.f32 %v2426_v35, %v2350_v28  ;;  %v2440_v55 = vmul.f32 %v2436_v33, %v2432_v45  ;;  %v2648_v45 = vld [vmem:[%s5217_s14] sm:$0xff]  ;;  %v2649_v28 = vld [vmem:[%s5217_s14 + $0x8] sm:$0xff] }
 0x65e   :  { %v2431_v53 = vmul.f32 %v2427_v49, %v2351_v11  ;;  %v2441_v16 = vmul.f32 %v2437_v4, %v2433_v47 }
 0x65f   :  { %v2438_v26 = vadd.f32 1.0, %v2430_v43 }
 0x660   :  { %v2439_v22 = vadd.f32 1.0, %v2431_v53  ;;  %2445 = vst.msk [vmem:[#allocation2 + $0x10] sm:$0xff] %vm5316_vm9, %v2441_v16 }
 0x661   :  { %v2442_v14 = vmul.f32 %v2438_v26, %v2434_v7 }
 0x662   :  { %v2443_v54 = vmul.f32 %v2439_v22, %v2435_v12 }
 0x663   :  { %v2492_v9 = vpack.c.bf16 %v2442_v14, %v2440_v55 }
 0x664   :  { %2447 = vst.msk [vmem:[#allocation2 + $0x30] sm:$0xff] %vm5317_vm2, %v2443_v54 }
 0x667   :  { %v2450_v56 = vld [vmem:[#allocation2 + $0x10] sm:$0xff] }
 0x668   :  { %v3704_v62 = vpack.i.bf16 %v2450_v56, %v2440_v55 }
 0x66a   :  { %3705 = vrot.lane.b32.xlu1 %v3704_v62, %s3842_s7 }
 0x66b   :  { %v2453_v52 = vld [vmem:[#allocation2 + $0x30] sm:$0xff] }
 0x66c   :  { %v3709_v44 = vpack.i.bf16 %v2453_v52, %v2442_v14  ;;  %v2493_v15 = vpack.c.bf16 %v2453_v52, %v2450_v56  ;;  %v2633_v56 = vld [vmem:[%s5216_s13 + $0x8] sm:$0xff] }
 0x66e   :  { %3710 = vrot.lane.b32.xlu0 %v3709_v44, %s3842_s7  ;;  %2516 = vmatprep.subr.bf16.mxu0 %v2493_v15 }
 0x66f   :  { %2517 = vmatpush1.bf16.msra.mxu0 %v2492_v9  ;;  %3715 = vrot.lane.b32.xlu1 %v3714_v63, %s3842_s7 }
 0x672   :  { %3340 = vmatmul.mubr.msk.bf16.vlgmr.msra.gmra.mxu0 %vm1565_vm13, %v3737_v31 }
 0x673   :  { %2812 = vmatprep.mubr.bf16.mxu0 %v3828_v0  ;;  %v3738_v0 = vld [vmem:[%s5215_s12 + $0x20] sm:$0xff]  }
 0x6dc   :  { %v3706_v25 = vpop.permute.xlu1 %3705 }
 0x6dd   :  { %v3708_v13 = vunpack.i.h.bf16 %v3706_v25  ;;  %v3707_v60 = vunpack.i.l.bf16 %v3706_v25 }
 0x6df   :  { %v2473_v18 = vsel %vm1782_vm3, %v3707_v60, %v3708_v13 }
 0x6e0   :  { %v3711_v6 = vpop.permute.xlu0 %3710 }
 0x6e1   :  { %v3713_v59 = vunpack.i.h.bf16 %v3711_v6  ;;  %v3712_v58 = vunpack.i.l.bf16 %v3711_v6  ;;  %v3716_v10 = vpop.permute.xlu1 %3715 }
 0x6e2   :  { %v3718_v20 = vunpack.i.h.bf16 %v3716_v10  ;;  %v3717_v34 = vunpack.i.l.bf16 %v3716_v10 }
 0x6e3   :  { %v2475_v19 = vsel %vm1782_vm3, %v3712_v58, %v3713_v59 }
 0x6e4   :  { %v3343_v36 = vpack.c.bf16 %v2475_v19, %v2473_v18  ;;  %v2474_v37 = vsel %vm1782_vm3, %v3718_v20, %v3712_v58  ;;  %v2472_v50 = vsel %vm1782_vm3, %v3717_v34, %v3707_v60  ;;  %vm5318_vm3 = vmmov %vm5317_vm2 }
 0x6e5   :  { %v3346_v29 = vpack.c.bf16 %v2474_v37, %v2472_v50 }
 0x6e6   :  { %3344 = vmatprep.subr.msk.bf16.mxu1 %vm3276_vm5, %v3343_v36  ;;  %vm5321_vm5 = vmmov %vm5319_vm1 }
 0x6e7   :  { %3347 = vmatpush1.bf16.msk.msra.mxu1 %vm3279_vm12, %v3346_v29 }
 0x6ea   :  { %3348 = vmatmul.mubr.msk.bf16.vlgmr.msra.gmra.mxu1 %vm1565_vm13, %v3738_v0 }
 0x6eb   :  { %3073 = vmatprep.mubr.f32.mxu1 %v3827_v8 }
 0x732   :  { %v2536_v38 = vpop.f32.mrf.mxu0 }
 0x734   :  { %v2538_v57 = vpop.f32.mrf.mxu0 }
 0x736   :  { %v2540_v23 = vpop.f32.mrf.mxu0 }
 0x738   :  { %v2542_v24 = vpop.f32.mrf.mxu0 }
 0x7aa   :  { %v2587_v40 = vpop.f32.mrf.mxu1 }
 0x7ab   :  { %v2588_v42 = vadd.f32 %v2587_v40, %v2536_v38 }
 0x7ac   :  { %v2589_v61 = vpop.f32.mrf.mxu1 }
 0x7ad   :  { %v2590_v41 = vadd.f32 %v2589_v61, %v2538_v57 }
 0x7ae   :  { %v2591_v17 = vpop.f32.mrf.mxu1 }
 0x7af   :  { %v2596_v1 = vsel %vm5318_vm3, %v2590_v41, 0.0  ;;  %v2592_v21 = vadd.f32 %v2591_v17, %v2540_v23 }
 0x7b0   :  { %v2593_v5 = vpop.f32.mrf.mxu1  ;;  %v2597_v39 = vadd.f32 %v2596_v1, %v2588_v42 }
 0x7b1   :  { %v2594_v46 = vadd.f32 %v2593_v5, %v2542_v24 }
 0x7b2   :  { %2598 = vadd.xlane.f32.xlu0 %v2597_v39 }
 0x7b3   :  { %v2600_v2 = vsel %vm5319_vm1, %v2594_v46, 0.0  ;;  %vm3100_vm1 = vcmp.lt.s32.totalorder %v277_v27, 192 }
 0x7b4   :  { %v2601_v35 = vadd.f32 %v2600_v2, %v2592_v21 }
 0x7b6   :  { %2602 = vadd.xlane.f32.xlu1 %v2601_v35 }
 0x7c7   :  { %2636 = vperm.xlu1 %3388, %v2632_v3  }
 0x7cb   :  { %2652 = vperm.xlu1 %3388, %v2648_v45  }
 0x7cf   :  { %2657 = vperm.xlu1 %3388, %v2649_v28  }
 0x83b   :  { %v2599_v49 = vpop.xlane.xlu0 %2598 }
 0x83c   :  { %v2604_v51 = vmul.f32 0.0052083335, %v2599_v49 }
 0x83e   :  { %v2606_v33 = vsub.f32 %v2588_v42, %v2604_v51  ;;  %v2607_v11 = vsub.f32 %v2590_v41, %v2604_v51 }
 0x83f   :  { %v2603_v43 = vpop.xlane.xlu1 %2602 }
 0x840   :  { %v2605_v53 = vmul.f32 0.0052083335, %v2603_v43  ;;  %v2610_v47 = vmul.f32 %v2606_v33, %v2606_v33  ;;  %v2611_v4 = vmul.f32 %v2607_v11, %v2607_v11 }
 0x842   :  { %v2608_v55 = vsub.f32 %v2592_v21, %v2605_v53  ;;  %v2609_v7 = vsub.f32 %v2594_v46, %v2605_v53  ;;  %v2614_v26 = vsel %vm5320_vm7, %v2611_v4, 0.0 }
 0x843   :  { %v2615_v12 = vadd.f32 %v2614_v26, %v2610_v47  ;;  %v2637_v9 = vpop.permute.xlu1 %2636 }
 0x844   :  { %v2612_v22 = vmul.f32 %v2608_v55, %v2608_v55  ;;  %v2613_v16 = vmul.f32 %v2609_v7, %v2609_v7 }
 0x845   :  { %2616 = vadd.xlane.f32.xlu0 %v2615_v12 }
 0x846   :  { %v2618_v14 = vsel %vm5321_vm5, %v2613_v16, 0.0 }
 0x847   :  { %v2619_v54 = vadd.f32 %v2618_v14, %v2612_v22  ;;  %v2653_v60 = vpop.permute.xlu1 %2652 }
 0x849   :  { %2620 = vadd.xlane.f32.xlu0 %v2619_v54 }
 0x84b   :  { %v2658_v29 = vpop.permute.xlu1 %2657 }
 0x85f   :  { %2641 = vperm.xlu0 %3387, %v2633_v56  }
 0x8ce   :  { %v2617_v62 = vpop.xlane.xlu0 %2616 }
 0x8cf   :  { %v2622_v52 = vmul.f32 0.0052083335, %v2617_v62 }
 0x8d1   :  { %v2624_v44 = vadd.f32 1e-05, %v2622_v52 }
 0x8d2   :  { %v2621_v15 = vpop.xlane.xlu0 %2620 }
 0x8d3   :  { %3784 = vrsqrt.f32 %v2624_v44  ;;  %v2623_v8 = vmul.f32 0.0052083335, %v2621_v15 }
 0x8d5   :  { %v2625_v63 = vadd.f32 1e-05, %v2623_v8 }
 0x8d7   :  { %3786 = vrsqrt.f32 %v2625_v63 }
 0x8da   :  { %v2642_v34 = vpop.permute.xlu0 %2641 }
 0x8e0   :  { %v3785_v31 = vpop.eup %3784 }
 0x8e1   :  { %v2628_v25 = vmul.f32 %v3785_v31, %v2606_v33  ;;  %v2629_v13 = vmul.f32 %v3785_v31, %v2607_v11 }
 0x8e3   :  { %v2645_v6 = vmul.f32 %v2637_v9, %v2629_v13  ;;  %v2644_v59 = vmul.f32 %v2637_v9, %v2628_v25 }
 0x8e4   :  { %v3787_v58 = vpop.eup %3786 }
 0x8e5   :  { %v2630_v10 = vmul.f32 %v3787_v58, %v2608_v55  ;;  %v2631_v18 = vmul.f32 %v3787_v58, %v2609_v7  ;;  %v5098_v19 = vadd.f32 %v2653_v60, %v2645_v6  ;;  %v5100_v20 = vadd.f32 %v2653_v60, %v2644_v59 }
 0x8e7   :  { %v2646_v36 = vmul.f32 %v2642_v34, %v2630_v10  ;;  %v2647_v37 = vmul.f32 %v2642_v34, %v2631_v18  ;;  %v5103_v50 = vmul.f32 0.70710677, %v5098_v19  ;;  %v5106_v0 = vmul.f32 0.70710677, %v5100_v20 }
 0x8e9   :  { %v5108_v38 = vadd.f32 %v2658_v29, %v2646_v36  ;;  %v5110_v57 = vadd.f32 %v2658_v29, %v2647_v37  ;;  %v2677_v40 = vand.u32 2147483647, %v5103_v50  ;;  %v2676_v41 = vand.u32 2147483647, %v5106_v0 }
 0x8ea   :  { %vm2669_vm12 = vcmp.ge.f32.partialorder %v5103_v50, 0.0  ;;  %vm2668_vm11 = vcmp.ge.f32.partialorder %v5106_v0, 0.0  ;;  %v2756_v0 = vmul.f32 0.5, %v5100_v20 }
 0x8eb   :  { %v5114_v23 = vmul.f32 0.70710677, %v5108_v38  ;;  %v5117_v61 = vmul.f32 0.70710677, %v5110_v57  ;;  %v2681_v42 = vmul.f32 0.3275911, %v2677_v40 }
 0x8ec   :  { %v2680_v46 = vmul.f32 0.3275911, %v2676_v41  ;;  %v2729_v3 = vsub.f32 0.0, %v2677_v40  ;;  %v2728_v11 = vsub.f32 0.0, %v2676_v41 }
 0x8ed   :  { %v2678_v17 = vand.u32 2147483647, %v5114_v23  ;;  %v2679_v1 = vand.u32 2147483647, %v5117_v61  ;;  %v2685_v24 = vadd.f32 1.0, %v2681_v42  ;;  %vm2670_vm15 = vcmp.ge.f32.partialorder %v5114_v23, 0.0 }
 0x8ee   :  { %v2684_v35 = vadd.f32 1.0, %v2680_v46  ;;  %v2733_v49 = vmul.f32 %v2729_v3, %v2677_v40  ;;  %v2732_v22 = vmul.f32 %v2728_v11, %v2676_v41  ;;  %vm2671_vm14 = vcmp.ge.f32.partialorder %v5117_v61, 0.0 }
 0x8ef   :  { %v2682_v5 = vmul.f32 0.3275911, %v2678_v17  ;;  %v2683_v39 = vmul.f32 0.3275911, %v2679_v1  ;;  %3788 = vrcp.f32 %v2685_v24  ;;  %v2730_v45 = vsub.f32 0.0, %v2678_v17 }
 0x8f0   :  { %v2731_v28 = vsub.f32 0.0, %v2679_v1  ;;  %v2738_v47 = vmul.f32 1.442695, %v2733_v49  ;;  %v2736_v63 = vmul.f32 1.442695, %v2732_v22  ;;  %v2759_v61 = vmul.f32 0.5, %v5110_v57 }
 0x8f1   :  { %v2686_v21 = vadd.f32 1.0, %v2682_v5  ;;  %v2687_v2 = vadd.f32 1.0, %v2683_v39  ;;  %v2734_v33 = vmul.f32 %v2730_v45, %v2678_v17 }
 0x8f2   :  { %v2735_v43 = vmul.f32 %v2731_v28, %v2679_v1 }
 0x8f3   :  { %3790 = vrcp.f32 %v2686_v21  ;;  %v2740_v12 = vmul.f32 1.442695, %v2734_v33  ;;  %v2673_v33 = vsel %vm2669_vm12, 1.0, %v3841_v48 }
 0x8f4   :  { %3792 = vrcp.f32 %v2687_v2  ;;  %v2742_v16 = vmul.f32 1.442695, %v2735_v43 }
 0x8f5   :  { %3794 = vrcp.f32 %v2684_v35 }
 0x8f6   :  { %3796 = vpow2.f32 %v2738_v47 }
 0x8f7   :  { %3798 = vpow2.f32 %v2740_v12 }
 0x8f8   :  { %3800 = vpow2.f32 %v2742_v16 }
 0x8f9   :  { %3802 = vpow2.f32 %v2736_v63 }
 0x8fc   :  { %v3789_v51 = vpop.eup %3788 }
 0x8fd   :  { %v2693_v53 = vmul.f32 1.0614054, %v3789_v51 }
 0x8ff   :  { %v3350_v55 = vadd.f32 -1.4531521, %v2693_v53 }
 0x900   :  { %v3791_v4 = vpop.eup %3790 }
 0x901   :  { %v3793_v7 = vpop.eup %3792  ;;  %v2694_v26 = vmul.f32 1.0614054, %v3791_v4  ;;  %v2701_v54 = vmul.f32 %v3789_v51, %v3350_v55 }
 0x902   :  { %v2695_v14 = vmul.f32 1.0614054, %v3793_v7  ;;  %v3795_v62 = vpop.eup %3794 }
 0x903   :  { %v3351_v56 = vadd.f32 -1.4531521, %v2694_v26  ;;  %v2705_v44 = vadd.f32 1.4214138, %v2701_v54  ;;  %v2692_v8 = vmul.f32 1.0614054, %v3795_v62  ;;  %v3797_v1 = vpop.eup %3796 }
 0x904   :  { %v3352_v52 = vadd.f32 -1.4531521, %v2695_v14  ;;  %v3799_v35 = vpop.eup %3798  ;;  %v2757_v54 = vmul.f32 0.5, %v5098_v19  ;;  %v3739_v19 = vld [vmem:[%s5218_s15] sm:$0xff]  }
 0x905   :  { %v2702_v15 = vmul.f32 %v3791_v4, %v3351_v56  ;;  %v2709_v31 = vmul.f32 %v3789_v51, %v2705_v44  ;;  %v3349_v13 = vadd.f32 -1.4531521, %v2692_v8  ;;  %v3801_v28 = vpop.eup %3800 }
 0x906   :  { %v2703_v9 = vmul.f32 %v3793_v7, %v3352_v52  ;;  %v3803_v47 = vpop.eup %3802  ;;  %v2758_v52 = vmul.f32 0.5, %v5108_v38 }
 0x907   :  { %v2706_v25 = vadd.f32 1.4214138, %v2702_v15  ;;  %v3354_v6 = vadd.f32 -0.28449672, %v2709_v31  ;;  %v2700_v58 = vmul.f32 %v3795_v62, %v3349_v13 }
 0x908   :  { %v2707_v60 = vadd.f32 1.4214138, %v2703_v9 }
 0x909   :  { %v2710_v59 = vmul.f32 %v3791_v4, %v2706_v25  ;;  %v2717_v18 = vmul.f32 %v3789_v51, %v3354_v6  ;;  %v2704_v36 = vadd.f32 1.4214138, %v2700_v58 }
 0x90a   :  { %v2711_v10 = vmul.f32 %v3793_v7, %v2707_v60 }
 0x90b   :  { %v3355_v34 = vadd.f32 -0.28449672, %v2710_v59  ;;  %v2721_v29 = vadd.f32 0.2548296, %v2717_v18  ;;  %v2708_v41 = vmul.f32 %v3795_v62, %v2704_v36  ;;  %v2860_v18 = vld [vmem:[%s5219_s16 + $0x8] sm:$0xff]  ;;  %v2875_v36 = vld [vmem:[%s5220_s17] sm:$0xff] }
 0x90c   :  { %v3356_v37 = vadd.f32 -0.28449672, %v2711_v10 }
 0x90d   :  { %v2718_v40 = vmul.f32 %v3791_v4, %v3355_v34  ;;  %v2725_v17 = vmul.f32 %v3789_v51, %v2721_v29  ;;  %v3353_v5 = vadd.f32 -0.28449672, %v2708_v41  ;;  %v2876_v34 = vld [vmem:[%s5220_s17 + $0x8] sm:$0xff] }
 0x90e   :  { %v2719_v42 = vmul.f32 %v3793_v7, %v3356_v37  ;;  %v25_v37 = vstv %s5221_s19 }
 0x90f   :  { %v2722_v24 = vadd.f32 0.2548296, %v2718_v40  ;;  %v2745_v46 = vmul.f32 %v3797_v1, %v2725_v17  ;;  %v2716_v2 = vmul.f32 %v3795_v62, %v3353_v5  ;;  %26 = vst [vmem:[#allocation3] sm:$0x1] %v25_v37 }
 0x910   :  { %v2723_v39 = vadd.f32 0.2548296, %v2719_v42 }
 0x911   :  { %v2726_v21 = vmul.f32 %v3791_v4, %v2722_v24  ;;  %v2749_v45 = vsub.f32 1.0, %v2745_v46  ;;  %v2720_v11 = vadd.f32 0.2548296, %v2716_v2  ;;  %v2674_v4 = vsel %vm2670_vm15, 1.0, %v3841_v48 }
 0x912   :  { %v2727_v3 = vmul.f32 %v3793_v7, %v2723_v39  ;;  %v2675_v7 = vsel %vm2671_vm14, 1.0, %v3841_v48 }
 0x913   :  { %v2746_v49 = vmul.f32 %v3799_v35, %v2726_v21  ;;  %v2753_v43 = vmul.f32 %v2749_v45, %v2673_v33  ;;  %v2724_v50 = vmul.f32 %v3795_v62, %v2720_v11  ;;  %v2672_v62 = vsel %vm2668_vm11, 1.0, %v3841_v48 }
 0x914   :  { %v2747_v51 = vmul.f32 %v3801_v28, %v2727_v3 }
 0x915   :  { %v2750_v53 = vsub.f32 1.0, %v2746_v49  ;;  %v2744_v23 = vmul.f32 %v3803_v47, %v2724_v50  ;;  %v2761_v22 = vadd.f32 1.0, %v2753_v43  ;;  %v2859_v49 = vld [vmem:[%s5219_s16] sm:$0xff] }
 0x916   :  { %v2751_v55 = vsub.f32 1.0, %v2747_v51  ;;  %v2996_v33 = vld [vmem:[#allocation3] sm:$0x1] }
 0x917   :  { %v2754_v26 = vmul.f32 %v2750_v53, %v2674_v4  ;;  %v2748_v14 = vsub.f32 1.0, %v2744_v23  ;;  %v2765_v15 = vmul.f32 %v2761_v22, %v2757_v54 }
 0x918   :  { %v2755_v12 = vmul.f32 %v2751_v55, %v2675_v7 }
 0x919   :  { %v2762_v16 = vadd.f32 1.0, %v2754_v26  ;;  %v2752_v44 = vmul.f32 %v2748_v14, %v2672_v62 }
 0x91a   :  { %v2763_v56 = vadd.f32 1.0, %v2755_v12 }
 0x91b   :  { %v2766_v63 = vmul.f32 %v2762_v16, %v2758_v52  ;;  %v2760_v9 = vadd.f32 1.0, %v2752_v44 }
 0x91c   :  { %v2767_v8 = vmul.f32 %v2763_v56, %v2759_v61 }
 0x91d   :  { %v2764_v25 = vmul.f32 %v2760_v9, %v2756_v0 }
 0x91e   :  { %v2771_v31 = vpack.c.bf16 %v2767_v8, %v2765_v15 }
 0x91f   :  { %v2770_v13 = vpack.c.bf16 %v2766_v63, %v2764_v25 }
 0x920   :  { %2794 = vmatprep.subr.bf16.mxu0 %v2771_v31 }
 0x921   :  { %2795 = vmatpush1.bf16.msra.mxu0 %v2770_v13 }
 0x924   :  { %3358 = vmatmul.mubr.msk.bf16.vlgmr.msra.gmra.mxu0 %vm1565_vm13, %v3739_v19 }
 0x9e4   :  { %v2814_v57 = vpop.f32.mrf.mxu0 }
 0x9e6   :  { %v2816_v38 = vpop.f32.mrf.mxu0 }
 0x9e7   :  { %v2823_v60 = vsel %vm5322_vm4, %v2816_v38, 0.0 }
 0x9e8   :  { %v2824_v6 = vadd.f32 %v2823_v60, %v2814_v57  ;;  %v2818_v59 = vpop.f32.mrf.mxu0 }
 0x9ea   :  { %2825 = vadd.xlane.f32.xlu1 %v2824_v6  ;;  %v2820_v20 = vpop.f32.mrf.mxu0 }
 0x9eb   :  { %v2827_v58 = vsel %vm5323_vm6, %v2820_v20, 0.0 }
 0x9ec   :  { %v2828_v10 = vadd.f32 %v2827_v58, %v2818_v59 }
 0x9ee   :  { %2829 = vadd.xlane.f32.xlu0 %v2828_v10 }
 0x9fb   :  { %2868 = vperm.xlu1 %3388, %v2860_v18  }
 0x9ff   :  { %2884 = vperm.xlu1 %3388, %v2876_v34  }
 0xa03   :  { %2879 = vperm.xlu1 %3388, %v2875_v36  }
 0xa73   :  { %v2826_v29 = vpop.xlane.xlu1 %2825 }
 0xa74   :  { %v2831_v40 = vmul.f32 0.0052083335, %v2826_v29 }
 0xa76   :  { %v2833_v41 = vsub.f32 %v2814_v57, %v2831_v40  ;;  %v2834_v42 = vsub.f32 %v2816_v38, %v2831_v40 }
 0xa77   :  { %v2830_v17 = vpop.xlane.xlu0 %2829  ;;  %v2869_v4 = vpop.permute.xlu1 %2868 }
 0xa78   :  { %v2837_v1 = vmul.f32 %v2833_v41, %v2833_v41  ;;  %v2838_v24 = vmul.f32 %v2834_v42, %v2834_v42  ;;  %v2832_v5 = vmul.f32 0.0052083335, %v2830_v17 }
 0xa7a   :  { %v2835_v39 = vsub.f32 %v2818_v59, %v2832_v5  ;;  %v2836_v46 = vsub.f32 %v2820_v20, %v2832_v5  ;;  %v2841_v21 = vsel %vm5324_vm0, %v2838_v24, 0.0 }
 0xa7b   :  { %v2842_v2 = vadd.f32 %v2841_v21, %v2837_v1  ;;  %v2885_v55 = vpop.permute.xlu1 %2884 }
 0xa7c   :  { %v2839_v35 = vmul.f32 %v2835_v39, %v2835_v39  ;;  %v2840_v3 = vmul.f32 %v2836_v46, %v2836_v46 }
 0xa7d   :  { %2843 = vadd.xlane.f32.xlu0 %v2842_v2 }
 0xa7e   :  { %v2845_v45 = vsel %vm5325_vm10, %v2840_v3, 0.0 }
 0xa7f   :  { %v2846_v28 = vadd.f32 %v2845_v45, %v2839_v35  ;;  %v2880_v61 = vpop.permute.xlu1 %2879 }
 0xa81   :  { %2847 = vadd.xlane.f32.xlu0 %v2846_v28 }
 0xa97   :  { %2863 = vperm.xlu0 %3387, %v2859_v49  }
 0xa9b   :  { %2999 = vperm.xlu0 %3387, %v2996_v33  }
 0xb06   :  { %v2844_v11 = vpop.xlane.xlu0 %2843 }
 0xb07   :  { %v2849_v51 = vmul.f32 0.0052083335, %v2844_v11 }
 0xb09   :  { %v2851_v43 = vadd.f32 1e-05, %v2849_v51 }
 0xb0a   :  { %v2848_v53 = vpop.xlane.xlu0 %2847 }
 0xb0b   :  { %3804 = vrsqrt.f32 %v2851_v43  ;;  %v2850_v50 = vmul.f32 0.0052083335, %v2848_v53 }
 0xb0d   :  { %v2852_v47 = vadd.f32 1e-05, %v2850_v50 }
 0xb0f   :  { %3806 = vrsqrt.f32 %v2852_v47 }
 0xb12   :  { %v2864_v12 = vpop.permute.xlu0 %2863 }
 0xb18   :  { %v3805_v7 = vpop.eup %3804 }
 0xb19   :  { %v2855_v26 = vmul.f32 %v3805_v7, %v2833_v41  ;;  %v2856_v23 = vmul.f32 %v3805_v7, %v2834_v42 }
 0xb1b   :  { %v2871_v22 = vmul.f32 %v2864_v12, %v2855_v26  ;;  %v2872_v16 = vmul.f32 %v2864_v12, %v2856_v23 }
 0xb1c   :  { %v3807_v14 = vpop.eup %3806 }
 0xb1d   :  { %v5157_v54 = vadd.f32 %v2880_v61, %v2871_v22  ;;  %v5159_v56 = vadd.f32 %v2880_v61, %v2872_v16  ;;  %v2858_v62 = vmul.f32 %v3807_v14, %v2836_v46  ;;  %v2857_v52 = vmul.f32 %v3807_v14, %v2835_v39 }
 0xb1f   :  { %v5162_v44 = vmul.f32 0.70710677, %v5157_v54  ;;  %v5165_v15 = vmul.f32 0.70710677, %v5159_v56  ;;  %v2874_v8 = vmul.f32 %v2869_v4, %v2858_v62  ;;  %v2873_v63 = vmul.f32 %v2869_v4, %v2857_v52 }
 0xb21   :  { %v2903_v0 = vand.u32 2147483647, %v5162_v44  ;;  %v2904_v9 = vand.u32 2147483647, %v5165_v15  ;;  %v5169_v31 = vadd.f32 %v2885_v55, %v2874_v8  ;;  %v5171_v25 = vadd.f32 %v2885_v55, %v2873_v63 }
 0xb22   :  { %vm2896_vm8 = vcmp.ge.f32.partialorder %v5165_v15, 0.0  ;;  %vm2895_vm9 = vcmp.ge.f32.partialorder %v5162_v44, 0.0 }
 0xb23   :  { %v2907_v13 = vmul.f32 0.3275911, %v2903_v0  ;;  %v2908_v19 = vmul.f32 0.3275911, %v2904_v9  ;;  %v5174_v57 = vmul.f32 0.70710677, %v5169_v31 }
 0xb24   :  { %v5177_v38 = vmul.f32 0.70710677, %v5171_v25  ;;  %v2955_v36 = vsub.f32 0.0, %v2903_v0  ;;  %v2956_v37 = vsub.f32 0.0, %v2904_v9 }
 0xb25   :  { %v2911_v60 = vadd.f32 1.0, %v2907_v13  ;;  %v2912_v6 = vadd.f32 1.0, %v2908_v19  ;;  %v2906_v59 = vand.u32 2147483647, %v5174_v57  ;;  %vm2898_vm2 = vcmp.ge.f32.partialorder %v5174_v57, 0.0 }
 0xb26   :  { %v2905_v20 = vand.u32 2147483647, %v5177_v38  ;;  %v2959_v29 = vmul.f32 %v2955_v36, %v2903_v0  ;;  %v2960_v40 = vmul.f32 %v2956_v37, %v2904_v9  ;;  %vm2897_vm3 = vcmp.ge.f32.partialorder %v5177_v38, 0.0 }
 0xb27   :  { %3808 = vrcp.f32 %v2911_v60  ;;  %v2910_v58 = vmul.f32 0.3275911, %v2906_v59  ;;  %v2958_v41 = vsub.f32 0.0, %v2906_v59  ;;  %v2986_v57 = vmul.f32 0.5, %v5169_v31 }
 0xb28   :  { %3810 = vrcp.f32 %v2912_v6  ;;  %v2909_v10 = vmul.f32 0.3275911, %v2905_v20  ;;  %v2957_v42 = vsub.f32 0.0, %v2905_v20  ;;  %v2963_v5 = vmul.f32 1.442695, %v2959_v29 }
 0xb29   :  { %v2914_v18 = vadd.f32 1.0, %v2910_v58  ;;  %v2965_v39 = vmul.f32 1.442695, %v2960_v40  ;;  %v2962_v46 = vmul.f32 %v2958_v41, %v2906_v59  ;;  %v2985_v38 = vmul.f32 0.5, %v5171_v25 }
 0xb2a   :  { %v2913_v34 = vadd.f32 1.0, %v2909_v10  ;;  %v2961_v35 = vmul.f32 %v2957_v42, %v2905_v20  ;;  %v3846_v31 = vmov 1966171168  }
 0xb2b   :  { %3812 = vrcp.f32 %v2914_v18  ;;  %v2969_v11 = vmul.f32 1.442695, %v2962_v46  ;;  %v2899_v46 = vsel %vm2895_vm9, 1.0, %v3841_v48  ;;  %v3084_v25 = vunpack.c.l.s4 %v3846_v31 }
 0xb2c   :  { %3814 = vrcp.f32 %v2913_v34  ;;  %v2967_v50 = vmul.f32 1.442695, %v2961_v35  ;;  %v2902_v35 = vsel %vm2898_vm2, 1.0, %v3841_v48 }
 0xb2d   :  { %3816 = vpow2.f32 %v2963_v5 }
 0xb2e   :  { %3818 = vpow2.f32 %v2965_v39  ;;  %v2900_v39 = vsel %vm2896_vm8, 1.0, %v3841_v48 }
 0xb2f   :  { %3820 = vpow2.f32 %v2969_v11 }
 0xb30   :  { %3822 = vpow2.f32 %v2967_v50  ;;  %v2983_v50 = vmul.f32 0.5, %v5157_v54 }
 0xb34   :  { %v3809_v17 = vpop.eup %3808 }
 0xb35   :  { %v3811_v1 = vpop.eup %3810  ;;  %v2919_v24 = vmul.f32 1.0614054, %v3809_v17 }
 0xb36   :  { %v2920_v21 = vmul.f32 1.0614054, %v3811_v1 }
 0xb37   :  { %v3359_v2 = vadd.f32 -1.4531521, %v2919_v24 }
 0xb38   :  { %v3360_v3 = vadd.f32 -1.4531521, %v2920_v21  ;;  %v3813_v45 = vpop.eup %3812 }
 0xb39   :  { %v2927_v28 = vmul.f32 %v3809_v17, %v3359_v2  ;;  %v3815_v49 = vpop.eup %3814  ;;  %v2922_v33 = vmul.f32 1.0614054, %v3813_v45 }
 0xb3a   :  { %v2928_v51 = vmul.f32 %v3811_v1, %v3360_v3  ;;  %v2921_v53 = vmul.f32 1.0614054, %v3815_v49  ;;  %v3817_v6 = vpop.eup %3816 }
 0xb3b   :  { %v2931_v43 = vadd.f32 1.4214138, %v2927_v28  ;;  %v3362_v47 = vadd.f32 -1.4531521, %v2922_v33  ;;  %v3819_v58 = vpop.eup %3818 }
 0xb3c   :  { %v2932_v4 = vadd.f32 1.4214138, %v2928_v51  ;;  %v3361_v7 = vadd.f32 -1.4531521, %v2921_v53  ;;  %v3821_v41 = vpop.eup %3820 }
 0xb3d   :  { %v2935_v55 = vmul.f32 %v3809_v17, %v2931_v43  ;;  %v2930_v26 = vmul.f32 %v3813_v45, %v3362_v47  ;;  %v2984_v43 = vmul.f32 0.5, %v5159_v56  ;;  %v3085_v56 = vunpack.c.0.s8 %v3084_v25 }
 0xb3e   :  { %v2936_v23 = vmul.f32 %v3811_v1, %v2932_v4  ;;  %v2929_v22 = vmul.f32 %v3815_v49, %v3361_v7  ;;  %v3000_v7 = vpop.permute.xlu0 %2999 }
 0xb3f   :  { %v3363_v12 = vadd.f32 -0.28449672, %v2935_v55  ;;  %v2934_v16 = vadd.f32 1.4214138, %v2930_v26  ;;  %v3005_v54 = vrot.slane %v3000_v7, %v4161_v32 }
 0xb40   :  { %v3364_v14 = vadd.f32 -0.28449672, %v2936_v23  ;;  %v2933_v62 = vadd.f32 1.4214138, %v2929_v22 }
 0xb41   :  { %v2943_v61 = vmul.f32 %v3809_v17, %v3363_v12  ;;  %v2938_v52 = vmul.f32 %v3813_v45, %v2934_v16  ;;  %v3088_v16 = vsub.s32 %v3085_v56, %v4152_v30 }
 0xb42   :  { %v2944_v8 = vmul.f32 %v3811_v1, %v3364_v14  ;;  %v2937_v0 = vmul.f32 %v3815_v49, %v2933_v62 }
 0xb43   :  { %v2947_v63 = vadd.f32 0.2548296, %v2943_v61  ;;  %v3366_v9 = vadd.f32 -0.28449672, %v2938_v52 }
 0xb44   :  { %v2948_v13 = vadd.f32 0.2548296, %v2944_v8  ;;  %v3365_v60 = vadd.f32 -0.28449672, %v2937_v0 }
 0xb45   :  { %v2951_v19 = vmul.f32 %v3809_v17, %v2947_v63  ;;  %v2946_v59 = vmul.f32 %v3813_v45, %v3366_v9  ;;  %v3823_v17 = vpop.eup %3822 }
 0xb46   :  { %v2952_v20 = vmul.f32 %v3811_v1, %v2948_v13  ;;  %v2945_v18 = vmul.f32 %v3815_v49, %v3365_v60 }
 0xb47   :  { %v2971_v10 = vmul.f32 %v3817_v6, %v2951_v19  ;;  %v2950_v34 = vadd.f32 0.2548296, %v2946_v59 }
 0xb48   :  { %v2972_v36 = vmul.f32 %v3819_v58, %v2952_v20  ;;  %v2949_v37 = vadd.f32 0.2548296, %v2945_v18 }
 0xb49   :  { %v2954_v29 = vmul.f32 %v3813_v45, %v2950_v34  ;;  %v2975_v42 = vsub.f32 1.0, %v2971_v10  ;;  %v2901_v45 = vsel %vm2897_vm3, 1.0, %v3841_v48  ;;  %v2995_v48 = vld [vmem:[%s5222_s18] sm:$0x1] }
 0xb4a   :  { %v2976_v40 = vsub.f32 1.0, %v2972_v36  ;;  %v2953_v24 = vmul.f32 %v3815_v49, %v2949_v37 }
 0xb4b   :  { %v2974_v5 = vmul.f32 %v3821_v41, %v2954_v29  ;;  %v2979_v2 = vmul.f32 %v2975_v42, %v2899_v46 }
 0xb4c   :  { %v2973_v1 = vmul.f32 %v3823_v17, %v2953_v24  ;;  %v2980_v15 = vmul.f32 %v2976_v40, %v2900_v39 }
 0xb4d   :  { %v2978_v21 = vsub.f32 1.0, %v2974_v5  ;;  %v2987_v51 = vadd.f32 1.0, %v2979_v2 }
 0xb4e   :  { %v2977_v3 = vsub.f32 1.0, %v2973_v1  ;;  %v2988_v33 = vadd.f32 1.0, %v2980_v15 }
 0xb4f   :  { %v2982_v44 = vmul.f32 %v2978_v21, %v2902_v35  ;;  %v2991_v55 = vmul.f32 %v2987_v51, %v2983_v50 }
 0xb50   :  { %v2981_v28 = vmul.f32 %v2977_v3, %v2901_v45  ;;  %v2992_v4 = vmul.f32 %v2988_v33, %v2984_v43 }
 0xb51   :  { %v2990_v49 = vadd.f32 1.0, %v2982_v44 }
 0xb52   :  { %v2989_v11 = vadd.f32 1.0, %v2981_v28 }
 0xb53   :  { %v2994_v53 = vmul.f32 %v2990_v49, %v2986_v57 }
 0xb54   :  { %v2993_v47 = vmul.f32 %v2989_v11, %v2985_v38 }
 0xb55   :  { %3037 = vmatprep.subr.mxu1 %v2994_v53 }
 0xb56   :  { %3038 = vmatpush1.msra.mxu1 %v2993_v47 }
 0xb57   :  { %3039 = vmatprep.subr.mxu1 %v2992_v4 }
 0xb58   :  { %3040 = vmatpush1.msra.mxu1 %v2991_v55 }
 0xb59   :  { %3367 = vmatmul.mubr.msk.f32.vlgmr.msra.gmra.mxu1 %vm1565_vm13, %v2995_v48 }
 0xc19   :  { %v3075_v26 = vpop.f32.mrf.mxu1 }
 0xc1a   :  { %v3076_v12 = vadd.f32 %v3075_v26, %v3005_v54 }
 0xc1b   :  { %v3077_v23 = vpop.f32.mrf.mxu1 }
 0xc1c   :  { %v3078_v22 = vadd.f32 %v3077_v23, %v3005_v54 }
 0xc1e   :  { %v3082_v14 = vcombine.low %v3076_v12, %v3078_v22 }
 0xc20   :  { %v3089_v61 = vrot.slane %v3082_v14, %v3088_v16 }
 0xc22   :  { %v3096_v62 = vrot.slane %v3089_v61, %v3088_v16 }
 0xc24   :  { %3102 = vst.msk [vmem:[%s5326_s5] sm:$0x3] %vm3100_vm1, %v3096_v62 }

</bundles_post_ra>
